<compile_context>
chip_gen: v7x
topology: tpu7x:2x2x1
jax: 0.10.0
libtpu: 0.0.40
codegen_flags: <defaults>
</compile_context>

<pallas_src>
import functools

import numpy as np
import jax
import jax.numpy as jnp
from jax.experimental import pallas as pl
from jax.experimental.pallas import tpu as pltpu

EPS = 1e-5  # PyTorch InstanceNorm1d default eps


# ----------------------------------------------------------------------------
# Constant selection matrices (reflect pad + tap shift + stride, avg-pool).
# Built once with numpy in the wrapper; passed to the kernel as tiny inputs.
# ----------------------------------------------------------------------------
def _reflect_index(q, T):
    if q < 0:
        return -q
    if q >= T:
        return 2 * T - 2 - q
    return q


def _conv_tap_matrices(T_in, k, stride=1):
    """R: (k, T_out, T_in). (R[tap] @ x)[i] == reflect_padded(x)[i*stride + tap]."""
    left = k // 2  # pad_layer(): (k//2, k//2-1) for even k, (k//2, k//2) for odd k
    T_out = -(-T_in // stride)
    r = np.zeros((k, T_out, T_in), np.float32)
    for tap in range(k):
        for i in range(T_out):
            r[tap, i, _reflect_index(i * stride + tap - left, T_in)] = 1.0
    return r


def _avg_pool_matrix(T_in, s):
    """P: (T_out, T_in) so that P @ x == F.avg_pool1d(x, s, ceil_mode=True) over time."""
    T_out = -(-T_in // s)
    p = np.zeros((T_out, T_in), np.float32)
    for i in range(T_out):
        lo, hi = i * s, min(i * s + s, T_in)
        p[i, lo:hi] = 1.0 / (hi - lo)  # divisor = #in-bounds elements (ceil_mode)
    return p


# ----------------------------------------------------------------------------
# In-kernel helpers (values only: matmul / elementwise / reduce).
# ----------------------------------------------------------------------------
def _conv_taps(x, r, w, b):
    """Conv1d as a sum of per-tap matmuls.
    x: (T_in, Cin); r: (k, T_out, T_in); w: (k, Cin, Cout); b: (1, Cout)."""
    acc = None
    for tap in range(r.shape[0]):
        xt = jnp.dot(r[tap], x, preferred_element_type=jnp.float32)      # (T_out, Cin)
        term = jnp.dot(xt, w[tap], preferred_element_type=jnp.float32)   # (T_out, Cout)
        acc = term if acc is None else acc + term
    return acc + b


def _instance_norm(y):
    """InstanceNorm1d(affine=False): per-channel stats over time, one-pass."""
    inv_t = 1.0 / y.shape[0]
    mean = jnp.sum(y, axis=0, keepdims=True) * inv_t
    var = jnp.sum(y * y, axis=0, keepdims=True) * inv_t - mean * mean
    return (y - mean) * jax.lax.rsqrt(var + EPS)


# ----------------------------------------------------------------------------
# The single fused kernel: one grid step == one batch sample.
# ----------------------------------------------------------------------------
def _content_encoder_kernel(*refs, n_bank, n_conv_blocks, subsample):
    it = iter(refs)
    x_ref = next(it)                                                  # (1, T, c_in)
    bank = [(next(it), next(it), next(it)) for _ in range(n_bank)]    # (R, W, b)
    w_in_bank_ref = next(it)                                          # (n_bank, c_bank, c_h)
    w_in_x_ref = next(it)                                             # (c_in, c_h)
    b_in_ref = next(it)                                               # (1, c_h)
    blk = []
    for l in range(n_conv_blocks):
        r1 = next(it)
        r2 = next(it)
        pool = next(it) if subsample[l] > 1 else None
        blk.append((r1, r2, pool))
    w1_ref = next(it); b1_ref = next(it)                              # (nb, K, c_h, c_h), (nb, 1, c_h)
    w2_ref = next(it); b2_ref = next(it)
    wc_ref = next(it); bc_ref = next(it)                              # (c_h, c_out), (1, c_out)
    o_ref = next(it)                                                  # (1, T_out, c_out)

    x = x_ref[0]                                                      # (T, c_in)

    # conv_bank (+ReLU) fused with the channel-concat + 1x1 in_conv matmul.
    acc = jnp.dot(x, w_in_x_ref[...], preferred_element_type=jnp.float32) + b_in_ref[...]
    for i, (r_ref, w_ref, b_ref) in enumerate(bank):
        h = jnp.maximum(_conv_taps(x, r_ref[...], w_ref[...], b_ref[...]), 0.0)
        acc = acc + jnp.dot(h, w_in_bank_ref[i], preferred_element_type=jnp.float32)
    out = jnp.maximum(_instance_norm(acc), 0.0)                       # (T, c_h); dropout = id

    # Residual conv blocks.
    for l in range(n_conv_blocks):
        r1_ref, r2_ref, pool_ref = blk[l]
        y = _conv_taps(out, r1_ref[...], w1_ref[l], b1_ref[l])
        y = jnp.maximum(_instance_norm(y), 0.0)
        y = _conv_taps(y, r2_ref[...], w2_ref[l], b2_ref[l])          # stride folded into r2
        y = jnp.maximum(_instance_norm(y), 0.0)
        if subsample[l] > 1:
            skip = jnp.dot(pool_ref[...], out, preferred_element_type=jnp.float32)
        else:
            skip = out
        out = y + skip

    # cont layer: 1x1 conv, no norm / activation.
    cont = jnp.dot(out, wc_ref[...], preferred_element_type=jnp.float32) + bc_ref[...]
    o_ref[0] = cont.astype(o_ref.dtype)


# ----------------------------------------------------------------------------
# Parameters (already in kernel layout) + forward wrapper.
# ----------------------------------------------------------------------------
def init_content_encoder(key, *, c_in, c_h, c_out_cont, kernel_size, bank_size,
                         bank_scale, c_bank, n_conv_blocks):
    """Weights in kernel layout: tap-major (K, Cin, Cout), biases (1, Cout);
    the 1x1 in_conv weight is pre-split into bank groups + raw-x group."""
    bank_ks = list(range(bank_scale, bank_size + 1, bank_scale))
    n_bank = len(bank_ks)
    in_channels = c_bank * (bank_size // bank_scale) + c_in

    keys = iter(jax.random.split(key, 2 * n_bank + 12))

    def init(shape, fan_in):
        s = 1.0 / np.sqrt(fan_in)
        return jax.random.uniform(next(keys), shape, jnp.float32, -s, s)

    params = {"bank": []}
    for k in bank_ks:
        params["bank"].append((init((k, c_in, c_bank), c_in * k),
                               init((1, c_bank), c_in * k)))

    w_in = init((in_channels, c_h), in_channels)
    params["w_in_bank"] = w_in[: n_bank * c_bank].reshape(n_bank, c_bank, c_h)
    params["w_in_x"] = w_in[n_bank * c_bank:]
    params["b_in"] = init((1, c_h), in_channels)

    fan = c_h * kernel_size
    params["w1"] = init((n_conv_blocks, kernel_size, c_h, c_h), fan)
    params["b1"] = init((n_conv_blocks, 1, c_h), fan)
    params["w2"] = init((n_conv_blocks, kernel_size, c_h, c_h), fan)
    params["b2"] = init((n_conv_blocks, 1, c_h), fan)

    params["w_cont"] = init((c_h, c_out_cont), c_h)
    params["b_cont"] = init((1, c_out_cont), c_h)
    return params


def content_encoder_forward(params, x_bct, *, kernel_size, n_conv_blocks, subsample):
    """x_bct: (B, c_in, T) like the PyTorch module; returns (cont, disc) as (B, C, T')."""
    B, c_in, T = x_bct.shape
    x = jnp.transpose(x_bct, (0, 2, 1))                               # (B, T, c_in)

    bank_ks = [int(w.shape[0]) for w, _ in params["bank"]]
    n_bank = len(bank_ks)

    args = [x]
    in_specs = [pl.BlockSpec((1, T, c_in), lambda b: (b, 0, 0))]

    def add(arr):
        arr = jnp.asarray(arr)
        args.append(arr)
        in_specs.append(pl.BlockSpec(arr.shape, lambda b, _r=arr.ndim: (0,) * _r))

    for k, (w, bias) in zip(bank_ks, params["bank"]):
        add(_conv_tap_matrices(T, k))
        add(w)
        add(bias)
    add(params["w_in_bank"]); add(params["w_in_x"]); add(params["b_in"])

    t_cur = T
    for l in range(n_conv_blocks):
        s = subsample[l]
        add(_conv_tap_matrices(t_cur, kernel_size, 1))                # first conv
        add(_conv_tap_matrices(t_cur, kernel_size, s))                # second (strided) conv
        if s > 1:
            add(_avg_pool_matrix(t_cur, s))                           # residual-branch pool
        t_cur = -(-t_cur // s)

    add(params["w1"]); add(params["b1"]); add(params["w2"]); add(params["b2"])
    add(params["w_cont"]); add(params["b_cont"])

    c_out_cont = params["w_cont"].shape[1]
    kernel = functools.partial(_content_encoder_kernel, n_bank=n_bank,
                               n_conv_blocks=n_conv_blocks,
                               subsample=tuple(subsample))

    cont_full = pl.pallas_call(
        kernel,
        out_shape=jax.ShapeDtypeStruct((B, t_cur, c_out_cont), x.dtype),
        grid=(B,),
        in_specs=in_specs,
        out_specs=pl.BlockSpec((1, t_cur, c_out_cont), lambda b: (b, 0, 0)),
        compiler_params=pltpu.CompilerParams(
            dimension_semantics=("parallel",)),   # batch shards over the 2 TCs on v7x
    )(*args)

    cont_full = jnp.transpose(cont_full, (0, 2, 1))                   # (B, c_out_cont, T')
    return cont_full[:, :4, :], cont_full[:, 4:, :]


# ----------------------------------------------------------------------------
# Plain-JAX reference (lax.conv) used as a correctness check in __main__.
# ----------------------------------------------------------------------------
def _reference_forward(params, x_bct, *, n_conv_blocks, subsample):
    relu = lambda t: jnp.maximum(t, 0.0)

    def conv1d(h, w_kio, b, stride=1):
        k = w_kio.shape[0]
        pad = (k // 2, k // 2 - 1) if k % 2 == 0 else (k // 2, k // 2)
        hp = jnp.pad(h, ((0, 0), (0, 0), pad), mode="reflect")
        w_oik = jnp.transpose(w_kio, (2, 1, 0))
        y = jax.lax.conv_general_dilated(
            hp, w_oik, window_strides=(stride,), padding="VALID",
            dimension_numbers=("NCH", "OIH", "NCH"),
            precision=jax.lax.Precision.HIGHEST)
        return y + b.reshape(1, -1, 1)

    def inorm(h):
        m = jnp.mean(h, axis=2, keepdims=True)
        v = jnp.mean(jnp.square(h - m), axis=2, keepdims=True)
        return (h - m) * jax.lax.rsqrt(v + EPS)

    def avg_pool(h, s):
        Bh, Ch, Th = h.shape
        t_out = -(-Th // s)
        hp = jnp.pad(h, ((0, 0), (0, 0), (0, t_out * s - Th)))
        sums = hp.reshape(Bh, Ch, t_out, s).sum(-1)
        counts = np.minimum(np.arange(t_out) * s + s, Th) - np.arange(t_out) * s
        return sums / jnp.asarray(counts, h.dtype)

    x = x_bct
    outs = [relu(conv1d(x, w, b)) for w, b in params["bank"]]
    out = jnp.concatenate(outs + [x], axis=1)
    w_in = jnp.concatenate(
        [params["w_in_bank"].reshape(-1, params["w_in_bank"].shape[-1]),
         params["w_in_x"]], axis=0)[None]                             # (1, in_ch, c_h)
    out = relu(inorm(conv1d(out, w_in, params["b_in"])))
    for l in range(n_conv_blocks):
        y = relu(inorm(conv1d(out, params["w1"][l], params["b1"][l])))
        y = relu(inorm(conv1d(y, params["w2"][l], params["b2"][l],
                              stride=subsample[l])))
        if subsample[l] > 1:
            out = avg_pool(out, subsample[l])
        out = y + out
    cont = conv1d(out, params["w_cont"][None], params["b_cont"])
    return cont[:, :4, :], cont[:, 4:, :]


if __name__ == "__main__":
    # Module hyper-parameters (small, consistent with the forward pass).
    c_in, c_h, c_out_cont = 4, 32, 8
    kernel_size, bank_size, bank_scale, c_bank = 3, 4, 1, 8
    n_conv_blocks, subsample = 2, (1, 2)
    B, T = 2, 16

    kp, kx = jax.random.split(jax.random.PRNGKey(0))
    params = init_content_encoder(
        kp, c_in=c_in, c_h=c_h, c_out_cont=c_out_cont, kernel_size=kernel_size,
        bank_size=bank_size, bank_scale=bank_scale, c_bank=c_bank,
        n_conv_blocks=n_conv_blocks)
    x = jax.random.normal(kx, (B, c_in, T), jnp.float32)              # NCW, like PyTorch

    fwd = jax.jit(functools.partial(
        content_encoder_forward, kernel_size=kernel_size,
        n_conv_blocks=n_conv_blocks, subsample=subsample))
    cont, disc = fwd(params, x)
    cont = jax.block_until_ready(cont)
    disc = jax.block_until_ready(disc)

    T_out = -(-T // subsample[1])                                     # one stride-2 block
    assert cont.shape == (B, 4, T_out), cont.shape
    assert disc.shape == (B, c_out_cont - 4, T_out), disc.shape
    assert bool(jnp.all(jnp.isfinite(cont))) and bool(jnp.all(jnp.isfinite(disc)))

    cont_ref, disc_ref = _reference_forward(
        params, x, n_conv_blocks=n_conv_blocks, subsample=subsample)
    assert bool(jnp.allclose(cont, cont_ref, rtol=2e-3, atol=2e-3)), \
        float(jnp.max(jnp.abs(cont - cont_ref)))
    assert bool(jnp.allclose(disc, disc_ref, rtol=2e-3, atol=2e-3)), \
        float(jnp.max(jnp.abs(disc - disc_ref)))

    print("KERNEL_OK")
</pallas_src>

<mosaic_0001>
module attributes {stable_mosaic.version = 11 : i64} {
  func.func @_content_encoder_kernel(%arg0: i32, %arg1: memref<1x16x4xf32, #tpu.memory_space<vmem>>, %arg2: memref<1x16x16xf32, #tpu.memory_space<vmem>>, %arg3: memref<1x4x8xf32, #tpu.memory_space<vmem>>, %arg4: memref<1x8xf32, #tpu.memory_space<vmem>>, %arg5: memref<2x16x16xf32, #tpu.memory_space<vmem>>, %arg6: memref<2x4x8xf32, #tpu.memory_space<vmem>>, %arg7: memref<1x8xf32, #tpu.memory_space<vmem>>, %arg8: memref<3x16x16xf32, #tpu.memory_space<vmem>>, %arg9: memref<3x4x8xf32, #tpu.memory_space<vmem>>, %arg10: memref<1x8xf32, #tpu.memory_space<vmem>>, %arg11: memref<4x16x16xf32, #tpu.memory_space<vmem>>, %arg12: memref<4x4x8xf32, #tpu.memory_space<vmem>>, %arg13: memref<1x8xf32, #tpu.memory_space<vmem>>, %arg14: memref<4x8x32xf32, #tpu.memory_space<vmem>>, %arg15: memref<4x32xf32, #tpu.memory_space<vmem>>, %arg16: memref<1x32xf32, #tpu.memory_space<vmem>>, %arg17: memref<3x16x16xf32, #tpu.memory_space<vmem>>, %arg18: memref<3x16x16xf32, #tpu.memory_space<vmem>>, %arg19: memref<3x16x16xf32, #tpu.memory_space<vmem>>, %arg20: memref<3x8x16xf32, #tpu.memory_space<vmem>>, %arg21: memref<8x16xf32, #tpu.memory_space<vmem>>, %arg22: memref<2x3x32x32xf32, #tpu.memory_space<vmem>>, %arg23: memref<2x1x32xf32, #tpu.memory_space<vmem>>, %arg24: memref<2x3x32x32xf32, #tpu.memory_space<vmem>>, %arg25: memref<2x1x32xf32, #tpu.memory_space<vmem>>, %arg26: memref<32x8xf32, #tpu.memory_space<vmem>>, %arg27: memref<1x8xf32, #tpu.memory_space<vmem>>, %arg28: memref<1x8x8xf32, #tpu.memory_space<vmem>>) attributes {dimension_semantics = [#tpu.dimension_semantics<parallel>], iteration_bounds = array<i64: 2>, scalar_prefetch = 0 : i64, scratch_operands = 0 : i64, tpu.core_type = #tpu.core_type<tc>, window_params = [{transform_indices = @transform_0, window_bounds = array<i64: 1, 16, 4>}, {pipeline_mode = #tpu.pipeline_mode<synchronous>, transform_indices = @transform_1, window_bounds = array<i64: 1, 16, 16>}, {pipeline_mode = #tpu.pipeline_mode<synchronous>, transform_indices = @transform_2, window_bounds = array<i64: 1, 4, 8>}, {pipeline_mode = #tpu.pipeline_mode<synchronous>, transform_indices = @transform_3, window_bounds = array<i64: 1, 8>}, {pipeline_mode = #tpu.pipeline_mode<synchronous>, transform_indices = @transform_4, window_bounds = array<i64: 2, 16, 16>}, {pipeline_mode = #tpu.pipeline_mode<synchronous>, transform_indices = @transform_5, window_bounds = array<i64: 2, 4, 8>}, {pipeline_mode = #tpu.pipeline_mode<synchronous>, transform_indices = @transform_6, window_bounds = array<i64: 1, 8>}, {pipeline_mode = #tpu.pipeline_mode<synchronous>, transform_indices = @transform_7, window_bounds = array<i64: 3, 16, 16>}, {pipeline_mode = #tpu.pipeline_mode<synchronous>, transform_indices = @transform_8, window_bounds = array<i64: 3, 4, 8>}, {pipeline_mode = #tpu.pipeline_mode<synchronous>, transform_indices = @transform_9, window_bounds = array<i64: 1, 8>}, {pipeline_mode = #tpu.pipeline_mode<synchronous>, transform_indices = @transform_10, window_bounds = array<i64: 4, 16, 16>}, {pipeline_mode = #tpu.pipeline_mode<synchronous>, transform_indices = @transform_11, window_bounds = array<i64: 4, 4, 8>}, {pipeline_mode = #tpu.pipeline_mode<synchronous>, transform_indices = @transform_12, window_bounds = array<i64: 1, 8>}, {pipeline_mode = #tpu.pipeline_mode<synchronous>, transform_indices = @transform_13, window_bounds = array<i64: 4, 8, 32>}, {pipeline_mode = #tpu.pipeline_mode<synchronous>, transform_indices = @transform_14, window_bounds = array<i64: 4, 32>}, {pipeline_mode = #tpu.pipeline_mode<synchronous>, transform_indices = @transform_15, window_bounds = array<i64: 1, 32>}, {pipeline_mode = #tpu.pipeline_mode<synchronous>, transform_indices = @transform_16, window_bounds = array<i64: 3, 16, 16>}, {pipeline_mode = #tpu.pipeline_mode<synchronous>, transform_indices = @transform_17, window_bounds = array<i64: 3, 16, 16>}, {pipeline_mode = #tpu.pipeline_mode<synchronous>, transform_indices = @transform_18, window_bounds = array<i64: 3, 16, 16>}, {pipeline_mode = #tpu.pipeline_mode<synchronous>, transform_indices = @transform_19, window_bounds = array<i64: 3, 8, 16>}, {pipeline_mode = #tpu.pipeline_mode<synchronous>, transform_indices = @transform_20, window_bounds = array<i64: 8, 16>}, {pipeline_mode = #tpu.pipeline_mode<synchronous>, transform_indices = @transform_21, window_bounds = array<i64: 2, 3, 32, 32>}, {pipeline_mode = #tpu.pipeline_mode<synchronous>, transform_indices = @transform_22, window_bounds = array<i64: 2, 1, 32>}, {pipeline_mode = #tpu.pipeline_mode<synchronous>, transform_indices = @transform_23, window_bounds = array<i64: 2, 3, 32, 32>}, {pipeline_mode = #tpu.pipeline_mode<synchronous>, transform_indices = @transform_24, window_bounds = array<i64: 2, 1, 32>}, {pipeline_mode = #tpu.pipeline_mode<synchronous>, transform_indices = @transform_25, window_bounds = array<i64: 32, 8>}, {pipeline_mode = #tpu.pipeline_mode<synchronous>, transform_indices = @transform_26, window_bounds = array<i64: 1, 8>}, {transform_indices = @transform_27, window_bounds = array<i64: 1, 8, 8>}]} {
    %c0 = arith.constant 0 : index
    %c0_0 = arith.constant 0 : index
    %c0_1 = arith.constant 0 : index
    %0 = vector.load %arg1[%c0, %c0_0, %c0_1] : memref<1x16x4xf32, #tpu.memory_space<vmem>>, vector<1x16x4xf32>
    %1 = vector.shape_cast %0 : vector<1x16x4xf32> to vector<16x4xf32>
    %c0_2 = arith.constant 0 : index
    %c0_3 = arith.constant 0 : index
    %2 = vector.load %arg15[%c0_2, %c0_3] : memref<4x32xf32, #tpu.memory_space<vmem>>, vector<4x32xf32>
    %cst = arith.constant dense<0.000000e+00> : vector<16x32xf32>
    %3 = tpu.matmul %1, %2, %cst {dimension_numbers = #tpu.dot_dimension_numbers<[1], [0], [0], [1], [0, 0, 1, 1], [], []>} : vector<16x4xf32>, vector<4x32xf32>, vector<16x32xf32> -> vector<16x32xf32>
    %c0_4 = arith.constant 0 : index
    %c0_5 = arith.constant 0 : index
    %4 = vector.load %arg16[%c0_4, %c0_5] : memref<1x32xf32, #tpu.memory_space<vmem>>, vector<1x32xf32>
    %5 = vector.broadcast %4 : vector<1x32xf32> to vector<16x32xf32>
    %6 = arith.addf %3, %5 : vector<16x32xf32>
    %c0_6 = arith.constant 0 : index
    %c0_7 = arith.constant 0 : index
    %c0_8 = arith.constant 0 : index
    %7 = vector.load %arg2[%c0_6, %c0_7, %c0_8] : memref<1x16x16xf32, #tpu.memory_space<vmem>>, vector<1x16x16xf32>
    %c0_9 = arith.constant 0 : index
    %c0_10 = arith.constant 0 : index
    %c0_11 = arith.constant 0 : index
    %8 = vector.load %arg3[%c0_9, %c0_10, %c0_11] : memref<1x4x8xf32, #tpu.memory_space<vmem>>, vector<1x4x8xf32>
    %c0_12 = arith.constant 0 : index
    %c0_13 = arith.constant 0 : index
    %9 = vector.load %arg4[%c0_12, %c0_13] : memref<1x8xf32, #tpu.memory_space<vmem>>, vector<1x8xf32>
    %10 = vector.shape_cast %7 : vector<1x16x16xf32> to vector<16x16xf32>
    %cst_14 = arith.constant dense<0.000000e+00> : vector<16x4xf32>
    %11 = tpu.matmul %10, %1, %cst_14 {dimension_numbers = #tpu.dot_dimension_numbers<[1], [0], [0], [1], [0, 0, 1, 1], [], []>} : vector<16x16xf32>, vector<16x4xf32>, vector<16x4xf32> -> vector<16x4xf32>
    %12 = vector.shape_cast %8 : vector<1x4x8xf32> to vector<4x8xf32>
    %cst_15 = arith.constant dense<0.000000e+00> : vector<16x8xf32>
    %13 = tpu.matmul %11, %12, %cst_15 {dimension_numbers = #tpu.dot_dimension_numbers<[1], [0], [0], [1], [0, 0, 1, 1], [], []>} : vector<16x4xf32>, vector<4x8xf32>, vector<16x8xf32> -> vector<16x8xf32>
    %14 = vector.broadcast %9 : vector<1x8xf32> to vector<16x8xf32>
    %15 = arith.addf %13, %14 : vector<16x8xf32>
    %cst_16 = arith.constant 0.000000e+00 : f32
    %16 = vector.broadcast %cst_16 : f32 to vector<16x8xf32>
    %17 = arith.maximumf %15, %16 : vector<16x8xf32>
    %c0_17 = arith.constant 0 : index
    %c0_18 = arith.constant 0 : index
    %c0_19 = arith.constant 0 : index
    %18 = vector.load %arg14[%c0_17, %c0_18, %c0_19] : memref<4x8x32xf32, #tpu.memory_space<vmem>>, vector<1x8x32xf32>
    %19 = vector.shape_cast %18 : vector<1x8x32xf32> to vector<8x32xf32>
    %cst_20 = arith.constant dense<0.000000e+00> : vector<16x32xf32>
    %20 = tpu.matmul %17, %19, %cst_20 {dimension_numbers = #tpu.dot_dimension_numbers<[1], [0], [0], [1], [0, 0, 1, 1], [], []>} : vector<16x8xf32>, vector<8x32xf32>, vector<16x32xf32> -> vector<16x32xf32>
    %21 = arith.addf %6, %20 : vector<16x32xf32>
    %c0_21 = arith.constant 0 : index
    %c0_22 = arith.constant 0 : index
    %c0_23 = arith.constant 0 : index
    %22 = vector.load %arg5[%c0_21, %c0_22, %c0_23] : memref<2x16x16xf32, #tpu.memory_space<vmem>>, vector<2x16x16xf32>
    %c0_24 = arith.constant 0 : index
    %c0_25 = arith.constant 0 : index
    %c0_26 = arith.constant 0 : index
    %23 = vector.load %arg6[%c0_24, %c0_25, %c0_26] : memref<2x4x8xf32, #tpu.memory_space<vmem>>, vector<2x4x8xf32>
    %c0_27 = arith.constant 0 : index
    %c0_28 = arith.constant 0 : index
    %24 = vector.load %arg7[%c0_27, %c0_28] : memref<1x8xf32, #tpu.memory_space<vmem>>, vector<1x8xf32>
    %25 = vector.extract_strided_slice %22 {offsets = [0, 0, 0], sizes = [1, 16, 16], strides = [1, 1, 1]} : vector<2x16x16xf32> to vector<1x16x16xf32>
    %26 = vector.shape_cast %25 : vector<1x16x16xf32> to vector<16x16xf32>
    %cst_29 = arith.constant dense<0.000000e+00> : vector<16x4xf32>
    %27 = tpu.matmul %26, %1, %cst_29 {dimension_numbers = #tpu.dot_dimension_numbers<[1], [0], [0], [1], [0, 0, 1, 1], [], []>} : vector<16x16xf32>, vector<16x4xf32>, vector<16x4xf32> -> vector<16x4xf32>
    %28 = vector.extract_strided_slice %23 {offsets = [0, 0, 0], sizes = [1, 4, 8], strides = [1, 1, 1]} : vector<2x4x8xf32> to vector<1x4x8xf32>
    %29 = vector.shape_cast %28 : vector<1x4x8xf32> to vector<4x8xf32>
    %cst_30 = arith.constant dense<0.000000e+00> : vector<16x8xf32>
    %30 = tpu.matmul %27, %29, %cst_30 {dimension_numbers = #tpu.dot_dimension_numbers<[1], [0], [0], [1], [0, 0, 1, 1], [], []>} : vector<16x4xf32>, vector<4x8xf32>, vector<16x8xf32> -> vector<16x8xf32>
    %31 = vector.extract_strided_slice %22 {offsets = [1, 0, 0], sizes = [1, 16, 16], strides = [1, 1, 1]} : vector<2x16x16xf32> to vector<1x16x16xf32>
    %32 = vector.shape_cast %31 : vector<1x16x16xf32> to vector<16x16xf32>
    %cst_31 = arith.constant dense<0.000000e+00> : vector<16x4xf32>
    %33 = tpu.matmul %32, %1, %cst_31 {dimension_numbers = #tpu.dot_dimension_numbers<[1], [0], [0], [1], [0, 0, 1, 1], [], []>} : vector<16x16xf32>, vector<16x4xf32>, vector<16x4xf32> -> vector<16x4xf32>
    %34 = vector.extract_strided_slice %23 {offsets = [1, 0, 0], sizes = [1, 4, 8], strides = [1, 1, 1]} : vector<2x4x8xf32> to vector<1x4x8xf32>
    %35 = vector.shape_cast %34 : vector<1x4x8xf32> to vector<4x8xf32>
    %cst_32 = arith.constant dense<0.000000e+00> : vector<16x8xf32>
    %36 = tpu.matmul %33, %35, %cst_32 {dimension_numbers = #tpu.dot_dimension_numbers<[1], [0], [0], [1], [0, 0, 1, 1], [], []>} : vector<16x4xf32>, vector<4x8xf32>, vector<16x8xf32> -> vector<16x8xf32>
    %37 = arith.addf %30, %36 : vector<16x8xf32>
    %38 = vector.broadcast %24 : vector<1x8xf32> to vector<16x8xf32>
    %39 = arith.addf %37, %38 : vector<16x8xf32>
    %cst_33 = arith.constant 0.000000e+00 : f32
    %40 = vector.broadcast %cst_33 : f32 to vector<16x8xf32>
    %41 = arith.maximumf %39, %40 : vector<16x8xf32>
    %c1 = arith.constant 1 : index
    %c0_34 = arith.constant 0 : index
    %c0_35 = arith.constant 0 : index
    %42 = vector.load %arg14[%c1, %c0_34, %c0_35] : memref<4x8x32xf32, #tpu.memory_space<vmem>>, vector<1x8x32xf32>
    %43 = vector.shape_cast %42 : vector<1x8x32xf32> to vector<8x32xf32>
    %cst_36 = arith.constant dense<0.000000e+00> : vector<16x32xf32>
    %44 = tpu.matmul %41, %43, %cst_36 {dimension_numbers = #tpu.dot_dimension_numbers<[1], [0], [0], [1], [0, 0, 1, 1], [], []>} : vector<16x8xf32>, vector<8x32xf32>, vector<16x32xf32> -> vector<16x32xf32>
    %45 = arith.addf %21, %44 : vector<16x32xf32>
    %c0_37 = arith.constant 0 : index
    %c0_38 = arith.constant 0 : index
    %c0_39 = arith.constant 0 : index
    %46 = vector.load %arg8[%c0_37, %c0_38, %c0_39] : memref<3x16x16xf32, #tpu.memory_space<vmem>>, vector<3x16x16xf32>
    %c0_40 = arith.constant 0 : index
    %c0_41 = arith.constant 0 : index
    %c0_42 = arith.constant 0 : index
    %47 = vector.load %arg9[%c0_40, %c0_41, %c0_42] : memref<3x4x8xf32, #tpu.memory_space<vmem>>, vector<3x4x8xf32>
    %c0_43 = arith.constant 0 : index
    %c0_44 = arith.constant 0 : index
    %48 = vector.load %arg10[%c0_43, %c0_44] : memref<1x8xf32, #tpu.memory_space<vmem>>, vector<1x8xf32>
    %49 = vector.extract_strided_slice %46 {offsets = [0, 0, 0], sizes = [1, 16, 16], strides = [1, 1, 1]} : vector<3x16x16xf32> to vector<1x16x16xf32>
    %50 = vector.shape_cast %49 : vector<1x16x16xf32> to vector<16x16xf32>
    %cst_45 = arith.constant dense<0.000000e+00> : vector<16x4xf32>
    %51 = tpu.matmul %50, %1, %cst_45 {dimension_numbers = #tpu.dot_dimension_numbers<[1], [0], [0], [1], [0, 0, 1, 1], [], []>} : vector<16x16xf32>, vector<16x4xf32>, vector<16x4xf32> -> vector<16x4xf32>
    %52 = vector.extract_strided_slice %47 {offsets = [0, 0, 0], sizes = [1, 4, 8], strides = [1, 1, 1]} : vector<3x4x8xf32> to vector<1x4x8xf32>
    %53 = vector.shape_cast %52 : vector<1x4x8xf32> to vector<4x8xf32>
    %cst_46 = arith.constant dense<0.000000e+00> : vector<16x8xf32>
    %54 = tpu.matmul %51, %53, %cst_46 {dimension_numbers = #tpu.dot_dimension_numbers<[1], [0], [0], [1], [0, 0, 1, 1], [], []>} : vector<16x4xf32>, vector<4x8xf32>, vector<16x8xf32> -> vector<16x8xf32>
    %55 = vector.extract_strided_slice %46 {offsets = [1, 0, 0], sizes = [1, 16, 16], strides = [1, 1, 1]} : vector<3x16x16xf32> to vector<1x16x16xf32>
    %56 = vector.shape_cast %55 : vector<1x16x16xf32> to vector<16x16xf32>
    %cst_47 = arith.constant dense<0.000000e+00> : vector<16x4xf32>
    %57 = tpu.matmul %56, %1, %cst_47 {dimension_numbers = #tpu.dot_dimension_numbers<[1], [0], [0], [1], [0, 0, 1, 1], [], []>} : vector<16x16xf32>, vector<16x4xf32>, vector<16x4xf32> -> vector<16x4xf32>
    %58 = vector.extract_strided_slice %47 {offsets = [1, 0, 0], sizes = [1, 4, 8], strides = [1, 1, 1]} : vector<3x4x8xf32> to vector<1x4x8xf32>
    %59 = vector.shape_cast %58 : vector<1x4x8xf32> to vector<4x8xf32>
    %cst_48 = arith.constant dense<0.000000e+00> : vector<16x8xf32>
    %60 = tpu.matmul %57, %59, %cst_48 {dimension_numbers = #tpu.dot_dimension_numbers<[1], [0], [0], [1], [0, 0, 1, 1], [], []>} : vector<16x4xf32>, vector<4x8xf32>, vector<16x8xf32> -> vector<16x8xf32>
    %61 = arith.addf %54, %60 : vector<16x8xf32>
    %62 = vector.extract_strided_slice %46 {offsets = [2, 0, 0], sizes = [1, 16, 16], strides = [1, 1, 1]} : vector<3x16x16xf32> to vector<1x16x16xf32>
    %63 = vector.shape_cast %62 : vector<1x16x16xf32> to vector<16x16xf32>
    %cst_49 = arith.constant dense<0.000000e+00> : vector<16x4xf32>
    %64 = tpu.matmul %63, %1, %cst_49 {dimension_numbers = #tpu.dot_dimension_numbers<[1], [0], [0], [1], [0, 0, 1, 1], [], []>} : vector<16x16xf32>, vector<16x4xf32>, vector<16x4xf32> -> vector<16x4xf32>
    %65 = vector.extract_strided_slice %47 {offsets = [2, 0, 0], sizes = [1, 4, 8], strides = [1, 1, 1]} : vector<3x4x8xf32> to vector<1x4x8xf32>
    %66 = vector.shape_cast %65 : vector<1x4x8xf32> to vector<4x8xf32>
    %cst_50 = arith.constant dense<0.000000e+00> : vector<16x8xf32>
    %67 = tpu.matmul %64, %66, %cst_50 {dimension_numbers = #tpu.dot_dimension_numbers<[1], [0], [0], [1], [0, 0, 1, 1], [], []>} : vector<16x4xf32>, vector<4x8xf32>, vector<16x8xf32> -> vector<16x8xf32>
    %68 = arith.addf %61, %67 : vector<16x8xf32>
    %69 = vector.broadcast %48 : vector<1x8xf32> to vector<16x8xf32>
    %70 = arith.addf %68, %69 : vector<16x8xf32>
    %cst_51 = arith.constant 0.000000e+00 : f32
    %71 = vector.broadcast %cst_51 : f32 to vector<16x8xf32>
    %72 = arith.maximumf %70, %71 : vector<16x8xf32>
    %c2 = arith.constant 2 : index
    %c0_52 = arith.constant 0 : index
    %c0_53 = arith.constant 0 : index
    %73 = vector.load %arg14[%c2, %c0_52, %c0_53] : memref<4x8x32xf32, #tpu.memory_space<vmem>>, vector<1x8x32xf32>
    %74 = vector.shape_cast %73 : vector<1x8x32xf32> to vector<8x32xf32>
    %cst_54 = arith.constant dense<0.000000e+00> : vector<16x32xf32>
    %75 = tpu.matmul %72, %74, %cst_54 {dimension_numbers = #tpu.dot_dimension_numbers<[1], [0], [0], [1], [0, 0, 1, 1], [], []>} : vector<16x8xf32>, vector<8x32xf32>, vector<16x32xf32> -> vector<16x32xf32>
    %76 = arith.addf %45, %75 : vector<16x32xf32>
    %c0_55 = arith.constant 0 : index
    %c0_56 = arith.constant 0 : index
    %c0_57 = arith.constant 0 : index
    %77 = vector.load %arg11[%c0_55, %c0_56, %c0_57] : memref<4x16x16xf32, #tpu.memory_space<vmem>>, vector<4x16x16xf32>
    %c0_58 = arith.constant 0 : index
    %c0_59 = arith.constant 0 : index
    %c0_60 = arith.constant 0 : index
    %78 = vector.load %arg12[%c0_58, %c0_59, %c0_60] : memref<4x4x8xf32, #tpu.memory_space<vmem>>, vector<4x4x8xf32>
    %c0_61 = arith.constant 0 : index
    %c0_62 = arith.constant 0 : index
    %79 = vector.load %arg13[%c0_61, %c0_62] : memref<1x8xf32, #tpu.memory_space<vmem>>, vector<1x8xf32>
    %80 = vector.extract_strided_slice %77 {offsets = [0, 0, 0], sizes = [1, 16, 16], strides = [1, 1, 1]} : vector<4x16x16xf32> to vector<1x16x16xf32>
    %81 = vector.shape_cast %80 : vector<1x16x16xf32> to vector<16x16xf32>
    %cst_63 = arith.constant dense<0.000000e+00> : vector<16x4xf32>
    %82 = tpu.matmul %81, %1, %cst_63 {dimension_numbers = #tpu.dot_dimension_numbers<[1], [0], [0], [1], [0, 0, 1, 1], [], []>} : vector<16x16xf32>, vector<16x4xf32>, vector<16x4xf32> -> vector<16x4xf32>
    %83 = vector.extract_strided_slice %78 {offsets = [0, 0, 0], sizes = [1, 4, 8], strides = [1, 1, 1]} : vector<4x4x8xf32> to vector<1x4x8xf32>
    %84 = vector.shape_cast %83 : vector<1x4x8xf32> to vector<4x8xf32>
    %cst_64 = arith.constant dense<0.000000e+00> : vector<16x8xf32>
    %85 = tpu.matmul %82, %84, %cst_64 {dimension_numbers = #tpu.dot_dimension_numbers<[1], [0], [0], [1], [0, 0, 1, 1], [], []>} : vector<16x4xf32>, vector<4x8xf32>, vector<16x8xf32> -> vector<16x8xf32>
    %86 = vector.extract_strided_slice %77 {offsets = [1, 0, 0], sizes = [1, 16, 16], strides = [1, 1, 1]} : vector<4x16x16xf32> to vector<1x16x16xf32>
    %87 = vector.shape_cast %86 : vector<1x16x16xf32> to vector<16x16xf32>
    %cst_65 = arith.constant dense<0.000000e+00> : vector<16x4xf32>
    %88 = tpu.matmul %87, %1, %cst_65 {dimension_numbers = #tpu.dot_dimension_numbers<[1], [0], [0], [1], [0, 0, 1, 1], [], []>} : vector<16x16xf32>, vector<16x4xf32>, vector<16x4xf32> -> vector<16x4xf32>
    %89 = vector.extract_strided_slice %78 {offsets = [1, 0, 0], sizes = [1, 4, 8], strides = [1, 1, 1]} : vector<4x4x8xf32> to vector<1x4x8xf32>
    %90 = vector.shape_cast %89 : vector<1x4x8xf32> to vector<4x8xf32>
    %cst_66 = arith.constant dense<0.000000e+00> : vector<16x8xf32>
    %91 = tpu.matmul %88, %90, %cst_66 {dimension_numbers = #tpu.dot_dimension_numbers<[1], [0], [0], [1], [0, 0, 1, 1], [], []>} : vector<16x4xf32>, vector<4x8xf32>, vector<16x8xf32> -> vector<16x8xf32>
    %92 = arith.addf %85, %91 : vector<16x8xf32>
    %93 = vector.extract_strided_slice %77 {offsets = [2, 0, 0], sizes = [1, 16, 16], strides = [1, 1, 1]} : vector<4x16x16xf32> to vector<1x16x16xf32>
    %94 = vector.shape_cast %93 : vector<1x16x16xf32> to vector<16x16xf32>
    %cst_67 = arith.constant dense<0.000000e+00> : vector<16x4xf32>
    %95 = tpu.matmul %94, %1, %cst_67 {dimension_numbers = #tpu.dot_dimension_numbers<[1], [0], [0], [1], [0, 0, 1, 1], [], []>} : vector<16x16xf32>, vector<16x4xf32>, vector<16x4xf32> -> vector<16x4xf32>
    %96 = vector.extract_strided_slice %78 {offsets = [2, 0, 0], sizes = [1, 4, 8], strides = [1, 1, 1]} : vector<4x4x8xf32> to vector<1x4x8xf32>
    %97 = vector.shape_cast %96 : vector<1x4x8xf32> to vector<4x8xf32>
    %cst_68 = arith.constant dense<0.000000e+00> : vector<16x8xf32>
    %98 = tpu.matmul %95, %97, %cst_68 {dimension_numbers = #tpu.dot_dimension_numbers<[1], [0], [0], [1], [0, 0, 1, 1], [], []>} : vector<16x4xf32>, vector<4x8xf32>, vector<16x8xf32> -> vector<16x8xf32>
    %99 = arith.addf %92, %98 : vector<16x8xf32>
    %100 = vector.extract_strided_slice %77 {offsets = [3, 0, 0], sizes = [1, 16, 16], strides = [1, 1, 1]} : vector<4x16x16xf32> to vector<1x16x16xf32>
    %101 = vector.shape_cast %100 : vector<1x16x16xf32> to vector<16x16xf32>
    %cst_69 = arith.constant dense<0.000000e+00> : vector<16x4xf32>
    %102 = tpu.matmul %101, %1, %cst_69 {dimension_numbers = #tpu.dot_dimension_numbers<[1], [0], [0], [1], [0, 0, 1, 1], [], []>} : vector<16x16xf32>, vector<16x4xf32>, vector<16x4xf32> -> vector<16x4xf32>
    %103 = vector.extract_strided_slice %78 {offsets = [3, 0, 0], sizes = [1, 4, 8], strides = [1, 1, 1]} : vector<4x4x8xf32> to vector<1x4x8xf32>
    %104 = vector.shape_cast %103 : vector<1x4x8xf32> to vector<4x8xf32>
    %cst_70 = arith.constant dense<0.000000e+00> : vector<16x8xf32>
    %105 = tpu.matmul %102, %104, %cst_70 {dimension_numbers = #tpu.dot_dimension_numbers<[1], [0], [0], [1], [0, 0, 1, 1], [], []>} : vector<16x4xf32>, vector<4x8xf32>, vector<16x8xf32> -> vector<16x8xf32>
    %106 = arith.addf %99, %105 : vector<16x8xf32>
    %107 = vector.broadcast %79 : vector<1x8xf32> to vector<16x8xf32>
    %108 = arith.addf %106, %107 : vector<16x8xf32>
    %cst_71 = arith.constant 0.000000e+00 : f32
    %109 = vector.broadcast %cst_71 : f32 to vector<16x8xf32>
    %110 = arith.maximumf %108, %109 : vector<16x8xf32>
    %c3 = arith.constant 3 : index
    %c0_72 = arith.constant 0 : index
    %c0_73 = arith.constant 0 : index
    %111 = vector.load %arg14[%c3, %c0_72, %c0_73] : memref<4x8x32xf32, #tpu.memory_space<vmem>>, vector<1x8x32xf32>
    %112 = vector.shape_cast %111 : vector<1x8x32xf32> to vector<8x32xf32>
    %cst_74 = arith.constant dense<0.000000e+00> : vector<16x32xf32>
    %113 = tpu.matmul %110, %112, %cst_74 {dimension_numbers = #tpu.dot_dimension_numbers<[1], [0], [0], [1], [0, 0, 1, 1], [], []>} : vector<16x8xf32>, vector<8x32xf32>, vector<16x32xf32> -> vector<16x32xf32>
    %114 = arith.addf %76, %113 : vector<16x32xf32>
    %cst_75 = arith.constant dense<0.000000e+00> : vector<32xf32>
    %115 = vector.multi_reduction <add>, %114, %cst_75 [0] : vector<16x32xf32> to vector<32xf32>
    %116 = vector.shape_cast %115 : vector<32xf32> to vector<1x32xf32>
    %cst_76 = arith.constant 6.250000e-02 : f32
    %117 = vector.broadcast %cst_76 : f32 to vector<1x32xf32>
    %118 = arith.mulf %116, %117 : vector<1x32xf32>
    %119 = arith.mulf %114, %114 : vector<16x32xf32>
    %cst_77 = arith.constant dense<0.000000e+00> : vector<32xf32>
    %120 = vector.multi_reduction <add>, %119, %cst_77 [0] : vector<16x32xf32> to vector<32xf32>
    %121 = vector.shape_cast %120 : vector<32xf32> to vector<1x32xf32>
    %cst_78 = arith.constant 6.250000e-02 : f32
    %122 = vector.broadcast %cst_78 : f32 to vector<1x32xf32>
    %123 = arith.mulf %121, %122 : vector<1x32xf32>
    %124 = arith.mulf %118, %118 : vector<1x32xf32>
    %125 = arith.subf %123, %124 : vector<1x32xf32>
    %126 = vector.broadcast %118 : vector<1x32xf32> to vector<16x32xf32>
    %127 = arith.subf %114, %126 : vector<16x32xf32>
    %cst_79 = arith.constant 9.99999974E-6 : f32
    %128 = vector.broadcast %cst_79 : f32 to vector<1x32xf32>
    %129 = arith.addf %125, %128 : vector<1x32xf32>
    %130 = math.rsqrt %129 : vector<1x32xf32>
    %131 = vector.broadcast %130 : vector<1x32xf32> to vector<16x32xf32>
    %132 = arith.mulf %127, %131 : vector<16x32xf32>
    %cst_80 = arith.constant 0.000000e+00 : f32
    %133 = vector.broadcast %cst_80 : f32 to vector<16x32xf32>
    %134 = arith.maximumf %132, %133 : vector<16x32xf32>
    %c0_81 = arith.constant 0 : index
    %c0_82 = arith.constant 0 : index
    %c0_83 = arith.constant 0 : index
    %135 = vector.load %arg17[%c0_81, %c0_82, %c0_83] : memref<3x16x16xf32, #tpu.memory_space<vmem>>, vector<3x16x16xf32>
    %c0_84 = arith.constant 0 : index
    %c0_85 = arith.constant 0 : index
    %c0_86 = arith.constant 0 : index
    %c0_87 = arith.constant 0 : index
    %136 = vector.load %arg22[%c0_84, %c0_85, %c0_86, %c0_87] : memref<2x3x32x32xf32, #tpu.memory_space<vmem>>, vector<1x3x32x32xf32>
    %137 = vector.shape_cast %136 : vector<1x3x32x32xf32> to vector<3x32x32xf32>
    %c0_88 = arith.constant 0 : index
    %c0_89 = arith.constant 0 : index
    %c0_90 = arith.constant 0 : index
    %138 = vector.load %arg23[%c0_88, %c0_89, %c0_90] : memref<2x1x32xf32, #tpu.memory_space<vmem>>, vector<1x1x32xf32>
    %139 = vector.shape_cast %138 : vector<1x1x32xf32> to vector<1x32xf32>
    %140 = vector.extract_strided_slice %135 {offsets = [0, 0, 0], sizes = [1, 16, 16], strides = [1, 1, 1]} : vector<3x16x16xf32> to vector<1x16x16xf32>
    %141 = vector.shape_cast %140 : vector<1x16x16xf32> to vector<16x16xf32>
    %cst_91 = arith.constant dense<0.000000e+00> : vector<16x32xf32>
    %142 = tpu.matmul %141, %134, %cst_91 {dimension_numbers = #tpu.dot_dimension_numbers<[1], [0], [0], [1], [0, 0, 1, 1], [], []>} : vector<16x16xf32>, vector<16x32xf32>, vector<16x32xf32> -> vector<16x32xf32>
    %143 = vector.extract_strided_slice %137 {offsets = [0, 0, 0], sizes = [1, 32, 32], strides = [1, 1, 1]} : vector<3x32x32xf32> to vector<1x32x32xf32>
    %144 = vector.shape_cast %143 : vector<1x32x32xf32> to vector<32x32xf32>
    %cst_92 = arith.constant dense<0.000000e+00> : vector<16x32xf32>
    %145 = tpu.matmul %142, %144, %cst_92 {dimension_numbers = #tpu.dot_dimension_numbers<[1], [0], [0], [1], [0, 0, 1, 1], [], []>} : vector<16x32xf32>, vector<32x32xf32>, vector<16x32xf32> -> vector<16x32xf32>
    %146 = vector.extract_strided_slice %135 {offsets = [1, 0, 0], sizes = [1, 16, 16], strides = [1, 1, 1]} : vector<3x16x16xf32> to vector<1x16x16xf32>
    %147 = vector.shape_cast %146 : vector<1x16x16xf32> to vector<16x16xf32>
    %cst_93 = arith.constant dense<0.000000e+00> : vector<16x32xf32>
    %148 = tpu.matmul %147, %134, %cst_93 {dimension_numbers = #tpu.dot_dimension_numbers<[1], [0], [0], [1], [0, 0, 1, 1], [], []>} : vector<16x16xf32>, vector<16x32xf32>, vector<16x32xf32> -> vector<16x32xf32>
    %149 = vector.extract_strided_slice %137 {offsets = [1, 0, 0], sizes = [1, 32, 32], strides = [1, 1, 1]} : vector<3x32x32xf32> to vector<1x32x32xf32>
    %150 = vector.shape_cast %149 : vector<1x32x32xf32> to vector<32x32xf32>
    %cst_94 = arith.constant dense<0.000000e+00> : vector<16x32xf32>
    %151 = tpu.matmul %148, %150, %cst_94 {dimension_numbers = #tpu.dot_dimension_numbers<[1], [0], [0], [1], [0, 0, 1, 1], [], []>} : vector<16x32xf32>, vector<32x32xf32>, vector<16x32xf32> -> vector<16x32xf32>
    %152 = arith.addf %145, %151 : vector<16x32xf32>
    %153 = vector.extract_strided_slice %135 {offsets = [2, 0, 0], sizes = [1, 16, 16], strides = [1, 1, 1]} : vector<3x16x16xf32> to vector<1x16x16xf32>
    %154 = vector.shape_cast %153 : vector<1x16x16xf32> to vector<16x16xf32>
    %cst_95 = arith.constant dense<0.000000e+00> : vector<16x32xf32>
    %155 = tpu.matmul %154, %134, %cst_95 {dimension_numbers = #tpu.dot_dimension_numbers<[1], [0], [0], [1], [0, 0, 1, 1], [], []>} : vector<16x16xf32>, vector<16x32xf32>, vector<16x32xf32> -> vector<16x32xf32>
    %156 = vector.extract_strided_slice %137 {offsets = [2, 0, 0], sizes = [1, 32, 32], strides = [1, 1, 1]} : vector<3x32x32xf32> to vector<1x32x32xf32>
    %157 = vector.shape_cast %156 : vector<1x32x32xf32> to vector<32x32xf32>
    %cst_96 = arith.constant dense<0.000000e+00> : vector<16x32xf32>
    %158 = tpu.matmul %155, %157, %cst_96 {dimension_numbers = #tpu.dot_dimension_numbers<[1], [0], [0], [1], [0, 0, 1, 1], [], []>} : vector<16x32xf32>, vector<32x32xf32>, vector<16x32xf32> -> vector<16x32xf32>
    %159 = arith.addf %152, %158 : vector<16x32xf32>
    %160 = vector.broadcast %139 : vector<1x32xf32> to vector<16x32xf32>
    %161 = arith.addf %159, %160 : vector<16x32xf32>
    %cst_97 = arith.constant dense<0.000000e+00> : vector<32xf32>
    %162 = vector.multi_reduction <add>, %161, %cst_97 [0] : vector<16x32xf32> to vector<32xf32>
    %163 = vector.shape_cast %162 : vector<32xf32> to vector<1x32xf32>
    %cst_98 = arith.constant 6.250000e-02 : f32
    %164 = vector.broadcast %cst_98 : f32 to vector<1x32xf32>
    %165 = arith.mulf %163, %164 : vector<1x32xf32>
    %166 = arith.mulf %161, %161 : vector<16x32xf32>
    %cst_99 = arith.constant dense<0.000000e+00> : vector<32xf32>
    %167 = vector.multi_reduction <add>, %166, %cst_99 [0] : vector<16x32xf32> to vector<32xf32>
    %168 = vector.shape_cast %167 : vector<32xf32> to vector<1x32xf32>
    %cst_100 = arith.constant 6.250000e-02 : f32
    %169 = vector.broadcast %cst_100 : f32 to vector<1x32xf32>
    %170 = arith.mulf %168, %169 : vector<1x32xf32>
    %171 = arith.mulf %165, %165 : vector<1x32xf32>
    %172 = arith.subf %170, %171 : vector<1x32xf32>
    %173 = vector.broadcast %165 : vector<1x32xf32> to vector<16x32xf32>
    %174 = arith.subf %161, %173 : vector<16x32xf32>
    %cst_101 = arith.constant 9.99999974E-6 : f32
    %175 = vector.broadcast %cst_101 : f32 to vector<1x32xf32>
    %176 = arith.addf %172, %175 : vector<1x32xf32>
    %177 = math.rsqrt %176 : vector<1x32xf32>
    %178 = vector.broadcast %177 : vector<1x32xf32> to vector<16x32xf32>
    %179 = arith.mulf %174, %178 : vector<16x32xf32>
    %cst_102 = arith.constant 0.000000e+00 : f32
    %180 = vector.broadcast %cst_102 : f32 to vector<16x32xf32>
    %181 = arith.maximumf %179, %180 : vector<16x32xf32>
    %c0_103 = arith.constant 0 : index
    %c0_104 = arith.constant 0 : index
    %c0_105 = arith.constant 0 : index
    %182 = vector.load %arg18[%c0_103, %c0_104, %c0_105] : memref<3x16x16xf32, #tpu.memory_space<vmem>>, vector<3x16x16xf32>
    %c0_106 = arith.constant 0 : index
    %c0_107 = arith.constant 0 : index
    %c0_108 = arith.constant 0 : index
    %c0_109 = arith.constant 0 : index
    %183 = vector.load %arg24[%c0_106, %c0_107, %c0_108, %c0_109] : memref<2x3x32x32xf32, #tpu.memory_space<vmem>>, vector<1x3x32x32xf32>
    %184 = vector.shape_cast %183 : vector<1x3x32x32xf32> to vector<3x32x32xf32>
    %c0_110 = arith.constant 0 : index
    %c0_111 = arith.constant 0 : index
    %c0_112 = arith.constant 0 : index
    %185 = vector.load %arg25[%c0_110, %c0_111, %c0_112] : memref<2x1x32xf32, #tpu.memory_space<vmem>>, vector<1x1x32xf32>
    %186 = vector.shape_cast %185 : vector<1x1x32xf32> to vector<1x32xf32>
    %187 = vector.extract_strided_slice %182 {offsets = [0, 0, 0], sizes = [1, 16, 16], strides = [1, 1, 1]} : vector<3x16x16xf32> to vector<1x16x16xf32>
    %188 = vector.shape_cast %187 : vector<1x16x16xf32> to vector<16x16xf32>
    %cst_113 = arith.constant dense<0.000000e+00> : vector<16x32xf32>
    %189 = tpu.matmul %188, %181, %cst_113 {dimension_numbers = #tpu.dot_dimension_numbers<[1], [0], [0], [1], [0, 0, 1, 1], [], []>} : vector<16x16xf32>, vector<16x32xf32>, vector<16x32xf32> -> vector<16x32xf32>
    %190 = vector.extract_strided_slice %184 {offsets = [0, 0, 0], sizes = [1, 32, 32], strides = [1, 1, 1]} : vector<3x32x32xf32> to vector<1x32x32xf32>
    %191 = vector.shape_cast %190 : vector<1x32x32xf32> to vector<32x32xf32>
    %cst_114 = arith.constant dense<0.000000e+00> : vector<16x32xf32>
    %192 = tpu.matmul %189, %191, %cst_114 {dimension_numbers = #tpu.dot_dimension_numbers<[1], [0], [0], [1], [0, 0, 1, 1], [], []>} : vector<16x32xf32>, vector<32x32xf32>, vector<16x32xf32> -> vector<16x32xf32>
    %193 = vector.extract_strided_slice %182 {offsets = [1, 0, 0], sizes = [1, 16, 16], strides = [1, 1, 1]} : vector<3x16x16xf32> to vector<1x16x16xf32>
    %194 = vector.shape_cast %193 : vector<1x16x16xf32> to vector<16x16xf32>
    %cst_115 = arith.constant dense<0.000000e+00> : vector<16x32xf32>
    %195 = tpu.matmul %194, %181, %cst_115 {dimension_numbers = #tpu.dot_dimension_numbers<[1], [0], [0], [1], [0, 0, 1, 1], [], []>} : vector<16x16xf32>, vector<16x32xf32>, vector<16x32xf32> -> vector<16x32xf32>
    %196 = vector.extract_strided_slice %184 {offsets = [1, 0, 0], sizes = [1, 32, 32], strides = [1, 1, 1]} : vector<3x32x32xf32> to vector<1x32x32xf32>
    %197 = vector.shape_cast %196 : vector<1x32x32xf32> to vector<32x32xf32>
    %cst_116 = arith.constant dense<0.000000e+00> : vector<16x32xf32>
    %198 = tpu.matmul %195, %197, %cst_116 {dimension_numbers = #tpu.dot_dimension_numbers<[1], [0], [0], [1], [0, 0, 1, 1], [], []>} : vector<16x32xf32>, vector<32x32xf32>, vector<16x32xf32> -> vector<16x32xf32>
    %199 = arith.addf %192, %198 : vector<16x32xf32>
    %200 = vector.extract_strided_slice %182 {offsets = [2, 0, 0], sizes = [1, 16, 16], strides = [1, 1, 1]} : vector<3x16x16xf32> to vector<1x16x16xf32>
    %201 = vector.shape_cast %200 : vector<1x16x16xf32> to vector<16x16xf32>
    %cst_117 = arith.constant dense<0.000000e+00> : vector<16x32xf32>
    %202 = tpu.matmul %201, %181, %cst_117 {dimension_numbers = #tpu.dot_dimension_numbers<[1], [0], [0], [1], [0, 0, 1, 1], [], []>} : vector<16x16xf32>, vector<16x32xf32>, vector<16x32xf32> -> vector<16x32xf32>
    %203 = vector.extract_strided_slice %184 {offsets = [2, 0, 0], sizes = [1, 32, 32], strides = [1, 1, 1]} : vector<3x32x32xf32> to vector<1x32x32xf32>
    %204 = vector.shape_cast %203 : vector<1x32x32xf32> to vector<32x32xf32>
    %cst_118 = arith.constant dense<0.000000e+00> : vector<16x32xf32>
    %205 = tpu.matmul %202, %204, %cst_118 {dimension_numbers = #tpu.dot_dimension_numbers<[1], [0], [0], [1], [0, 0, 1, 1], [], []>} : vector<16x32xf32>, vector<32x32xf32>, vector<16x32xf32> -> vector<16x32xf32>
    %206 = arith.addf %199, %205 : vector<16x32xf32>
    %207 = vector.broadcast %186 : vector<1x32xf32> to vector<16x32xf32>
    %208 = arith.addf %206, %207 : vector<16x32xf32>
    %cst_119 = arith.constant dense<0.000000e+00> : vector<32xf32>
    %209 = vector.multi_reduction <add>, %208, %cst_119 [0] : vector<16x32xf32> to vector<32xf32>
    %210 = vector.shape_cast %209 : vector<32xf32> to vector<1x32xf32>
    %cst_120 = arith.constant 6.250000e-02 : f32
    %211 = vector.broadcast %cst_120 : f32 to vector<1x32xf32>
    %212 = arith.mulf %210, %211 : vector<1x32xf32>
    %213 = arith.mulf %208, %208 : vector<16x32xf32>
    %cst_121 = arith.constant dense<0.000000e+00> : vector<32xf32>
    %214 = vector.multi_reduction <add>, %213, %cst_121 [0] : vector<16x32xf32> to vector<32xf32>
    %215 = vector.shape_cast %214 : vector<32xf32> to vector<1x32xf32>
    %cst_122 = arith.constant 6.250000e-02 : f32
    %216 = vector.broadcast %cst_122 : f32 to vector<1x32xf32>
    %217 = arith.mulf %215, %216 : vector<1x32xf32>
    %218 = arith.mulf %212, %212 : vector<1x32xf32>
    %219 = arith.subf %217, %218 : vector<1x32xf32>
    %220 = vector.broadcast %212 : vector<1x32xf32> to vector<16x32xf32>
    %221 = arith.subf %208, %220 : vector<16x32xf32>
    %cst_123 = arith.constant 9.99999974E-6 : f32
    %222 = vector.broadcast %cst_123 : f32 to vector<1x32xf32>
    %223 = arith.addf %219, %222 : vector<1x32xf32>
    %224 = math.rsqrt %223 : vector<1x32xf32>
    %225 = vector.broadcast %224 : vector<1x32xf32> to vector<16x32xf32>
    %226 = arith.mulf %221, %225 : vector<16x32xf32>
    %cst_124 = arith.constant 0.000000e+00 : f32
    %227 = vector.broadcast %cst_124 : f32 to vector<16x32xf32>
    %228 = arith.maximumf %226, %227 : vector<16x32xf32>
    %229 = arith.addf %228, %134 : vector<16x32xf32>
    %c0_125 = arith.constant 0 : index
    %c0_126 = arith.constant 0 : index
    %c0_127 = arith.constant 0 : index
    %230 = vector.load %arg19[%c0_125, %c0_126, %c0_127] : memref<3x16x16xf32, #tpu.memory_space<vmem>>, vector<3x16x16xf32>
    %c1_128 = arith.constant 1 : index
    %c0_129 = arith.constant 0 : index
    %c0_130 = arith.constant 0 : index
    %c0_131 = arith.constant 0 : index
    %231 = vector.load %arg22[%c1_128, %c0_129, %c0_130, %c0_131] : memref<2x3x32x32xf32, #tpu.memory_space<vmem>>, vector<1x3x32x32xf32>
    %232 = vector.shape_cast %231 : vector<1x3x32x32xf32> to vector<3x32x32xf32>
    %c1_132 = arith.constant 1 : index
    %c0_133 = arith.constant 0 : index
    %c0_134 = arith.constant 0 : index
    %233 = vector.load %arg23[%c1_132, %c0_133, %c0_134] : memref<2x1x32xf32, #tpu.memory_space<vmem>>, vector<1x1x32xf32>
    %234 = vector.shape_cast %233 : vector<1x1x32xf32> to vector<1x32xf32>
    %235 = vector.extract_strided_slice %230 {offsets = [0, 0, 0], sizes = [1, 16, 16], strides = [1, 1, 1]} : vector<3x16x16xf32> to vector<1x16x16xf32>
    %236 = vector.shape_cast %235 : vector<1x16x16xf32> to vector<16x16xf32>
    %cst_135 = arith.constant dense<0.000000e+00> : vector<16x32xf32>
    %237 = tpu.matmul %236, %229, %cst_135 {dimension_numbers = #tpu.dot_dimension_numbers<[1], [0], [0], [1], [0, 0, 1, 1], [], []>} : vector<16x16xf32>, vector<16x32xf32>, vector<16x32xf32> -> vector<16x32xf32>
    %238 = vector.extract_strided_slice %232 {offsets = [0, 0, 0], sizes = [1, 32, 32], strides = [1, 1, 1]} : vector<3x32x32xf32> to vector<1x32x32xf32>
    %239 = vector.shape_cast %238 : vector<1x32x32xf32> to vector<32x32xf32>
    %cst_136 = arith.constant dense<0.000000e+00> : vector<16x32xf32>
    %240 = tpu.matmul %237, %239, %cst_136 {dimension_numbers = #tpu.dot_dimension_numbers<[1], [0], [0], [1], [0, 0, 1, 1], [], []>} : vector<16x32xf32>, vector<32x32xf32>, vector<16x32xf32> -> vector<16x32xf32>
    %241 = vector.extract_strided_slice %230 {offsets = [1, 0, 0], sizes = [1, 16, 16], strides = [1, 1, 1]} : vector<3x16x16xf32> to vector<1x16x16xf32>
    %242 = vector.shape_cast %241 : vector<1x16x16xf32> to vector<16x16xf32>
    %cst_137 = arith.constant dense<0.000000e+00> : vector<16x32xf32>
    %243 = tpu.matmul %242, %229, %cst_137 {dimension_numbers = #tpu.dot_dimension_numbers<[1], [0], [0], [1], [0, 0, 1, 1], [], []>} : vector<16x16xf32>, vector<16x32xf32>, vector<16x32xf32> -> vector<16x32xf32>
    %244 = vector.extract_strided_slice %232 {offsets = [1, 0, 0], sizes = [1, 32, 32], strides = [1, 1, 1]} : vector<3x32x32xf32> to vector<1x32x32xf32>
    %245 = vector.shape_cast %244 : vector<1x32x32xf32> to vector<32x32xf32>
    %cst_138 = arith.constant dense<0.000000e+00> : vector<16x32xf32>
    %246 = tpu.matmul %243, %245, %cst_138 {dimension_numbers = #tpu.dot_dimension_numbers<[1], [0], [0], [1], [0, 0, 1, 1], [], []>} : vector<16x32xf32>, vector<32x32xf32>, vector<16x32xf32> -> vector<16x32xf32>
    %247 = arith.addf %240, %246 : vector<16x32xf32>
    %248 = vector.extract_strided_slice %230 {offsets = [2, 0, 0], sizes = [1, 16, 16], strides = [1, 1, 1]} : vector<3x16x16xf32> to vector<1x16x16xf32>
    %249 = vector.shape_cast %248 : vector<1x16x16xf32> to vector<16x16xf32>
    %cst_139 = arith.constant dense<0.000000e+00> : vector<16x32xf32>
    %250 = tpu.matmul %249, %229, %cst_139 {dimension_numbers = #tpu.dot_dimension_numbers<[1], [0], [0], [1], [0, 0, 1, 1], [], []>} : vector<16x16xf32>, vector<16x32xf32>, vector<16x32xf32> -> vector<16x32xf32>
    %251 = vector.extract_strided_slice %232 {offsets = [2, 0, 0], sizes = [1, 32, 32], strides = [1, 1, 1]} : vector<3x32x32xf32> to vector<1x32x32xf32>
    %252 = vector.shape_cast %251 : vector<1x32x32xf32> to vector<32x32xf32>
    %cst_140 = arith.constant dense<0.000000e+00> : vector<16x32xf32>
    %253 = tpu.matmul %250, %252, %cst_140 {dimension_numbers = #tpu.dot_dimension_numbers<[1], [0], [0], [1], [0, 0, 1, 1], [], []>} : vector<16x32xf32>, vector<32x32xf32>, vector<16x32xf32> -> vector<16x32xf32>
    %254 = arith.addf %247, %253 : vector<16x32xf32>
    %255 = vector.broadcast %234 : vector<1x32xf32> to vector<16x32xf32>
    %256 = arith.addf %254, %255 : vector<16x32xf32>
    %cst_141 = arith.constant dense<0.000000e+00> : vector<32xf32>
    %257 = vector.multi_reduction <add>, %256, %cst_141 [0] : vector<16x32xf32> to vector<32xf32>
    %258 = vector.shape_cast %257 : vector<32xf32> to vector<1x32xf32>
    %cst_142 = arith.constant 6.250000e-02 : f32
    %259 = vector.broadcast %cst_142 : f32 to vector<1x32xf32>
    %260 = arith.mulf %258, %259 : vector<1x32xf32>
    %261 = arith.mulf %256, %256 : vector<16x32xf32>
    %cst_143 = arith.constant dense<0.000000e+00> : vector<32xf32>
    %262 = vector.multi_reduction <add>, %261, %cst_143 [0] : vector<16x32xf32> to vector<32xf32>
    %263 = vector.shape_cast %262 : vector<32xf32> to vector<1x32xf32>
    %cst_144 = arith.constant 6.250000e-02 : f32
    %264 = vector.broadcast %cst_144 : f32 to vector<1x32xf32>
    %265 = arith.mulf %263, %264 : vector<1x32xf32>
    %266 = arith.mulf %260, %260 : vector<1x32xf32>
    %267 = arith.subf %265, %266 : vector<1x32xf32>
    %268 = vector.broadcast %260 : vector<1x32xf32> to vector<16x32xf32>
    %269 = arith.subf %256, %268 : vector<16x32xf32>
    %cst_145 = arith.constant 9.99999974E-6 : f32
    %270 = vector.broadcast %cst_145 : f32 to vector<1x32xf32>
    %271 = arith.addf %267, %270 : vector<1x32xf32>
    %272 = math.rsqrt %271 : vector<1x32xf32>
    %273 = vector.broadcast %272 : vector<1x32xf32> to vector<16x32xf32>
    %274 = arith.mulf %269, %273 : vector<16x32xf32>
    %cst_146 = arith.constant 0.000000e+00 : f32
    %275 = vector.broadcast %cst_146 : f32 to vector<16x32xf32>
    %276 = arith.maximumf %274, %275 : vector<16x32xf32>
    %c0_147 = arith.constant 0 : index
    %c0_148 = arith.constant 0 : index
    %c0_149 = arith.constant 0 : index
    %277 = vector.load %arg20[%c0_147, %c0_148, %c0_149] : memref<3x8x16xf32, #tpu.memory_space<vmem>>, vector<3x8x16xf32>
    %c1_150 = arith.constant 1 : index
    %c0_151 = arith.constant 0 : index
    %c0_152 = arith.constant 0 : index
    %c0_153 = arith.constant 0 : index
    %278 = vector.load %arg24[%c1_150, %c0_151, %c0_152, %c0_153] : memref<2x3x32x32xf32, #tpu.memory_space<vmem>>, vector<1x3x32x32xf32>
    %279 = vector.shape_cast %278 : vector<1x3x32x32xf32> to vector<3x32x32xf32>
    %c1_154 = arith.constant 1 : index
    %c0_155 = arith.constant 0 : index
    %c0_156 = arith.constant 0 : index
    %280 = vector.load %arg25[%c1_154, %c0_155, %c0_156] : memref<2x1x32xf32, #tpu.memory_space<vmem>>, vector<1x1x32xf32>
    %281 = vector.shape_cast %280 : vector<1x1x32xf32> to vector<1x32xf32>
    %282 = vector.extract_strided_slice %277 {offsets = [0, 0, 0], sizes = [1, 8, 16], strides = [1, 1, 1]} : vector<3x8x16xf32> to vector<1x8x16xf32>
    %283 = vector.shape_cast %282 : vector<1x8x16xf32> to vector<8x16xf32>
    %cst_157 = arith.constant dense<0.000000e+00> : vector<8x32xf32>
    %284 = tpu.matmul %283, %276, %cst_157 {dimension_numbers = #tpu.dot_dimension_numbers<[1], [0], [0], [1], [0, 0, 1, 1], [], []>} : vector<8x16xf32>, vector<16x32xf32>, vector<8x32xf32> -> vector<8x32xf32>
    %285 = vector.extract_strided_slice %279 {offsets = [0, 0, 0], sizes = [1, 32, 32], strides = [1, 1, 1]} : vector<3x32x32xf32> to vector<1x32x32xf32>
    %286 = vector.shape_cast %285 : vector<1x32x32xf32> to vector<32x32xf32>
    %cst_158 = arith.constant dense<0.000000e+00> : vector<8x32xf32>
    %287 = tpu.matmul %284, %286, %cst_158 {dimension_numbers = #tpu.dot_dimension_numbers<[1], [0], [0], [1], [0, 0, 1, 1], [], []>} : vector<8x32xf32>, vector<32x32xf32>, vector<8x32xf32> -> vector<8x32xf32>
    %288 = vector.extract_strided_slice %277 {offsets = [1, 0, 0], sizes = [1, 8, 16], strides = [1, 1, 1]} : vector<3x8x16xf32> to vector<1x8x16xf32>
    %289 = vector.shape_cast %288 : vector<1x8x16xf32> to vector<8x16xf32>
    %cst_159 = arith.constant dense<0.000000e+00> : vector<8x32xf32>
    %290 = tpu.matmul %289, %276, %cst_159 {dimension_numbers = #tpu.dot_dimension_numbers<[1], [0], [0], [1], [0, 0, 1, 1], [], []>} : vector<8x16xf32>, vector<16x32xf32>, vector<8x32xf32> -> vector<8x32xf32>
    %291 = vector.extract_strided_slice %279 {offsets = [1, 0, 0], sizes = [1, 32, 32], strides = [1, 1, 1]} : vector<3x32x32xf32> to vector<1x32x32xf32>
    %292 = vector.shape_cast %291 : vector<1x32x32xf32> to vector<32x32xf32>
    %cst_160 = arith.constant dense<0.000000e+00> : vector<8x32xf32>
    %293 = tpu.matmul %290, %292, %cst_160 {dimension_numbers = #tpu.dot_dimension_numbers<[1], [0], [0], [1], [0, 0, 1, 1], [], []>} : vector<8x32xf32>, vector<32x32xf32>, vector<8x32xf32> -> vector<8x32xf32>
    %294 = arith.addf %287, %293 : vector<8x32xf32>
    %295 = vector.extract_strided_slice %277 {offsets = [2, 0, 0], sizes = [1, 8, 16], strides = [1, 1, 1]} : vector<3x8x16xf32> to vector<1x8x16xf32>
    %296 = vector.shape_cast %295 : vector<1x8x16xf32> to vector<8x16xf32>
    %cst_161 = arith.constant dense<0.000000e+00> : vector<8x32xf32>
    %297 = tpu.matmul %296, %276, %cst_161 {dimension_numbers = #tpu.dot_dimension_numbers<[1], [0], [0], [1], [0, 0, 1, 1], [], []>} : vector<8x16xf32>, vector<16x32xf32>, vector<8x32xf32> -> vector<8x32xf32>
    %298 = vector.extract_strided_slice %279 {offsets = [2, 0, 0], sizes = [1, 32, 32], strides = [1, 1, 1]} : vector<3x32x32xf32> to vector<1x32x32xf32>
    %299 = vector.shape_cast %298 : vector<1x32x32xf32> to vector<32x32xf32>
    %cst_162 = arith.constant dense<0.000000e+00> : vector<8x32xf32>
    %300 = tpu.matmul %297, %299, %cst_162 {dimension_numbers = #tpu.dot_dimension_numbers<[1], [0], [0], [1], [0, 0, 1, 1], [], []>} : vector<8x32xf32>, vector<32x32xf32>, vector<8x32xf32> -> vector<8x32xf32>
    %301 = arith.addf %294, %300 : vector<8x32xf32>
    %302 = vector.broadcast %281 : vector<1x32xf32> to vector<8x32xf32>
    %303 = arith.addf %301, %302 : vector<8x32xf32>
    %cst_163 = arith.constant dense<0.000000e+00> : vector<32xf32>
    %304 = vector.multi_reduction <add>, %303, %cst_163 [0] : vector<8x32xf32> to vector<32xf32>
    %305 = vector.shape_cast %304 : vector<32xf32> to vector<1x32xf32>
    %cst_164 = arith.constant 1.250000e-01 : f32
    %306 = vector.broadcast %cst_164 : f32 to vector<1x32xf32>
    %307 = arith.mulf %305, %306 : vector<1x32xf32>
    %308 = arith.mulf %303, %303 : vector<8x32xf32>
    %cst_165 = arith.constant dense<0.000000e+00> : vector<32xf32>
    %309 = vector.multi_reduction <add>, %308, %cst_165 [0] : vector<8x32xf32> to vector<32xf32>
    %310 = vector.shape_cast %309 : vector<32xf32> to vector<1x32xf32>
    %cst_166 = arith.constant 1.250000e-01 : f32
    %311 = vector.broadcast %cst_166 : f32 to vector<1x32xf32>
    %312 = arith.mulf %310, %311 : vector<1x32xf32>
    %313 = arith.mulf %307, %307 : vector<1x32xf32>
    %314 = arith.subf %312, %313 : vector<1x32xf32>
    %315 = vector.broadcast %307 : vector<1x32xf32> to vector<8x32xf32>
    %316 = arith.subf %303, %315 : vector<8x32xf32>
    %cst_167 = arith.constant 9.99999974E-6 : f32
    %317 = vector.broadcast %cst_167 : f32 to vector<1x32xf32>
    %318 = arith.addf %314, %317 : vector<1x32xf32>
    %319 = math.rsqrt %318 : vector<1x32xf32>
    %320 = vector.broadcast %319 : vector<1x32xf32> to vector<8x32xf32>
    %321 = arith.mulf %316, %320 : vector<8x32xf32>
    %cst_168 = arith.constant 0.000000e+00 : f32
    %322 = vector.broadcast %cst_168 : f32 to vector<8x32xf32>
    %323 = arith.maximumf %321, %322 : vector<8x32xf32>
    %c0_169 = arith.constant 0 : index
    %c0_170 = arith.constant 0 : index
    %324 = vector.load %arg21[%c0_169, %c0_170] : memref<8x16xf32, #tpu.memory_space<vmem>>, vector<8x16xf32>
    %cst_171 = arith.constant dense<0.000000e+00> : vector<8x32xf32>
    %325 = tpu.matmul %324, %229, %cst_171 {dimension_numbers = #tpu.dot_dimension_numbers<[1], [0], [0], [1], [0, 0, 1, 1], [], []>} : vector<8x16xf32>, vector<16x32xf32>, vector<8x32xf32> -> vector<8x32xf32>
    %326 = arith.addf %323, %325 : vector<8x32xf32>
    %c0_172 = arith.constant 0 : index
    %c0_173 = arith.constant 0 : index
    %327 = vector.load %arg26[%c0_172, %c0_173] : memref<32x8xf32, #tpu.memory_space<vmem>>, vector<32x8xf32>
    %cst_174 = arith.constant dense<0.000000e+00> : vector<8x8xf32>
    %328 = tpu.matmul %326, %327, %cst_174 {dimension_numbers = #tpu.dot_dimension_numbers<[1], [0], [0], [1], [0, 0, 1, 1], [], []>} : vector<8x32xf32>, vector<32x8xf32>, vector<8x8xf32> -> vector<8x8xf32>
    %c0_175 = arith.constant 0 : index
    %c0_176 = arith.constant 0 : index
    %329 = vector.load %arg27[%c0_175, %c0_176] : memref<1x8xf32, #tpu.memory_space<vmem>>, vector<1x8xf32>
    %330 = vector.broadcast %329 : vector<1x8xf32> to vector<8x8xf32>
    %331 = arith.addf %328, %330 : vector<8x8xf32>
    %c0_177 = arith.constant 0 : index
    %c0_178 = arith.constant 0 : index
    %c0_179 = arith.constant 0 : index
    %332 = vector.load %arg28[%c0_177, %c0_178, %c0_179] : memref<1x8x8xf32, #tpu.memory_space<vmem>>, vector<1x8x8xf32>
    %333 = vector.shape_cast %332 : vector<1x8x8xf32> to vector<8x8xf32>
    %334 = vector.shape_cast %331 : vector<8x8xf32> to vector<1x8x8xf32>
    tpu.vector_store %arg28[%c0_177, %c0_178, %c0_179], %334 {strides = array<i32>} : memref<1x8x8xf32, #tpu.memory_space<vmem>>, vector<1x8x8xf32>,
    return
  }
  func.func @transform_0(%arg0: i32) -> (i32, i32, i32) {
    %c0_i32 = arith.constant 0 : i32
    %c0_i32_0 = arith.constant 0 : i32
    %c0_i32_1 = arith.constant 0 : i32
    return %arg0, %c0_i32, %c0_i32_0 : i32, i32, i32
  }
  func.func @transform_1(%arg0: i32) -> (i32, i32, i32) {
    %c0_i32 = arith.constant 0 : i32
    %c0_i32_0 = arith.constant 0 : i32
    %c0_i32_1 = arith.constant 0 : i32
    %c0_i32_2 = arith.constant 0 : i32
    return %c0_i32, %c0_i32_0, %c0_i32_1 : i32, i32, i32
  }
  func.func @transform_2(%arg0: i32) -> (i32, i32, i32) {
    %c0_i32 = arith.constant 0 : i32
    %c0_i32_0 = arith.constant 0 : i32
    %c0_i32_1 = arith.constant 0 : i32
    %c0_i32_2 = arith.constant 0 : i32
    return %c0_i32, %c0_i32_0, %c0_i32_1 : i32, i32, i32
  }
  func.func @transform_3(%arg0: i32) -> (i32, i32) {
    %c0_i32 = arith.constant 0 : i32
    %c0_i32_0 = arith.constant 0 : i32
    %c0_i32_1 = arith.constant 0 : i32
    return %c0_i32, %c0_i32_0 : i32, i32
  }
  func.func @transform_4(%arg0: i32) -> (i32, i32, i32) {
    %c0_i32 = arith.constant 0 : i32
    %c0_i32_0 = arith.constant 0 : i32
    %c0_i32_1 = arith.constant 0 : i32
    %c0_i32_2 = arith.constant 0 : i32
    return %c0_i32, %c0_i32_0, %c0_i32_1 : i32, i32, i32
  }
  func.func @transform_5(%arg0: i32) -> (i32, i32, i32) {
    %c0_i32 = arith.constant 0 : i32
    %c0_i32_0 = arith.constant 0 : i32
    %c0_i32_1 = arith.constant 0 : i32
    %c0_i32_2 = arith.constant 0 : i32
    return %c0_i32, %c0_i32_0, %c0_i32_1 : i32, i32, i32
  }
  func.func @transform_6(%arg0: i32) -> (i32, i32) {
    %c0_i32 = arith.constant 0 : i32
    %c0_i32_0 = arith.constant 0 : i32
    %c0_i32_1 = arith.constant 0 : i32
    return %c0_i32, %c0_i32_0 : i32, i32
  }
  func.func @transform_7(%arg0: i32) -> (i32, i32, i32) {
    %c0_i32 = arith.constant 0 : i32
    %c0_i32_0 = arith.constant 0 : i32
    %c0_i32_1 = arith.constant 0 : i32
    %c0_i32_2 = arith.constant 0 : i32
    return %c0_i32, %c0_i32_0, %c0_i32_1 : i32, i32, i32
  }
  func.func @transform_8(%arg0: i32) -> (i32, i32, i32) {
    %c0_i32 = arith.constant 0 : i32
    %c0_i32_0 = arith.constant 0 : i32
    %c0_i32_1 = arith.constant 0 : i32
    %c0_i32_2 = arith.constant 0 : i32
    return %c0_i32, %c0_i32_0, %c0_i32_1 : i32, i32, i32
  }
  func.func @transform_9(%arg0: i32) -> (i32, i32) {
    %c0_i32 = arith.constant 0 : i32
    %c0_i32_0 = arith.constant 0 : i32
    %c0_i32_1 = arith.constant 0 : i32
    return %c0_i32, %c0_i32_0 : i32, i32
  }
  func.func @transform_10(%arg0: i32) -> (i32, i32, i32) {
    %c0_i32 = arith.constant 0 : i32
    %c0_i32_0 = arith.constant 0 : i32
    %c0_i32_1 = arith.constant 0 : i32
    %c0_i32_2 = arith.constant 0 : i32
    return %c0_i32, %c0_i32_0, %c0_i32_1 : i32, i32, i32
  }
  func.func @transform_11(%arg0: i32) -> (i32, i32, i32) {
    %c0_i32 = arith.constant 0 : i32
    %c0_i32_0 = arith.constant 0 : i32
    %c0_i32_1 = arith.constant 0 : i32
    %c0_i32_2 = arith.constant 0 : i32
    return %c0_i32, %c0_i32_0, %c0_i32_1 : i32, i32, i32
  }
  func.func @transform_12(%arg0: i32) -> (i32, i32) {
    %c0_i32 = arith.constant 0 : i32
    %c0_i32_0 = arith.constant 0 : i32
    %c0_i32_1 = arith.constant 0 : i32
    return %c0_i32, %c0_i32_0 : i32, i32
  }
  func.func @transform_13(%arg0: i32) -> (i32, i32, i32) {
    %c0_i32 = arith.constant 0 : i32
    %c0_i32_0 = arith.constant 0 : i32
    %c0_i32_1 = arith.constant 0 : i32
    %c0_i32_2 = arith.constant 0 : i32
    return %c0_i32, %c0_i32_0, %c0_i32_1 : i32, i32, i32
  }
  func.func @transform_14(%arg0: i32) -> (i32, i32) {
    %c0_i32 = arith.constant 0 : i32
    %c0_i32_0 = arith.constant 0 : i32
    %c0_i32_1 = arith.constant 0 : i32
    return %c0_i32, %c0_i32_0 : i32, i32
  }
  func.func @transform_15(%arg0: i32) -> (i32, i32) {
    %c0_i32 = arith.constant 0 : i32
    %c0_i32_0 = arith.constant 0 : i32
    %c0_i32_1 = arith.constant 0 : i32
    return %c0_i32, %c0_i32_0 : i32, i32
  }
  func.func @transform_16(%arg0: i32) -> (i32, i32, i32) {
    %c0_i32 = arith.constant 0 : i32
    %c0_i32_0 = arith.constant 0 : i32
    %c0_i32_1 = arith.constant 0 : i32
    %c0_i32_2 = arith.constant 0 : i32
    return %c0_i32, %c0_i32_0, %c0_i32_1 : i32, i32, i32
  }
  func.func @transform_17(%arg0: i32) -> (i32, i32, i32) {
    %c0_i32 = arith.constant 0 : i32
    %c0_i32_0 = arith.constant 0 : i32
    %c0_i32_1 = arith.constant 0 : i32
    %c0_i32_2 = arith.constant 0 : i32
    return %c0_i32, %c0_i32_0, %c0_i32_1 : i32, i32, i32
  }
  func.func @transform_18(%arg0: i32) -> (i32, i32, i32) {
    %c0_i32 = arith.constant 0 : i32
    %c0_i32_0 = arith.constant 0 : i32
    %c0_i32_1 = arith.constant 0 : i32
    %c0_i32_2 = arith.constant 0 : i32
    return %c0_i32, %c0_i32_0, %c0_i32_1 : i32, i32, i32
  }
  func.func @transform_19(%arg0: i32) -> (i32, i32, i32) {
    %c0_i32 = arith.constant 0 : i32
    %c0_i32_0 = arith.constant 0 : i32
    %c0_i32_1 = arith.constant 0 : i32
    %c0_i32_2 = arith.constant 0 : i32
    return %c0_i32, %c0_i32_0, %c0_i32_1 : i32, i32, i32
  }
  func.func @transform_20(%arg0: i32) -> (i32, i32) {
    %c0_i32 = arith.constant 0 : i32
    %c0_i32_0 = arith.constant 0 : i32
    %c0_i32_1 = arith.constant 0 : i32
    return %c0_i32, %c0_i32_0 : i32, i32
  }
  func.func @transform_21(%arg0: i32) -> (i32, i32, i32, i32) {
    %c0_i32 = arith.constant 0 : i32
    %c0_i32_0 = arith.constant 0 : i32
    %c0_i32_1 = arith.constant 0 : i32
    %c0_i32_2 = arith.constant 0 : i32
    %c0_i32_3 = arith.constant 0 : i32
    return %c0_i32, %c0_i32_0, %c0_i32_1, %c0_i32_2 : i32, i32, i32, i32
  }
  func.func @transform_22(%arg0: i32) -> (i32, i32, i32) {
    %c0_i32 = arith.constant 0 : i32
    %c0_i32_0 = arith.constant 0 : i32
    %c0_i32_1 = arith.constant 0 : i32
    %c0_i32_2 = arith.constant 0 : i32
    return %c0_i32, %c0_i32_0, %c0_i32_1 : i32, i32, i32
  }
  func.func @transform_23(%arg0: i32) -> (i32, i32, i32, i32) {
    %c0_i32 = arith.constant 0 : i32
    %c0_i32_0 = arith.constant 0 : i32
    %c0_i32_1 = arith.constant 0 : i32
    %c0_i32_2 = arith.constant 0 : i32
    %c0_i32_3 = arith.constant 0 : i32
    return %c0_i32, %c0_i32_0, %c0_i32_1, %c0_i32_2 : i32, i32, i32, i32
  }
  func.func @transform_24(%arg0: i32) -> (i32, i32, i32) {
    %c0_i32 = arith.constant 0 : i32
    %c0_i32_0 = arith.constant 0 : i32
    %c0_i32_1 = arith.constant 0 : i32
    %c0_i32_2 = arith.constant 0 : i32
    return %c0_i32, %c0_i32_0, %c0_i32_1 : i32, i32, i32
  }
  func.func @transform_25(%arg0: i32) -> (i32, i32) {
    %c0_i32 = arith.constant 0 : i32
    %c0_i32_0 = arith.constant 0 : i32
    %c0_i32_1 = arith.constant 0 : i32
    return %c0_i32, %c0_i32_0 : i32, i32
  }
  func.func @transform_26(%arg0: i32) -> (i32, i32) {
    %c0_i32 = arith.constant 0 : i32
    %c0_i32_0 = arith.constant 0 : i32
    %c0_i32_1 = arith.constant 0 : i32
    return %c0_i32, %c0_i32_0 : i32, i32
  }
  func.func @transform_27(%arg0: i32) -> (i32, i32, i32) {
    %c0_i32 = arith.constant 0 : i32
    %c0_i32_0 = arith.constant 0 : i32
    %c0_i32_1 = arith.constant 0 : i32
    return %arg0, %c0_i32, %c0_i32_0 : i32, i32, i32
  }
}

</mosaic_0001>

<bundles_post_ra>
// kernel: content_encoder_forward.1
= control target key start
LH: loop header
LB: loop body
LE: loop exit
PB: predicated region body
PF: predicated region fallthrough
CT: control target
= control target key end

     0   :  { %s8469_s0 = inlined_call_operand.vmem [shape: f32[2,16,4], index: 0, kind: input, shape index: {}]   ;;  %s8470_s1 = inlined_call_operand.hbm [shape: f32[1,16,16], index: 1, kind: input, shape index: {}]   ;;  %s8471_s2 = inlined_call_operand.hbm [shape: f32[1,4,8], index: 2, kind: input, shape index: {}]   ;;  %s8472_s3 = inlined_call_operand.hbm [shape: f32[1,8], index: 3, kind: input, shape index: {}]   ;;  %s8473_s4 = inlined_call_operand.vmem [shape: f32[2,16,16], index: 4, kind: input, shape index: {}]   ;;  %s8474_s5 = inlined_call_operand.hbm [shape: f32[2,4,8], index: 5, kind: input, shape index: {}]   ;;  %s8475_s6 = inlined_call_operand.hbm [shape: f32[1,8], index: 6, kind: input, shape index: {}]   ;;  %s8476_s7 = inlined_call_operand.vmem [shape: f32[3,16,16], index: 7, kind: input, shape index: {}, may-alias: {7,16,17,18}]   ;;  %s8477_s8 = inlined_call_operand.hbm [shape: f32[3,4,8], index: 8, kind: input, shape index: {}]   ;;  %s8478_s9 = inlined_call_operand.hbm [shape: f32[1,8], index: 9, kind: input, shape index: {}]   ;;  %s8479_s10 = inlined_call_operand.vmem [shape: f32[4,16,16], index: 10, kind: input, shape index: {}]   ;;  %s8480_s11 = inlined_call_operand.hbm [shape: f32[4,4,8], index: 11, kind: input, shape index: {}]   ;;  %s8481_s12 = inlined_call_operand.hbm [shape: f32[1,8], index: 12, kind: input, shape index: {}]   ;;  %s8482_s13 = inlined_call_operand.hbm [shape: f32[4,8,32], index: 13, kind: input, shape index: {}]   ;;  %s8483_s14 = inlined_call_operand.hbm [shape: f32[4,32], index: 14, kind: input, shape index: {}]   ;;  %s8484_s15 = inlined_call_operand.hbm [shape: f32[1,32], index: 15, kind: input, shape index: {}]   ;;  %s8485_s16 = inlined_call_operand.vmem [shape: f32[3,16,16], index: 16, kind: input, shape index: {}, may-alias: {7,16,17,18}]   ;;  %s8486_s17 = inlined_call_operand.vmem [shape: f32[3,16,16], index: 17, kind: input, shape index: {}, may-alias: {7,16,17,18}]   ;;  %s8487_s18 = inlined_call_operand.vmem [shape: f32[3,16,16], index: 18, kind: input, shape index: {}, may-alias: {7,16,17,18}]   ;;  %s8488_s19 = inlined_call_operand.hbm [shape: f32[3,8,16], index: 19, kind: input, shape index: {}]   ;;  %s8489_s20 = inlined_call_operand.vmem [shape: f32[8,16], index: 20, kind: input, shape index: {}]   ;;  %s8490_s21 = inlined_call_operand.hbm [shape: f32[2,3,32,32], index: 21, kind: input, shape index: {}]   ;;  %s8491_s22 = inlined_call_operand.hbm [shape: f32[2,1,32], index: 22, kind: input, shape index: {}]   ;;  %s8492_s23 = inlined_call_operand.hbm [shape: f32[2,3,32,32], index: 23, kind: input, shape index: {}]   ;;  %s8493_s24 = inlined_call_operand.hbm [shape: f32[2,1,32], index: 24, kind: input, shape index: {}]   ;;  %s8494_s25 = inlined_call_operand.vmem [shape: f32[32,8], index: 25, kind: input, shape index: {}]   ;;  %s8495_s26 = inlined_call_operand.hbm [shape: f32[1,8], index: 26, kind: input, shape index: {}]   ;;  %s8496_s27 = inlined_call_operand.vmem [shape: f32[2,8,8], index: 27, kind: output, shape index: {}]  }
   0x1   :  { %8523 = sst [smem:[#allocation41_spill]] %s8469_s0 }
   0x2   :  { %8524 = sst [smem:[#allocation42_spill]] %s8470_s1 }
   0x3   :  { %8525 = sst [smem:[#allocation43_spill]] %s8471_s2 }
   0x4   :  { %8526 = sst [smem:[#allocation44_spill]] %s8472_s3 }
   0x5   :  { %8527 = sst [smem:[#allocation45_spill]] %s8473_s4 }
   0x6   :  { %8528 = sst [smem:[#allocation46_spill]] %s8474_s5 }
   0x7   :  { %8529 = sst [smem:[#allocation47_spill]] %s8475_s6 }
   0x8   :  { %8530 = sst [smem:[#allocation48_spill]] %s8476_s7 }
   0x9   :  { %8531 = sst [smem:[#allocation49_spill]] %s8477_s8 }
   0xa   :  { %8532 = sst [smem:[#allocation50_spill]] %s8478_s9 }
   0xb   :  { %8533 = sst [smem:[#allocation51_spill]] %s8479_s10 }
   0xc   :  { %8534 = sst [smem:[#allocation52_spill]] %s8480_s11 }
   0xd   :  { %8535 = sst [smem:[#allocation53_spill]] %s8481_s12 }
   0xe   :  { %8536 = sst [smem:[#allocation54_spill]] %s8486_s17 }
   0xf   :  { %8537 = sst [smem:[#allocation55_spill]] %s8487_s18 }
  0x10   :  { %8538 = sst [smem:[#allocation56_spill]] %s8489_s20 }
  0x11   :  { %8539 = sst [smem:[#allocation57_spill]] %s8494_s25 }
  0x12   :  { %8540 = sst [smem:[#allocation58_spill]] %s8496_s27 }
  0x13   :  { %32 = vsyncpa [#allocation3], 0 }
  0x14   :  { %33 = vsyncpa [#allocation5], 0 }
  0x15   :  { %34 = vsyncpa [#allocation8], 0 }
  0x16   :  { %35 = vsyncpa [#allocation11], 0 }
  0x17   :  { %36 = vsyncpa [#allocation14], 0 }
  0x18   :  { %37 = vsyncpa [#allocation17], 0 }
  0x19   :  { %38 = vsyncpa [#allocation20], 0 }
  0x1a   :  { %39 = vsyncpa [#allocation23], 0 }
  0x1b   :  { %40 = vsyncpa [#allocation26], 0 }
  0x1c   :  { %41 = vsyncpa [#allocation29], 0  ;;  %s7674_s7 = smov 0  }
  0x1d LB: > { %8541 = sst [smem:[#allocation40_spill]] %s7505_s7  ;;  %s7507_s4 = smov [#allocation4]   ;;  %s7505_s7 = sphi %s7674_s7, %s47_s7  }
  0x1e   : > { %s676_s8 = sshll.u32 %s7507_s4, 4  ;;  %s7680_s30 = sadd.s32 4294967295, %s7505_s7   ;;  %s7685_s8 = int_to_ptr.vmem [resolvable:$true] %s676_s8 }
  0x1f   : > { %p5783_p0 = scmp.ge.s32.totalorder %s7505_s7, 1  ;;  %p650_p1 = scmp.lt.s32.totalorder %s7505_s7, 3 }
  0x20   : > { %p8513_p2 = scmp.eq.s32.totalorder %s7680_s30, 0  ;;  %s7508_s5 = smov [#allocation7]  }
  0x21   : > { %p7687_p3 = pnand %p5783_p0, %p650_p1  ;;  %s700_s28 = sshll.u32 %s7508_s5, 4  ;;  %s7693_s28 = int_to_ptr.vmem [resolvable:$true] %s700_s28 }
  0x22   : > { %s7509_s10 = smov [#allocation10]   ;;  %s7510_s1 = smov [#allocation13]  }
  0x23   : > { %s8542_s9 = scalar_select %p7687_p3, 1, 0 }
  0x24   : > { %p6819_p4 = pneg %p7687_p3  ;;  %s727_s29 = sshll.u32 %s7509_s10, 4  ;;  %s7701_s29 = int_to_ptr.vmem [resolvable:$true] %s727_s29 }
  0x25   : > { %s7703_s6 = sshll.u32 %s7510_s1, 4  ;;  %s8544_s3 = sld [smem:[#allocation43_spill]]  ;;  %s755_s6 = int_to_ptr.vmem [resolvable:$true] %s7703_s6 }
  0x26   : > { %p7697_p5 = pnand %p8513_p2, %p6819_p4 }
  0x28   : > { %p7713_p7 = pneg %p7697_p5 }
  0x2b   : > { %s6955_s4 = scalar_lea.hbm %s8544_s3, 64 }
  0x2c   : > { %p6956_p6 = scmp.ne.s32.totalorder %s8544_s3, %s6955_s4  ;;  %p6962_p10 = scmp.lt.u32.totalorder %s6955_s4, %s8544_s3 }
  0x2e   : > { %p6958_p8 = pnand %p7713_p7, %p6956_p6 }
  0x30   : > { %p6959_p9 = pneg %p6958_p8 }
  0x32   : > { %p6964_p11 = pnand %p6962_p10, %p6959_p9 }
  0x34   : > { %6967 = shalt.err (!%p6964_p11)
}
  0x35   : > { %s6968_s7 = scalar_lea.vmem %s7685_s8, 64  ;;  %p6976_p1 = scmp.lt.s32.totalorder %s7685_s8, %s7685_s8 }
  0x36   : > { %p6969_p12 = scmp.ne.s32.totalorder %s7685_s8, %s6968_s7  ;;  %p6977_p4 = scmp.lt.s32.totalorder %s6968_s7, %s6968_s7 }
  0x38   : > { %p6971_p13 = pnand %p6969_p12, %p7713_p7  ;;  %p6978_p6 = por %p6977_p4, %p6976_p1 }
  0x3a   : > { %p6972_p0 = pneg %p6971_p13 }
  0x3c   : > { %p6979_p8 = pnand %p6978_p6, %p6972_p0 }
  0x3e   : > { %6982 = shalt.err (!%p6979_p8)
}
  0x3f   : > { %6825 = dma.hbm_to_vmem [thread:$0]  (!%p7697_p5), %s8544_s3, 64, %s7685_s8, [#allocation5]  }
  0x40   : > { %s8546_s10 = sld [smem:[#allocation46_spill]] }
  0x46   : > { %s6983_s1 = scalar_lea.hbm %s8546_s10, 128 }
  0x47   : > { %p6984_p9 = scmp.ne.s32.totalorder %s8546_s10, %s6983_s1  ;;  %p6990_p12 = scmp.lt.u32.totalorder %s6983_s1, %s8546_s10 }
  0x49   : > { %p6986_p10 = pnand %p6984_p9, %p7713_p7 }
  0x4b   : > { %p6987_p11 = pneg %p6986_p10 }
  0x4d   : > { %p6992_p13 = pnand %p6990_p12, %p6987_p11 }
  0x4f   : > { %6995 = shalt.err (!%p6992_p13)
}
  0x50   : > { %s6996_s8 = scalar_lea.vmem %s7693_s28, 128  ;;  %p7004_p6 = scmp.lt.s32.totalorder %s7693_s28, %s7693_s28 }
  0x51   : > { %p6997_p0 = scmp.ne.s32.totalorder %s7693_s28, %s6996_s8  ;;  %p7005_p8 = scmp.lt.s32.totalorder %s6996_s8, %s6996_s8 }
  0x53   : > { %p6999_p1 = pnand %p6997_p0, %p7713_p7  ;;  %p7006_p9 = por %p7005_p8, %p7004_p6 }
  0x55   : > { %p7000_p4 = pneg %p6999_p1 }
  0x57   : > { %p7007_p10 = pnand %p7006_p9, %p7000_p4 }
  0x59   : > { %7010 = shalt.err (!%p7007_p10)
}
  0x5a   : > { %s7511_s20 = smov 64   ;;  %s7512_s18 = smov 4  }
  0x5b   : > { %6831 = dma.hbm_to_vmem [thread:$0]  (!%p7697_p5), %s8546_s10, 128, %s7693_s28, [#allocation8], %s7511_s20, %s7511_s20, %s7512_s18  }
  0x5c   : > { %s8547_s5 = sld [smem:[#allocation49_spill]] }
  0x62   : > { %s7011_s1 = scalar_lea.hbm %s8547_s5, 192 }
  0x63   : > { %p7012_p11 = scmp.ne.s32.totalorder %s8547_s5, %s7011_s1  ;;  %p7018_p0 = scmp.lt.u32.totalorder %s7011_s1, %s8547_s5 }
  0x65   : > { %p7014_p12 = pnand %p7012_p11, %p7713_p7 }
  0x67   : > { %p7015_p13 = pneg %p7014_p12 }
  0x69   : > { %p7020_p1 = pnand %p7018_p0, %p7015_p13 }
  0x6b   : > { %7023 = shalt.err (!%p7020_p1)
}
  0x6c   : > { %s7024_s28 = scalar_lea.vmem %s7701_s29, 192  ;;  %p7032_p9 = scmp.lt.s32.totalorder %s7701_s29, %s7701_s29 }
  0x6d   : > { %p7025_p4 = scmp.ne.s32.totalorder %s7701_s29, %s7024_s28  ;;  %p7033_p10 = scmp.lt.s32.totalorder %s7024_s28, %s7024_s28 }
  0x6f   : > { %p7027_p6 = pnand %p7025_p4, %p7713_p7  ;;  %p7034_p11 = por %p7033_p10, %p7032_p9 }
  0x71   : > { %p7028_p8 = pneg %p7027_p6 }
  0x73   : > { %p7035_p12 = pnand %p7034_p11, %p7028_p8 }
  0x75   : > { %7038 = shalt.err (!%p7035_p12)
}
  0x76   : > { %6837 = dma.hbm_to_vmem [thread:$0]  (!%p7697_p5), %s8547_s5, 192, %s7701_s29, [#allocation11], %s7511_s20, %s7511_s20, %s7512_s18  }
  0x77   : > { %s8548_s2 = sld [smem:[#allocation52_spill]] }
  0x7d   : > { %s7039_s4 = scalar_lea.hbm %s8548_s2, 256 }
  0x7e   : > { %p7040_p13 = scmp.ne.s32.totalorder %s8548_s2, %s7039_s4  ;;  %p7046_p4 = scmp.lt.u32.totalorder %s7039_s4, %s8548_s2 }
  0x80   : > { %p7042_p0 = pnand %p7040_p13, %p7713_p7 }
  0x82   : > { %p7043_p1 = pneg %p7042_p0 }
  0x84   : > { %p7048_p6 = pnand %p7046_p4, %p7043_p1 }
  0x86   : > { %7051 = shalt.err (!%p7048_p6)
}
  0x87   : > { %s7052_s17 = scalar_lea.vmem %s755_s6, 256  ;;  %p7060_p11 = scmp.lt.s32.totalorder %s755_s6, %s755_s6 }
  0x88   : > { %p7053_p8 = scmp.ne.s32.totalorder %s755_s6, %s7052_s17  ;;  %p7061_p12 = scmp.lt.s32.totalorder %s7052_s17, %s7052_s17 }
  0x8a   : > { %p7055_p9 = pnand %p7053_p8, %p7713_p7  ;;  %p7062_p2 = por %p7061_p12, %p7060_p11 }
  0x8c   : > { %p7056_p10 = pneg %p7055_p9 }
  0x8e   : > { %p7063_p3 = pnand %p7062_p2, %p7056_p10 }
  0x90   : > { %7066 = shalt.err (!%p7063_p3)
}
  0x91   : > { %6843 = dma.hbm_to_vmem [thread:$0]  (!%p7697_p5), %s8548_s2, 256, %s755_s6, [#allocation14], %s7511_s20, %s7511_s20, %s7512_s18  }
  0x92   : > { %s7513_s25 = smov [#allocation16]   ;;  %s7514_s4 = smov [#allocation19]  }
  0x93   : > { %s778_s11 = sshll.u32 %s7513_s25, 4  ;;  %s803_s1 = sshll.u32 %s7514_s4, 4  ;;  %s779_s11 = int_to_ptr.vmem [resolvable:$true] %s778_s11  ;;  %s804_s1 = int_to_ptr.vmem [resolvable:$true] %s803_s1 }
  0x94   : > { %s7067_s28 = scalar_lea.hbm %s8482_s13, 512 }
  0x95   : > { %p7068_p2 = scmp.ne.s32.totalorder %s8482_s13, %s7067_s28  ;;  %p7074_p0 = scmp.lt.u32.totalorder %s7067_s28, %s8482_s13 }
  0x97   : > { %p7070_p3 = pnand %p7068_p2, %p7713_p7 }
  0x99   : > { %p7071_p13 = pneg %p7070_p3 }
  0x9b   : > { %p7076_p1 = pnand %p7074_p0, %p7071_p13 }
  0x9d   : > { %7079 = shalt.err (!%p7076_p1)
}
  0x9e   : > { %s7080_s6 = scalar_lea.vmem %s779_s11, 512  ;;  %p7088_p9 = scmp.lt.s32.totalorder %s779_s11, %s779_s11 }
  0x9f   : > { %p7081_p4 = scmp.ne.s32.totalorder %s779_s11, %s7080_s6  ;;  %p7089_p10 = scmp.lt.s32.totalorder %s7080_s6, %s7080_s6 }
  0xa1   : > { %p7083_p6 = pnand %p7081_p4, %p7713_p7  ;;  %p7090_p11 = por %p7089_p10, %p7088_p9 }
  0xa3   : > { %p7084_p8 = pneg %p7083_p6 }
  0xa5   : > { %p7091_p12 = pnand %p7090_p11, %p7084_p8 }
  0xa7   : > { %7094 = shalt.err (!%p7091_p12)
}
  0xa8   : > { %s8518_s20 = smov 128   ;;  %s8519_s18 = smov 8  }
  0xa9   : > { %6849 = dma.hbm_to_vmem [thread:$0]  (!%p7697_p5), %s8482_s13, 512, %s779_s11, [#allocation17], %s8518_s20, %s8518_s20, %s8519_s18  }
  0xaa   : > { %s7095_s4 = scalar_lea.hbm %s8484_s15, 16 }
  0xab   : > { %p7096_p2 = scmp.ne.s32.totalorder %s8484_s15, %s7095_s4  ;;  %p7102_p0 = scmp.lt.u32.totalorder %s7095_s4, %s8484_s15 }
  0xad   : > { %p7098_p3 = pnand %p7096_p2, %p7713_p7 }
  0xaf   : > { %p7099_p13 = pneg %p7098_p3 }
  0xb1   : > { %p7104_p1 = pnand %p7102_p0, %p7099_p13 }
  0xb3   : > { %7107 = shalt.err (!%p7104_p1)
}
  0xb4   : > { %s7108_s29 = scalar_lea.vmem %s804_s1, 16  ;;  %s7115_s11 = scalar_lea.vmem %s804_s1, 32 }
  0xb5   : > { %p7109_p4 = scmp.ne.s32.totalorder %s804_s1, %s7108_s29  ;;  %p7116_p9 = scmp.lt.s32.totalorder %s804_s1, %s804_s1 }
  0xb6   : > { %p7117_p10 = scmp.lt.s32.totalorder %s7115_s11, %s7108_s29 }
  0xb7   : > { %p7111_p6 = pnand %p7109_p4, %p7713_p7 }
  0xb8   : > { %p7118_p11 = por %p7117_p10, %p7116_p9 }
  0xb9   : > { %p7112_p8 = pneg %p7111_p6 }
  0xbb   : > { %p7119_p12 = pnand %p7118_p11, %p7112_p8 }
  0xbd   : > { %7122 = shalt.err (!%p7119_p12)
}
  0xbe   : > { %6855 = dma.hbm_to_vmem [thread:$0]  (!%p7697_p5), %s8484_s15, 16, %s804_s1, [#allocation20]  }
  0xbf   : > { %s7517_s5 = smov [#allocation22]   ;;  %s7518_s25 = smov [#allocation25]  }
  0xc0   : > { %s838_s3 = sshll.u32 %s7517_s5, 4  ;;  %s864_s4 = sshll.u32 %s7518_s25, 4  ;;  %s839_s3 = int_to_ptr.vmem [resolvable:$true] %s838_s3  ;;  %s865_s4 = int_to_ptr.vmem [resolvable:$true] %s864_s4 }
  0xc1   : > { %s7123_s28 = scalar_lea.hbm %s8490_s21, 3072 }
  0xc2   : > { %p7124_p2 = scmp.ne.s32.totalorder %s8490_s21, %s7123_s28  ;;  %p7130_p0 = scmp.lt.u32.totalorder %s7123_s28, %s8490_s21 }
  0xc4   : > { %p7126_p3 = pnand %p7124_p2, %p7713_p7 }
  0xc6   : > { %p7127_p13 = pneg %p7126_p3 }
  0xc8   : > { %p7132_p1 = pnand %p7130_p0, %p7127_p13 }
  0xca   : > { %7135 = shalt.err (!%p7132_p1)
}
  0xcb   : > { %s7136_s1 = scalar_lea.vmem %s839_s3, 3072  ;;  %p7144_p9 = scmp.lt.s32.totalorder %s839_s3, %s839_s3 }
  0xcc   : > { %p7137_p4 = scmp.ne.s32.totalorder %s839_s3, %s7136_s1  ;;  %p7145_p10 = scmp.lt.s32.totalorder %s7136_s1, %s7136_s1 }
  0xce   : > { %p7139_p6 = pnand %p7137_p4, %p7713_p7  ;;  %p7146_p11 = por %p7145_p10, %p7144_p9 }
  0xd0   : > { %p7140_p8 = pneg %p7139_p6 }
  0xd2   : > { %p7147_p12 = pnand %p7146_p11, %p7140_p8 }
  0xd4   : > { %7150 = shalt.err (!%p7147_p12)
}
  0xd5   : > { %6861 = dma.hbm_to_vmem [thread:$0]  (!%p7697_p5), %s8490_s21, 3072, %s839_s3, [#allocation23], %s8518_s20, %s8518_s20, %s8519_s18  }
  0xd6   : > { %s7151_s8 = scalar_lea.hbm %s8492_s23, 3072 }
  0xd7   : > { %p7152_p2 = scmp.ne.s32.totalorder %s8492_s23, %s7151_s8  ;;  %p7158_p0 = scmp.lt.u32.totalorder %s7151_s8, %s8492_s23 }
  0xd9   : > { %p7154_p3 = pnand %p7152_p2, %p7713_p7 }
  0xdb   : > { %p7155_p13 = pneg %p7154_p3 }
  0xdd   : > { %p7160_p1 = pnand %p7158_p0, %p7155_p13 }
  0xdf   : > { %7163 = shalt.err (!%p7160_p1)
}
  0xe0   : > { %s7164_s6 = scalar_lea.vmem %s865_s4, 3072  ;;  %p7172_p9 = scmp.lt.s32.totalorder %s865_s4, %s865_s4 }
  0xe1   : > { %p7165_p4 = scmp.ne.s32.totalorder %s865_s4, %s7164_s6  ;;  %p7173_p10 = scmp.lt.s32.totalorder %s7164_s6, %s7164_s6 }
  0xe3   : > { %p7167_p6 = pnand %p7165_p4, %p7713_p7  ;;  %p7174_p11 = por %p7173_p10, %p7172_p9 }
  0xe5   : > { %p7168_p8 = pneg %p7167_p6 }
  0xe7   : > { %p7175_p12 = pnand %p7174_p11, %p7168_p8 }
  0xe9   : > { %7178 = shalt.err (!%p7175_p12)
}
  0xea   : > { %6867 = dma.hbm_to_vmem [thread:$0]  (!%p7697_p5), %s8492_s23, 3072, %s865_s4, [#allocation26], %s8518_s20, %s8518_s20, %s8519_s18  }
  0xeb   : > { %s7519_s10 = smov [#allocation2]   ;;  %s7520_s25 = smov [#allocation6]  }
  0xec   : > { %s662_s5 = sshll.u32 %s7519_s10, 4  ;;  %s687_s7 = sshll.u32 %s7520_s25, 4  ;;  %s663_s5 = int_to_ptr.vmem [resolvable:$true] %s662_s5  ;;  %s688_s7 = int_to_ptr.vmem [resolvable:$true] %s687_s7 }
  0xed   : > { %s8549_s17 = sld [smem:[#allocation42_spill]] }
  0xf3   : > { %s7179_s29 = scalar_lea.hbm %s8549_s17, 256 }
  0xf4   : > { %p7180_p2 = scmp.ne.s32.totalorder %s8549_s17, %s7179_s29  ;;  %p7186_p0 = scmp.lt.u32.totalorder %s7179_s29, %s8549_s17 }
  0xf6   : > { %p7182_p3 = pnand %p7180_p2, %p7713_p7 }
  0xf8   : > { %p7183_p13 = pneg %p7182_p3 }
  0xfa   : > { %p7188_p1 = pnand %p7186_p0, %p7183_p13 }
  0xfc   : > { %7191 = shalt.err (!%p7188_p1)
}
  0xfd   : > { %s7192_s4 = scalar_lea.vmem %s663_s5, 256  ;;  %p7200_p9 = scmp.lt.s32.totalorder %s663_s5, %s663_s5 }
  0xfe   : > { %p7193_p4 = scmp.ne.s32.totalorder %s663_s5, %s7192_s4  ;;  %p7201_p10 = scmp.lt.s32.totalorder %s7192_s4, %s7192_s4 }
 0x100   : > { %p7195_p6 = pnand %p7193_p4, %p7713_p7  ;;  %p7202_p11 = por %p7201_p10, %p7200_p9 }
 0x102   : > { %p7196_p8 = pneg %p7195_p6 }
 0x104   : > { %p7203_p12 = pnand %p7202_p11, %p7196_p8 }
 0x106   : > { %7206 = shalt.err (!%p7203_p12)
}
 0x107   : > { %6822 = dma.hbm_to_vmem [thread:$0]  (!%p7697_p5), %s8549_s17, 256, %s663_s5, [#allocation3], %s8518_s20, %s8518_s20, %s8519_s18  }
 0x108   : > { %s8550_s8 = sld [smem:[#allocation44_spill]] }
 0x10e   : > { %s7207_s28 = scalar_lea.hbm %s8550_s8, 16 }
 0x10f   : > { %p7208_p2 = scmp.ne.s32.totalorder %s8550_s8, %s7207_s28  ;;  %p7214_p0 = scmp.lt.u32.totalorder %s7207_s28, %s8550_s8 }
 0x111   : > { %p7210_p3 = pnand %p7208_p2, %p7713_p7 }
 0x113   : > { %p7211_p13 = pneg %p7210_p3 }
 0x115   : > { %p7216_p1 = pnand %p7214_p0, %p7211_p13 }
 0x117   : > { %7219 = shalt.err (!%p7216_p1)
}
 0x118   : > { %s7220_s4 = scalar_lea.vmem %s688_s7, 16  ;;  %s7227_s5 = scalar_lea.vmem %s688_s7, 32 }
 0x119   : > { %p7221_p4 = scmp.ne.s32.totalorder %s688_s7, %s7220_s4  ;;  %p7228_p9 = scmp.lt.s32.totalorder %s688_s7, %s688_s7 }
 0x11a   : > { %p7229_p10 = scmp.lt.s32.totalorder %s7227_s5, %s7220_s4 }
 0x11b   : > { %p7223_p6 = pnand %p7221_p4, %p7713_p7 }
 0x11c   : > { %p7230_p11 = por %p7229_p10, %p7228_p9 }
 0x11d   : > { %p7224_p8 = pneg %p7223_p6 }
 0x11f   : > { %p7231_p12 = pnand %p7230_p11, %p7224_p8 }
 0x121   : > { %7234 = shalt.err (!%p7231_p12)
}
 0x122   : > { %6828 = dma.hbm_to_vmem [thread:$0]  (!%p7697_p5), %s8550_s8, 16, %s688_s7, [#allocation5]  }
 0x123   : > { %s7521_s10 = smov [#allocation9]   ;;  %s7522_s28 = smov [#allocation12]  }
 0x124   : > { %s714_s25 = sshll.u32 %s7521_s10, 4  ;;  %s741_s29 = sshll.u32 %s7522_s28, 4  ;;  %s715_s25 = int_to_ptr.vmem [resolvable:$true] %s714_s25  ;;  %s742_s29 = int_to_ptr.vmem [resolvable:$true] %s741_s29 }
 0x125   : > { %s8551_s3 = sld [smem:[#allocation47_spill]] }
 0x12b   : > { %s7235_s20 = scalar_lea.hbm %s8551_s3, 16 }
 0x12c   : > { %p7236_p2 = scmp.ne.s32.totalorder %s8551_s3, %s7235_s20  ;;  %p7242_p0 = scmp.lt.u32.totalorder %s7235_s20, %s8551_s3 }
 0x12e   : > { %p7238_p3 = pnand %p7236_p2, %p7713_p7 }
 0x130   : > { %p7239_p13 = pneg %p7238_p3 }
 0x132   : > { %p7244_p1 = pnand %p7242_p0, %p7239_p13 }
 0x134   : > { %7247 = shalt.err (!%p7244_p1)
}
 0x135   : > { %s7248_s7 = scalar_lea.vmem %s715_s25, 16  ;;  %s7255_s1 = scalar_lea.vmem %s715_s25, 32 }
 0x136   : > { %p7249_p4 = scmp.ne.s32.totalorder %s715_s25, %s7248_s7  ;;  %p7256_p9 = scmp.lt.s32.totalorder %s715_s25, %s715_s25 }
 0x137   : > { %p7257_p10 = scmp.lt.s32.totalorder %s7255_s1, %s7248_s7 }
 0x138   : > { %p7251_p6 = pnand %p7249_p4, %p7713_p7 }
 0x139   : > { %p7258_p11 = por %p7257_p10, %p7256_p9 }
 0x13a   : > { %p7252_p8 = pneg %p7251_p6 }
 0x13c   : > { %p7259_p12 = pnand %p7258_p11, %p7252_p8 }
 0x13e   : > { %7262 = shalt.err (!%p7259_p12)
}
 0x13f   : > { %6834 = dma.hbm_to_vmem [thread:$0]  (!%p7697_p5), %s8551_s3, 16, %s715_s25, [#allocation8]  }
 0x140   : > { %s8552_s11 = sld [smem:[#allocation50_spill]] }
 0x146   : > { %s7263_s6 = scalar_lea.hbm %s8552_s11, 16 }
 0x147   : > { %p7264_p2 = scmp.ne.s32.totalorder %s8552_s11, %s7263_s6  ;;  %p7270_p0 = scmp.lt.u32.totalorder %s7263_s6, %s8552_s11 }
 0x149   : > { %p7266_p3 = pnand %p7264_p2, %p7713_p7 }
 0x14b   : > { %p7267_p13 = pneg %p7266_p3 }
 0x14d   : > { %p7272_p1 = pnand %p7270_p0, %p7267_p13 }
 0x14f   : > { %7275 = shalt.err (!%p7272_p1)
}
 0x150   : > { %s7276_s1 = scalar_lea.vmem %s742_s29, 16  ;;  %s7283_s25 = scalar_lea.vmem %s742_s29, 32 }
 0x151   : > { %p7277_p4 = scmp.ne.s32.totalorder %s742_s29, %s7276_s1  ;;  %p7284_p9 = scmp.lt.s32.totalorder %s742_s29, %s742_s29 }
 0x152   : > { %p7285_p10 = scmp.lt.s32.totalorder %s7283_s25, %s7276_s1 }
 0x153   : > { %p7279_p6 = pnand %p7277_p4, %p7713_p7 }
 0x154   : > { %p7286_p11 = por %p7285_p10, %p7284_p9 }
 0x155   : > { %p7280_p8 = pneg %p7279_p6 }
 0x157   : > { %p7287_p12 = pnand %p7286_p11, %p7280_p8 }
 0x159   : > { %7290 = shalt.err (!%p7287_p12)
}
 0x15a   : > { %6840 = dma.hbm_to_vmem [thread:$0]  (!%p7697_p5), %s8552_s11, 16, %s742_s29, [#allocation11]  }
 0x15b   : > { %s7523_s20 = smov [#allocation15]   ;;  %s7524_s6 = smov [#allocation18]  }
 0x15c   : > { %s768_s18 = sshll.u32 %s7523_s20, 4  ;;  %s792_s4 = sshll.u32 %s7524_s6, 4  ;;  %s769_s18 = int_to_ptr.vmem [resolvable:$true] %s768_s18  ;;  %s793_s4 = int_to_ptr.vmem [resolvable:$true] %s792_s4 }
 0x15d   : > { %s8553_s12 = sld [smem:[#allocation53_spill]] }
 0x163   : > { %s7291_s7 = scalar_lea.hbm %s8553_s12, 16 }
 0x164   : > { %p7292_p2 = scmp.ne.s32.totalorder %s8553_s12, %s7291_s7  ;;  %p7298_p0 = scmp.lt.u32.totalorder %s7291_s7, %s8553_s12 }
 0x166   : > { %p7294_p3 = pnand %p7292_p2, %p7713_p7 }
 0x168   : > { %p7295_p13 = pneg %p7294_p3 }
 0x16a   : > { %p7300_p1 = pnand %p7298_p0, %p7295_p13 }
 0x16c   : > { %7303 = shalt.err (!%p7300_p1)
}
 0x16d   : > { %s7304_s29 = scalar_lea.vmem %s769_s18, 16  ;;  %s7311_s28 = scalar_lea.vmem %s769_s18, 32 }
 0x16e   : > { %p7305_p4 = scmp.ne.s32.totalorder %s769_s18, %s7304_s29  ;;  %p7312_p9 = scmp.lt.s32.totalorder %s769_s18, %s769_s18 }
 0x16f   : > { %p7313_p10 = scmp.lt.s32.totalorder %s7311_s28, %s7304_s29 }
 0x170   : > { %p7307_p6 = pnand %p7305_p4, %p7713_p7 }
 0x171   : > { %p7314_p11 = por %p7313_p10, %p7312_p9 }
 0x172   : > { %p7308_p8 = pneg %p7307_p6 }
 0x174   : > { %p7315_p12 = pnand %p7314_p11, %p7308_p8 }
 0x176   : > { %7318 = shalt.err (!%p7315_p12)
}
 0x177   : > { %6846 = dma.hbm_to_vmem [thread:$0]  (!%p7697_p5), %s8553_s12, 16, %s769_s18, [#allocation14]  }
 0x178   : > { %s7319_s2 = scalar_lea.hbm %s8483_s14, 64 }
 0x179   : > { %p7320_p2 = scmp.ne.s32.totalorder %s8483_s14, %s7319_s2  ;;  %p7326_p0 = scmp.lt.u32.totalorder %s7319_s2, %s8483_s14 }
 0x17b   : > { %p7322_p3 = pnand %p7320_p2, %p7713_p7 }
 0x17d   : > { %p7323_p13 = pneg %p7322_p3 }
 0x17f   : > { %p7328_p1 = pnand %p7326_p0, %p7323_p13 }
 0x181   : > { %7331 = shalt.err (!%p7328_p1)
}
 0x182   : > { %s7332_s29 = scalar_lea.vmem %s793_s4, 64  ;;  %p7340_p9 = scmp.lt.s32.totalorder %s793_s4, %s793_s4 }
 0x183   : > { %p7333_p4 = scmp.ne.s32.totalorder %s793_s4, %s7332_s29  ;;  %p7341_p10 = scmp.lt.s32.totalorder %s7332_s29, %s7332_s29 }
 0x185   : > { %p7335_p6 = pnand %p7333_p4, %p7713_p7  ;;  %p7342_p11 = por %p7341_p10, %p7340_p9 }
 0x187   : > { %p7336_p8 = pneg %p7335_p6 }
 0x189   : > { %p7343_p12 = pnand %p7342_p11, %p7336_p8 }
 0x18b   : > { %7346 = shalt.err (!%p7343_p12)
}
 0x18c   : > { %6852 = dma.hbm_to_vmem [thread:$0]  (!%p7697_p5), %s8483_s14, 64, %s793_s4, [#allocation17]  }
 0x18d   : > { %s7525_s20 = smov [#allocation21]   ;;  %s7526_s3 = smov [#allocation24]  }
 0x18e   : > { %s822_s6 = sshll.u32 %s7525_s20, 4  ;;  %s851_s5 = sshll.u32 %s7526_s3, 4  ;;  %s823_s6 = int_to_ptr.vmem [resolvable:$true] %s822_s6  ;;  %s852_s5 = int_to_ptr.vmem [resolvable:$true] %s851_s5 }
 0x18f   : > { %s7347_s1 = scalar_lea.hbm %s8488_s19, 384 }
 0x190   : > { %p7348_p2 = scmp.ne.s32.totalorder %s8488_s19, %s7347_s1  ;;  %p7354_p0 = scmp.lt.u32.totalorder %s7347_s1, %s8488_s19 }
 0x192   : > { %p7350_p3 = pnand %p7348_p2, %p7713_p7 }
 0x194   : > { %p7351_p13 = pneg %p7350_p3 }
 0x196   : > { %p7356_p1 = pnand %p7354_p0, %p7351_p13 }
 0x198   : > { %7359 = shalt.err (!%p7356_p1)
}
 0x199   : > { %s7360_s4 = scalar_lea.vmem %s823_s6, 384  ;;  %p7368_p9 = scmp.lt.s32.totalorder %s823_s6, %s823_s6 }
 0x19a   : > { %p7361_p4 = scmp.ne.s32.totalorder %s823_s6, %s7360_s4  ;;  %p7369_p10 = scmp.lt.s32.totalorder %s7360_s4, %s7360_s4 }
 0x19c   : > { %p7363_p6 = pnand %p7361_p4, %p7713_p7  ;;  %p7370_p11 = por %p7369_p10, %p7368_p9 }
 0x19e   : > { %p7364_p8 = pneg %p7363_p6 }
 0x1a0   : > { %p7371_p12 = pnand %p7370_p11, %p7364_p8 }
 0x1a2   : > { %7374 = shalt.err (!%p7371_p12)
}
 0x1a3   : > { %s8554_s28 = smov 8   ;;  %s8555_s20 = smov 128  }
 0x1a4   : > { %6858 = dma.hbm_to_vmem [thread:$0]  (!%p7697_p5), %s8488_s19, 384, %s823_s6, [#allocation20], %s8555_s20, %s8555_s20, %s8554_s28  }
 0x1a5   : > { %s7375_s25 = scalar_lea.hbm %s8491_s22, 32 }
 0x1a6   : > { %p7376_p2 = scmp.ne.s32.totalorder %s8491_s22, %s7375_s25  ;;  %p7382_p0 = scmp.lt.u32.totalorder %s7375_s25, %s8491_s22 }
 0x1a8   : > { %p7378_p3 = pnand %p7376_p2, %p7713_p7 }
 0x1aa   : > { %p7379_p13 = pneg %p7378_p3 }
 0x1ac   : > { %p7384_p1 = pnand %p7382_p0, %p7379_p13 }
 0x1ae   : > { %7387 = shalt.err (!%p7384_p1)
}
 0x1af   : > { %s7388_s3 = scalar_lea.vmem %s852_s5, 32  ;;  %p7396_p9 = scmp.lt.s32.totalorder %s852_s5, %s852_s5 }
 0x1b0   : > { %p7389_p4 = scmp.ne.s32.totalorder %s852_s5, %s7388_s3  ;;  %p7397_p10 = scmp.lt.s32.totalorder %s7388_s3, %s7388_s3 }
 0x1b2   : > { %p7391_p6 = pnand %p7389_p4, %p7713_p7  ;;  %p7398_p11 = por %p7397_p10, %p7396_p9 }
 0x1b4   : > { %p7392_p8 = pneg %p7391_p6 }
 0x1b6   : > { %p7399_p12 = pnand %p7398_p11, %p7392_p8 }
 0x1b8   : > { %7402 = shalt.err (!%p7399_p12)
}
 0x1b9   : > { %s7527_s6 = smov 16   ;;  %s7528_s28 = smov 1  }
 0x1ba   : > { %6864 = dma.hbm_to_vmem [thread:$0]  (!%p7697_p5), %s8491_s22, 32, %s852_s5, [#allocation23], %s7527_s6, %s7527_s6, %s7528_s28  }
 0x1bb   : > { %s7529_s7 = smov [#allocation27]   ;;  %s7530_s25 = smov [#allocation28]  }
 0x1bc   : > { %s877_s1 = sshll.u32 %s7529_s7, 4  ;;  %s894_s10 = sshll.u32 %s7530_s25, 4  ;;  %s878_s1 = int_to_ptr.vmem [resolvable:$true] %s877_s1  ;;  %s895_s10 = int_to_ptr.vmem [resolvable:$true] %s894_s10 }
 0x1bd   : > { %s7403_s4 = scalar_lea.hbm %s8493_s24, 32 }
 0x1be   : > { %p7404_p2 = scmp.ne.s32.totalorder %s8493_s24, %s7403_s4  ;;  %p7410_p0 = scmp.lt.u32.totalorder %s7403_s4, %s8493_s24 }
 0x1c0   : > { %p7406_p3 = pnand %p7404_p2, %p7713_p7 }
 0x1c2   : > { %p7407_p13 = pneg %p7406_p3 }
 0x1c4   : > { %p7412_p1 = pnand %p7410_p0, %p7407_p13 }
 0x1c6   : > { %7415 = shalt.err (!%p7412_p1)
}
 0x1c7   : > { %s7416_s5 = scalar_lea.vmem %s878_s1, 32  ;;  %p7424_p9 = scmp.lt.s32.totalorder %s878_s1, %s878_s1 }
 0x1c8   : > { %p7417_p4 = scmp.ne.s32.totalorder %s878_s1, %s7416_s5  ;;  %p7425_p10 = scmp.lt.s32.totalorder %s7416_s5, %s7416_s5 }
 0x1ca   : > { %p7419_p6 = pnand %p7417_p4, %p7713_p7  ;;  %p7426_p11 = por %p7425_p10, %p7424_p9 }
 0x1cc   : > { %p7420_p8 = pneg %p7419_p6 }
 0x1ce   : > { %p7427_p12 = pnand %p7426_p11, %p7420_p8 }
 0x1d0   : > { %7430 = shalt.err (!%p7427_p12)
}
 0x1d1   : > { %6870 = dma.hbm_to_vmem [thread:$0]  (!%p7697_p5), %s8493_s24, 32, %s878_s1, [#allocation26], %s7527_s6, %s7527_s6, %s7528_s28  }
 0x1d2   : > { %s7431_s2 = scalar_lea.hbm %s8495_s26, 16 }
 0x1d3   : > { %p7432_p2 = scmp.ne.s32.totalorder %s8495_s26, %s7431_s2  ;;  %p7438_p0 = scmp.lt.u32.totalorder %s7431_s2, %s8495_s26 }
 0x1d5   : > { %p7434_p3 = pnand %p7432_p2, %p7713_p7 }
 0x1d7   : > { %p7435_p13 = pneg %p7434_p3 }
 0x1d9   : > { %p7440_p1 = pnand %p7438_p0, %p7435_p13 }
 0x1db   : > { %7443 = shalt.err (!%p7440_p1)
}
 0x1dc   : > { %s7444_s4 = scalar_lea.vmem %s895_s10, 16  ;;  %s7451_s6 = scalar_lea.vmem %s895_s10, 32 }
 0x1dd   : > { %p7445_p4 = scmp.ne.s32.totalorder %s895_s10, %s7444_s4  ;;  %p7452_p9 = scmp.lt.s32.totalorder %s895_s10, %s895_s10 }
 0x1de   : > { %p7453_p10 = scmp.lt.s32.totalorder %s7451_s6, %s7444_s4 }
 0x1df   : > { %p7447_p6 = pnand %p7445_p4, %p7713_p7 }
 0x1e0   : > { %p7454_p11 = por %p7453_p10, %p7452_p9 }
 0x1e1   : > { %p7448_p8 = pneg %p7447_p6 }
 0x1e3   : > { %p7455_p12 = pnand %p7454_p11, %p7448_p8 }
 0x1e5   : > { %7458 = shalt.err (!%p7455_p12)
}
 0x1e6   : > { %6873 = dma.hbm_to_vmem [thread:$0]  (!%p7697_p5), %s8495_s26, 16, %s895_s10, [#allocation29]  }
 0x1e7   : > { %p8556_p2 = scmp.ne.s32.totalorder %s8542_s9, 0 }
 0x1e8   : > { %p8557_p3 = scmp.eq.s32.totalorder (!%p8556_p2), %s7680_s30, 0 }
 0x1e9   : > { %915 = sbr.rel (%p8556_p2) target bundleno = 4523 (0x11ab), region = 128 }
 0x1f0   : > { %7464 = dma.done.wait (%p8557_p3), [#allocation3], 256   ;;  %p8558_p7 = pmov %p8557_p3 }
 0x1f1   : > { %p8559_p13 = pmov %p8557_p3 }
 0x1f2   : > { %7466 = vsyncadd (%p8558_p7), [#allocation3], 4294967040 }
 0x1f3   : > { %7468 = dma.done.wait (%p8559_p13), [#allocation5], 80   ;;  %p8560_p0 = pmov %p8557_p3 }
 0x1f5   : > { %7470 = vsyncadd (%p8560_p0), [#allocation5], 4294967216  ;;  %p8561_p1 = pmov %p8560_p0 }
 0x1f6   : > { %p8562_p5 = pmov %p8560_p0 }
 0x1f7   : > { %7472 = dma.done.wait (%p8561_p1), [#allocation8], 144  }
 0x1f8   : > { %7474 = vsyncadd (%p8562_p5), [#allocation8], 4294967152  ;;  %p8563_p4 = pmov %p8560_p0 }
 0x1f9   : > { %p8564_p6 = pmov %p8560_p0 }
 0x1fa   : > { %7476 = dma.done.wait (%p8563_p4), [#allocation11], 208  }
 0x1fb   : > { %7478 = vsyncadd (%p8564_p6), [#allocation11], 4294967088  ;;  %p8565_p8 = pmov %p8560_p0 }
 0x1fc   : > { %p8566_p9 = pmov %p8560_p0 }
 0x1fd   : > { %7480 = dma.done.wait (%p8565_p8), [#allocation14], 272  }
 0x1fe   : > { %7482 = vsyncadd (%p8566_p9), [#allocation14], 4294967024  ;;  %p8567_p10 = pmov %p8560_p0 }
 0x1ff   : > { %p8568_p11 = pmov %p8560_p0 }
 0x200   : > { %7484 = dma.done.wait (%p8567_p10), [#allocation17], 576  }
 0x201   : > { %7486 = vsyncadd (%p8568_p11), [#allocation17], 4294966720  ;;  %p8569_p12 = pmov %p8560_p0 }
 0x202   : > { %p8570_p2 = pmov %p8560_p0 }
 0x203   : > { %7488 = dma.done.wait (%p8569_p12), [#allocation20], 400  }
 0x204   : > { %7490 = vsyncadd (%p8570_p2), [#allocation20], 4294966896  ;;  %p8571_p3 = pmov %p8560_p0 }
 0x205   : > { %p8572_p7 = pmov %p8560_p0 }
 0x206   : > { %7492 = dma.done.wait (%p8571_p3), [#allocation23], 3104  }
 0x207   : > { %7494 = vsyncadd (%p8572_p7), [#allocation23], 4294964192  ;;  %p8573_p13 = pmov %p8560_p0 }
 0x209   : > { %7496 = dma.done.wait (%p8573_p13), [#allocation26], 3104  }
 0x20a   : > { %7498 = vsyncadd (%p8560_p0), [#allocation26], 4294964192  ;;  %p8574_p1 = pmov %p8560_p0 }
 0x20b   : > { %p8575_p5 = pmov %p8560_p0 }
 0x20c   : > { %7500 = dma.done.wait (%p8574_p1), [#allocation29], 16  }
 0x20d   : > { %7502 = vsyncadd (%p8575_p5), [#allocation29], 4294967280  ;;  %p1054_p4 = scmp.lt.s32.totalorder %s7680_s30, 1  ;;  %vm1080_vm0 = vcmask 1043456   ;;  %s8576_s10 = sld [smem:[#allocation41_spill]]  ;;  %vm1073_vm1 = vcmask 31744  }
 0x20e   : > { %v1065_v0 = vld [vmem:[#allocation18] sm:$0xf]  ;;  %vm1163_vm2 = vcmask 130048   ;;  %v1160_v5 = vld [vmem:[#allocation2 + $0x8] sm:$0xff]  ;;  %v1161_v6 = vld [vmem:[#allocation4] sm:$0xf] }
 0x20f   : > { %s8588_s30 = smov (!%p1054_p4, %s7680_s30), 1  ;;  %6150 = vmatprep.subr.msk.mxu1 %vm1080_vm0, %v1065_v0  ;;  %v1159_v4 = vld [vmem:[#allocation2] sm:$0xff]  ;;  %6162 = vmatprep.subr.msk.mxu0 %vm1080_vm0, %v1161_v6  ;;  %s8577_s20 = sld [smem:[#allocation45_spill]]  ;;  %v1427_v19 = vld [vmem:[#allocation7 + $0x4] sm:$0xf]  ;;  %vm1338_vm3 = vcmask 64512  }
 0x210   : > { %s5942_s27 = sshll.u32 %s8588_s30, 4  ;;  %6151 = vmatpush3.msk.msra.mxu1 %vm1080_vm0, %v1065_v0  ;;  %6163 = vmatpush3.msk.msra.mxu0 %vm1080_vm0, %v1161_v6  ;;  %v1337_v16 = vld [vmem:[#allocation16] sm:$0xff]  ;;  %s8578_s6 = sld [smem:[#allocation48_spill]]  ;;  %v5831_v25 = vld [vmem:[#allocation6] ss:$0 sm:$0xff]  ;;  %v1770_v33 = vld [vmem:[#allocation16 + $0x8] sm:$0xff] }
 0x211   : > { %6167 = vmatprep.subr.mxu0 %v1337_v16  ;;  %v1426_v32 = vld [vmem:[#allocation7] sm:$0xf]  ;;  %v1861_v35 = vld [vmem:[#allocation10 + $0x4] sm:$0xf]  ;;  %v1860_v36 = vld [vmem:[#allocation10] sm:$0xf] }
 0x212   : > { %v1862_v40 = vld [vmem:[#allocation10 + $0x8] sm:$0xf]  ;;  %v5847_v41 = vld [vmem:[#allocation9] ss:$0 sm:$0xff]  ;;  %s8579_s7 = sld [smem:[#allocation51_spill]]  ;;  %v2372_v54 = vld [vmem:[#allocation16 + $0x10] sm:$0xff] }
 0x213   : > { %s1058_s3 = scalar_lea.vmem %s8576_s10, %s5942_s27  ;;  %v5865_v59 = vld [vmem:[#allocation12] ss:$0 sm:$0xff]  ;;  %v2464_v6 = vld [vmem:[#allocation13] sm:$0xf]  ;;  %vm3228_vm4 = vcmask 261120   ;;  %s8581_s12 = sld [smem:[#allocation54_spill]] }
 0x214   : > { %v1063_v1 = vld [vmem:[%s1058_s3] sm:$0xff]  ;;  %v1064_v2 = vld [vmem:[%s1058_s3 + $0x8] sm:$0xff]  ;;  %s8582_s3 = sld [smem:[#allocation55_spill]]  ;;  %vm7532_vm5 = vmmov 0   ;;  %s8583_s0 = sld [smem:[#allocation56_spill]] }
 0x215   : > { %6152 = vmatprep.mubr.msk.f32.mxu1 %vm1073_vm1, %v1063_v1  ;;  %v8127_v3 = vpack.c.bf16 %v1064_v2, %v1063_v1  ;;  %v1422_v7 = vld [vmem:[%s8577_s20] sm:$0xff]  ;;  %v1423_v8 = vld [vmem:[%s8577_s20 + $0x8] sm:$0xff]  ;;  %v1424_v9 = vld [vmem:[%s8577_s20 + $0x10] sm:$0xff]  ;;  %s8584_s8 = sld [smem:[#allocation57_spill]]  ;;  %s5824_s28 = sshll.u32 %s8588_s30, 3 }
 0x216   : > { %6153 = vmatmul.mubr.msk.f32.vlgmr.msra.gmra.mrb[0].mxu1 %vm1073_vm1, %v1064_v2  ;;  %v1425_v10 = vld [vmem:[%s8577_s20 + $0x18] sm:$0xff]  ;;  %v1854_v21 = vld [vmem:[%s8578_s6] sm:$0xff]  ;;  %v1855_v22 = vld [vmem:[%s8578_s6 + $0x8] sm:$0xff]  ;;  %s8585_s9 = sld [smem:[#allocation58_spill]] }
 0x217   : > { %6530 = vmatprep.subr.bf16.mxu1 %v8127_v3  ;;  %6159 = vmatprep.mubr.msk.f32.mxu1 %vm1163_vm2, %v1159_v4  ;;  %v1856_v23 = vld [vmem:[%s8578_s6 + $0x10] sm:$0xff]  ;;  %v1857_v24 = vld [vmem:[%s8578_s6 + $0x18] sm:$0xff]  ;;  %v1858_v48 = vld [vmem:[%s8578_s6 + $0x20] sm:$0xff] }
 0x218   : > { %6532 = vmatpush3.bf16.msra.mxu1 %v8127_v3  ;;  %v1859_v49 = vld [vmem:[%s8578_s6 + $0x28] sm:$0xff]  ;;  %s8580_s25 = smov %s8579_s7  ;;  %v2458_v52 = vld [vmem:[%s8579_s7 + $0x10] sm:$0xff] }
 0x219   : > { %6534 = vmatprep.subr.bf16.mxu1 %v8127_v3  ;;  %v2459_v53 = vld [vmem:[%s8580_s25 + $0x18] sm:$0xff]  ;;  %v2460_v55 = vld [vmem:[%s8580_s25 + $0x20] sm:$0xff]  ;;  %v2461_v56 = vld [vmem:[%s8580_s25 + $0x28] sm:$0xff] }
 0x21a   : > { %v2462_v57 = vld [vmem:[%s8580_s25 + $0x30] sm:$0xff]  ;;  %v2463_v58 = vld [vmem:[%s8580_s25 + $0x38] sm:$0xff]  ;;  %v2456_v2 = vld [vmem:[%s8580_s25] sm:$0xff] }
 0x21b   : > { %6160 = vmatmul.mubr.msk.f32.vlgmr.msra.gmra.mrb[2].mxu1 %vm1163_vm2, %v1160_v5  ;;  %v2465_v4 = vld [vmem:[#allocation13 + $0x4] sm:$0xf]  ;;  %v2457_v5 = vld [vmem:[%s8580_s25 + $0x8] sm:$0xff] }
 0x21c   : > { %6536 = vmatpush3.bf16.msra.mxu1 %v8127_v3  ;;  %6176 = vmatprep.mubr.msk.f32.mxu1 %vm1163_vm2, %v1422_v7 }
 0x21d   : > { %6538 = vmatprep.subr.bf16.mxu1 %v8127_v3 }
 0x21f   : > { %6177 = vmatmul.mubr.msk.f32.vlgmr.msra.gmra.mrb[4].mxu1 %vm1163_vm2, %v1423_v8 }
 0x220   : > { %6540 = vmatpush3.bf16.msra.mxu1 %v8127_v3  ;;  %6183 = vmatprep.mubr.msk.f32.mxu1 %vm1163_vm2, %v1424_v9 }
 0x221   : > { %6542 = vmatprep.subr.bf16.mxu1 %v8127_v3 }
 0x223   : > { %6184 = vmatmul.mubr.msk.f32.vlgmr.msra.gmra.mrb[6].mxu1 %vm1163_vm2, %v1425_v10 }
 0x224   : > { %6544 = vmatpush3.bf16.msra.mxu1 %v8127_v3  ;;  %6205 = vmatprep.mubr.msk.f32.mxu1 %vm1163_vm2, %v1854_v21 }
 0x225   : > { %6546 = vmatprep.subr.bf16.mxu1 %v8127_v3 }
 0x227   : > { %6206 = vmatmul.mubr.msk.f32.vlgmr.msra.gmra.mrb[8].mxu1 %vm1163_vm2, %v1855_v22 }
 0x228   : > { %6548 = vmatpush3.bf16.msra.mxu1 %v8127_v3  ;;  %6212 = vmatprep.mubr.msk.f32.mxu1 %vm1163_vm2, %v1856_v23 }
 0x229   : > { %6215 = vmatprep.subr.msk.mxu1 %vm1080_vm0, %v1861_v35 }
 0x22b   : > { %6213 = vmatmul.mubr.msk.f32.vlgmr.msra.gmra.mrb[10].mxu1 %vm1163_vm2, %v1857_v24 }
 0x22c   : > { %6216 = vmatpush3.msk.msra.mxu1 %vm1080_vm0, %v1861_v35 }
 0x22d   : > { %6220 = vmatprep.subr.msk.mxu1 %vm1080_vm0, %v1860_v36 }
 0x2e9   : > { %v8160_v11 = vpop.f32.mrb[0].mxu1 }
 0x2ea   : > { %v8162_v12 = vpop.f32.mrb[1].mxu1 }
 0x2ee   : > { %v6161_v13 = vpop.f32.mrb[2].mxu1 }
 0x2ef   : > { %v1236_v14 = vpop.f32.mrb[3].mxu1 }
 0x2f0   : > { %6164 = vmatprep.mubr.msk.f32.mxu0 %vm1073_vm1, %v1236_v14 }
 0x2f1   : > { %6165 = vmatmul.mubr.msk.f32.vlgmr.msra.gmra.mrb[0].mxu0 %vm1073_vm1, %v6161_v13 }
 0x2f2   : > { %v6178_v15 = vpop.f32.mrb[4].mxu1  ;;  %6168 = vmatpush3.msra.mxu0 %v1337_v16 }
 0x2f3   : > { %v1501_v17 = vpop.f32.mrb[5].mxu1  ;;  %6186 = vmatprep.subr.msk.mxu0 %vm1080_vm0, %v1427_v19 }
 0x2f6   : > { %v6185_v18 = vpop.f32.mrb[6].mxu1 }
 0x2f7   : > { %v1582_v20 = vpop.f32.mrb[7].mxu1 }
 0x2fa   : > { %v6207_v34 = vpop.f32.mrb[8].mxu1 }
 0x2fb   : > { %v1936_v37 = vpop.f32.mrb[9].mxu1 }
 0x2fe   : > { %v6214_v38 = vpop.f32.mrb[10].mxu1 }
 0x2ff   : > { %v2017_v39 = vpop.f32.mrb[11].mxu1 }
 0x300   : > { %6217 = vmatprep.mubr.msk.f32.mxu1 %vm1073_vm1, %v2017_v39 }
 0x301   : > { %6218 = vmatmul.mubr.msk.f32.vlgmr.msra.gmra.mrb[12].mxu1 %vm1073_vm1, %v6214_v38 }
 0x302   : > { %6221 = vmatpush3.msk.msra.mxu1 %vm1080_vm0, %v1860_v36  ;;  %6222 = vmatprep.mubr.msk.f32.mxu1 %vm1073_vm1, %v1936_v37 }
 0x303   : > { %6232 = vmatprep.subr.msk.mxu1 %vm1080_vm0, %v1862_v40 }
 0x309   : > { %6223 = vmatmul.mubr.msk.f32.vlgmr.msra.gmra.mrb[12].mxu1 %vm1073_vm1, %v6207_v34 }
 0x30a   : > { %6233 = vmatpush3.msk.msra.mxu1 %vm1080_vm0, %v1862_v40 }
 0x30b   : > { %6558 = vmatprep.subr.bf16.mxu1 %v8127_v3 }
 0x3c4   : > { %v6166_v26 = vpop.f32.mrb[0].mxu0 }
 0x3c5   : > { %v1332_v27 = vadd.f32 %v6166_v26, %v5831_v25  ;;  %v1326_v28 = vpop.f32.mrb[1].mxu0  ;;  %v3261_v26 = vld [vmem:[%s8485_s16] sm:$0xff] }
 0x3c6   : > { %v1327_v29 = vadd.f32 %v5831_v25, %v1326_v28  ;;  %v5825_v28 = vld [vmem:[#allocation19] ss:$0 sm:$0xff] }
 0x3c7   : > { %v1336_v31 = vmax.f32 %v1332_v27, 0.0  ;;  %v3265_v27 = vld [vmem:[%s8485_s16 + $0x20] sm:$0xff] }
 0x3c8   : > { %v1335_v30 = vmax.f32 %v1327_v29, 0.0  ;;  %v1156_v29 = vadd.f32 %v8160_v11, %v5825_v28 }
 0x3ca   : > { %6169 = vmatprep.mubr.msk.f32.mxu0 %vm1338_vm3, %v1335_v30  ;;  %v1151_v30 = vadd.f32 %v5825_v28, %v8162_v12 }
 0x3cb   : > { %6170 = vmatmul.mubr.msk.f32.vlgmr.msra.gmra.mrb[2].mxu0 %vm1338_vm3, %v1336_v31 }
 0x3cc   : > { %6187 = vmatpush3.msk.msra.mxu0 %vm1080_vm0, %v1427_v19  ;;  %6188 = vmatprep.mubr.msk.f32.mxu0 %vm1073_vm1, %v1582_v20  ;;  %v5888_v19 = vld [vmem:[#allocation15] ss:$0 sm:$0xff] }
 0x3cd   : > { %6191 = vmatprep.subr.msk.mxu0 %vm1080_vm0, %v1426_v32 }
 0x3cf   : > { %6189 = vmatmul.mubr.msk.f32.vlgmr.msra.gmra.mrb[4].mxu0 %vm1073_vm1, %v6185_v18  ;;  %v3144_v18 = vld [vmem:[#allocation16 + $0x18] sm:$0xff] }
 0x3d0   : > { %6192 = vmatpush3.msk.msra.mxu0 %vm1080_vm0, %v1426_v32  ;;  %6193 = vmatprep.mubr.msk.f32.mxu0 %vm1073_vm1, %v1501_v17  ;;  %v2467_v17 = vld [vmem:[#allocation13 + $0xc] sm:$0xf] }
 0x3d1   : > { %6196 = vmatprep.subr.mxu0 %v1770_v33 }
 0x3d7   : > { %6194 = vmatmul.mubr.msk.f32.vlgmr.msra.gmra.mrb[4].mxu0 %vm1073_vm1, %v6178_v15 }
 0x3d8   : > { %6197 = vmatpush3.msra.mxu0 %v1770_v33 }
 0x3d9   : > { %6550 = vmatprep.subr.bf16.mxu0 %v8127_v3 }
 0x4aa   : > { %v6195_v42 = vpop.f32.mrb[4].mxu0 }
 0x4ab   : > { %v1766_v43 = vadd.f32 %v6195_v42, %v5847_v41  ;;  %v1750_v44 = vpop.f32.mrb[5].mxu0 }
 0x4ac   : > { %v1765_v45 = vadd.f32 %v5847_v41, %v1750_v44 }
 0x4ad   : > { %v1768_v47 = vmax.f32 %v1766_v43, 0.0 }
 0x4ae   : > { %v1767_v46 = vmax.f32 %v1765_v45, 0.0 }
 0x4b0   : > { %6198 = vmatprep.mubr.msk.f32.mxu0 %vm1338_vm3, %v1767_v46 }
 0x4b1   : > { %6199 = vmatmul.mubr.msk.f32.vlgmr.msra.gmra.mrb[2].mxu0 %vm1338_vm3, %v1768_v47 }
 0x4b2   : > { %6552 = vmatpush3.bf16.msra.mxu0 %v8127_v3  ;;  %6229 = vmatprep.mubr.msk.f32.mxu0 %vm1163_vm2, %v1858_v48 }
 0x4b3   : > { %6237 = vmatprep.subr.mxu0 %v2372_v54 }
 0x4b5   : > { %6230 = vmatmul.mubr.msk.f32.vlgmr.msra.gmra.mrb[6].mxu0 %vm1163_vm2, %v1859_v49 }
 0x4b6   : > { %6238 = vmatpush3.msra.mxu0 %v2372_v54 }
 0x4b7   : > { %6554 = vmatprep.subr.bf16.mxu0 %v8127_v3 }
 0x588   : > { %v6231_v50 = vpop.f32.mrb[6].mxu0 }
 0x589   : > { %v2266_v51 = vpop.f32.mrb[7].mxu0 }
 0x58a   : > { %6234 = vmatprep.mubr.msk.f32.mxu1 %vm1073_vm1, %v2266_v51 }
 0x58b   : > { %6235 = vmatmul.mubr.msk.f32.vlgmr.msra.gmra.mrb[12].mxu1 %vm1073_vm1, %v6231_v50 }
 0x58c   : > { %6560 = vmatpush3.bf16.msra.mxu1 %v8127_v3  ;;  %6253 = vmatprep.mubr.msk.f32.mxu1 %vm1163_vm2, %v2458_v52 }
 0x58d   : > { %6562 = vmatprep.subr.bf16.mxu1 %v8127_v3 }
 0x58f   : > { %6254 = vmatmul.mubr.msk.f32.vlgmr.msra.gmra.mrb[14].mxu1 %vm1163_vm2, %v2459_v53 }
 0x590   : > { %6564 = vmatpush3.bf16.msra.mxu1 %v8127_v3  ;;  %6270 = vmatprep.mubr.msk.f32.mxu1 %vm1163_vm2, %v2460_v55 }
 0x591   : > { %6566 = vmatprep.subr.bf16.mxu1 %v8127_v3 }
 0x593   : > { %6271 = vmatmul.mubr.msk.f32.vlgmr.msra.gmra.mrb[16].mxu1 %vm1163_vm2, %v2461_v56 }
 0x594   : > { %6568 = vmatpush3.bf16.msra.mxu1 %v8127_v3  ;;  %6282 = vmatprep.mubr.msk.f32.mxu1 %vm1163_vm2, %v2462_v57 }
 0x597   : > { %6283 = vmatmul.mubr.msk.f32.vlgmr.msra.gmra.mrb[18].mxu1 %vm1163_vm2, %v2463_v58 }
 0x598   : > { %6299 = vmatprep.mubr.msk.f32.mxu1 %vm1163_vm2, %v3261_v26  ;;  %v3275_v26 = vld [vmem:[#allocation22 + $0x40] sm:$0xff] }
 0x65e   : > { %v6236_v60 = vpop.f32.mrb[12].mxu1 }
 0x65f   : > { %v2368_v61 = vadd.f32 %v6236_v60, %v5865_v59  ;;  %v2350_v62 = vpop.f32.mrb[13].mxu1 }
 0x660   : > { %v2367_v63 = vadd.f32 %v5865_v59, %v2350_v62 }
 0x661   : > { %v2370_v1 = vmax.f32 %v2368_v61, 0.0 }
 0x662   : > { %v2369_v0 = vmax.f32 %v2367_v63, 0.0  ;;  %v6255_v7 = vpop.f32.mrb[14].mxu1 }
 0x663   : > { %v2622_v8 = vpop.f32.mrb[15].mxu1 }
 0x664   : > { %6239 = vmatprep.mubr.msk.f32.mxu0 %vm1338_vm3, %v2369_v0 }
 0x665   : > { %6240 = vmatmul.mubr.msk.f32.vlgmr.msra.gmra.mrb[2].mxu0 %vm1338_vm3, %v2370_v1 }
 0x666   : > { %6556 = vmatpush3.bf16.msra.mxu0 %v8127_v3  ;;  %6246 = vmatprep.mubr.msk.f32.mxu0 %vm1163_vm2, %v2456_v2  ;;  %v2466_v3 = vld [vmem:[#allocation13 + $0x8] sm:$0xf]  ;;  %v6272_v9 = vpop.f32.mrb[16].mxu1  ;;  %v3271_v2 = vld [vmem:[#allocation22 + $0x20] sm:$0xff] }
 0x667   : > { %6256 = vmatprep.subr.msk.mxu0 %vm1080_vm0, %v2465_v4  ;;  %v2871_v10 = vpop.f32.mrb[17].mxu1 }
 0x669   : > { %6247 = vmatmul.mubr.msk.f32.vlgmr.msra.gmra.mrb[8].mxu0 %vm1163_vm2, %v2457_v5  ;;  %v3262_v5 = vld [vmem:[%s8485_s16 + $0x8] sm:$0xff] }
 0x66a   : > { %6257 = vmatpush3.msk.msra.mxu0 %vm1080_vm0, %v2465_v4  ;;  %6258 = vmatprep.mubr.msk.f32.mxu0 %vm1073_vm1, %v2622_v8  ;;  %v6284_v13 = vpop.f32.mrb[18].mxu1  ;;  %v3272_v4 = vld [vmem:[#allocation22 + $0x28] sm:$0xff] }
 0x66b   : > { %6261 = vmatprep.subr.msk.mxu0 %vm1080_vm0, %v2464_v6  ;;  %v3038_v14 = vpop.f32.mrb[19].mxu1  ;;  %v6577_v8 = vpack.c.bf16 %v3272_v4, %v3271_v2 }
 0x66d   : > { %6259 = vmatmul.mubr.msk.f32.vlgmr.msra.gmra.mrb[10].mxu0 %vm1073_vm1, %v6255_v7  ;;  %v3263_v7 = vld [vmem:[%s8485_s16 + $0x10] sm:$0xff] }
 0x66e   : > { %6262 = vmatpush3.msk.msra.mxu0 %vm1080_vm0, %v2464_v6  ;;  %v3266_v6 = vld [vmem:[%s8485_s16 + $0x28] sm:$0xff] }
 0x66f   : > { %6273 = vmatprep.subr.msk.mxu0 %vm1080_vm0, %v2466_v3 }
 0x73c   : > { %v6248_v15 = vpop.f32.mrb[8].mxu0 }
 0x73d   : > { %v2541_v16 = vpop.f32.mrb[9].mxu0 }
 0x73e   : > { %6263 = vmatprep.mubr.msk.f32.mxu0 %vm1073_vm1, %v2541_v16 }
 0x73f   : > { %6264 = vmatmul.mubr.msk.f32.vlgmr.msra.gmra.mrb[10].mxu0 %vm1073_vm1, %v6248_v15  ;;  %v3268_v15 = vld [vmem:[#allocation22 + $0x8] sm:$0xff] }
 0x740   : > { %6274 = vmatpush3.msk.msra.mxu0 %vm1080_vm0, %v2466_v3  ;;  %6275 = vmatprep.mubr.msk.f32.mxu0 %vm1073_vm1, %v2871_v10  ;;  %v3264_v3 = vld [vmem:[%s8485_s16 + $0x18] sm:$0xff] }
 0x741   : > { %6285 = vmatprep.subr.msk.mxu0 %vm1080_vm0, %v2467_v17  ;;  %v3274_v10 = vld [vmem:[#allocation22 + $0x38] sm:$0xff] }
 0x747   : > { %6276 = vmatmul.mubr.msk.f32.vlgmr.msra.gmra.mrb[10].mxu0 %vm1073_vm1, %v6272_v9  ;;  %v3273_v9 = vld [vmem:[#allocation22 + $0x30] sm:$0xff] }
 0x748   : > { %6286 = vmatpush3.msk.msra.mxu0 %vm1080_vm0, %v2467_v17  ;;  %6287 = vmatprep.mubr.msk.f32.mxu0 %vm1073_vm1, %v3038_v14  ;;  %v3267_v14 = vld [vmem:[#allocation22] sm:$0xff] }
 0x749   : > { %6290 = vmatprep.subr.mxu0 %v3144_v18  ;;  %v6585_v16 = vpack.c.bf16 %v3268_v15, %v3267_v14  ;;  %v3809_v14 = vld [vmem:[%s8581_s12 + $0x8] sm:$0xff] }
 0x74a   : > { %v3813_v15 = vld [vmem:[%s8581_s12 + $0x28] sm:$0xff] }
 0x74f   : > { %6288 = vmatmul.mubr.msk.f32.vlgmr.msra.gmra.mrb[10].mxu0 %vm1073_vm1, %v6284_v13  ;;  %v6581_v13 = vpack.c.bf16 %v3274_v10, %v3273_v9  ;;  %v3818_v10 = vld [vmem:[#allocation25 + $0x20] sm:$0xff] }
 0x750   : > { %6291 = vmatpush3.msra.mxu0 %v3144_v18 }
 0x822   : > { %v6289_v20 = vpop.f32.mrb[10].mxu0 }
 0x823   : > { %v3140_v21 = vadd.f32 %v6289_v20, %v5888_v19  ;;  %v3122_v22 = vpop.f32.mrb[11].mxu0 }
 0x824   : > { %v3139_v23 = vadd.f32 %v5888_v19, %v3122_v22  ;;  %v3270_v22 = vld [vmem:[#allocation22 + $0x18] sm:$0xff] }
 0x825   : > { %v3142_v25 = vmax.f32 %v3140_v21, 0.0  ;;  %v3269_v21 = vld [vmem:[#allocation22 + $0x10] sm:$0xff] }
 0x826   : > { %v3141_v24 = vmax.f32 %v3139_v23, 0.0 }
 0x828   : > { %6292 = vmatprep.mubr.msk.f32.mxu0 %vm1338_vm3, %v3141_v24 }
 0x829   : > { %6293 = vmatmul.mubr.msk.f32.vlgmr.msra.gmra.mrb[2].mxu0 %vm1338_vm3, %v3142_v25  ;;  %v6589_v25 = vpack.c.bf16 %v3270_v22, %v3269_v21  ;;  %v3814_v22 = vld [vmem:[#allocation25] sm:$0xff] }
 0x82a   : > { %6335 = vmatprep.mubr.msk.f32.mxu0 %vm1163_vm2, %v3265_v27  ;;  %v3276_v27 = vld [vmem:[#allocation22 + $0x48] sm:$0xff] }
 0x82b   : > { %v6597_v28 = vpack.c.bf16 %v3276_v27, %v3275_v26 }
 0x8fc   : > { %v6294_v31 = vpop.f32.mrb[2].mxu0 }
 0x8fd   : > { %v6714_v32 = vadd.f32 %v6294_v31, %v1156_v29  ;;  %v3217_v33 = vpop.f32.mrb[3].mxu0  ;;  %v3277_v29 = vld [vmem:[#allocation22 + $0x50] sm:$0xff] }
 0x8fe   : > { %v6716_v34 = vadd.f32 %v3217_v33, %v1151_v30  ;;  %v3278_v30 = vld [vmem:[#allocation22 + $0x58] sm:$0xff]  ;;  %v3812_v33 = vld [vmem:[%s8581_s12 + $0x20] sm:$0xff] }
 0x8ff   : > { %v3230_v35 = vsel %vm3228_vm4, %v6714_v32, 0.0  ;;  %v3240_v36 = vmul.f32 %v6714_v32, %v6714_v32  ;;  %v6601_v31 = vpack.c.bf16 %v3278_v30, %v3277_v29  ;;  %v3816_v29 = vld [vmem:[#allocation25 + $0x10] sm:$0xff]  ;;  %v3817_v30 = vld [vmem:[#allocation25 + $0x18] sm:$0xff] }
 0x900   : > { %v3229_v37 = vsel %vm3228_vm4, %v6716_v34, 0.0  ;;  %v3239_v38 = vmul.f32 %v6716_v34, %v6716_v34 }
 0x901   : > { %v3242_v39 = vsel %vm3228_vm4, %v3240_v36, 0.0  ;;  %v3231_v40 = vadd.f32 %v3230_v35, %v3229_v37 }
 0x902   : > { %v3241_v41 = vsel %vm3228_vm4, %v3239_v38, 0.0 }
 0x903   : > { %v3232_v42 = vrot.slane %v3231_v40, 4  ;;  %v3243_v11 = vadd.f32 %v3242_v39, %v3241_v41 }
 0x905   : > { %v3233_v43 = vadd.f32 %v3232_v42, %v3231_v40  ;;  %v3244_v12 = vrot.slane %v3243_v11, 4 }
 0x907   : > { %v3234_v44 = vrot.slane %v3233_v43, 2  ;;  %v3245_v45 = vadd.f32 %v3244_v12, %v3243_v11 }
 0x909   : > { %v3235_v46 = vadd.f32 %v3234_v44, %v3233_v43  ;;  %v3246_v47 = vrot.slane %v3245_v45, 2 }
 0x90b   : > { %v3236_v48 = vrot.slane %v3235_v46, 1  ;;  %v3247_v49 = vadd.f32 %v3246_v47, %v3245_v45 }
 0x90d   : > { %v3237_v50 = vadd.f32 %v3236_v48, %v3235_v46  ;;  %v3248_v51 = vrot.slane %v3247_v49, 1 }
 0x90f   : > { %v3238_v52 = vmul.f32 0.0625, %v3237_v50  ;;  %v3249_v53 = vadd.f32 %v3248_v51, %v3247_v49 }
 0x911   : > { %v3250_v54 = vmul.f32 0.0625, %v3249_v53  ;;  %v3251_v55 = vmul.f32 %v3238_v52, %v3238_v52  ;;  %v3253_v56 = vsub.f32 %v6716_v34, %v3238_v52  ;;  %v3254_v57 = vsub.f32 %v6714_v32, %v3238_v52  ;;  %v3808_v32 = vld [vmem:[%s8581_s12] sm:$0xff]  ;;  %v5903_v34 = vld [vmem:[#allocation24] ss:$0 sm:$0xff] }
 0x913   : > { %v3252_v58 = vsub.f32 %v3250_v54, %v3251_v55 }
 0x915   : > { %v3255_v59 = vadd.f32 1e-05, %v3252_v58 }
 0x917   : > { %6945 = vrsqrt.f32 %v3255_v59 }
 0x921   : > { %v6946_v60 = vpop.eup %6945 }
 0x922   : > { %v8291_v61 = vmul.f32 %v6946_v60, %v3253_v56  ;;  %v8293_v62 = vmul.f32 %v6946_v60, %v3254_v57 }
 0x924   : > { %v3259_v63 = vmax.f32 %v8291_v61, 0.0  ;;  %v3260_v0 = vmax.f32 %v8293_v62, 0.0  ;;  %v4358_v61 = vld [vmem:[%s8582_s3 + $0x8] sm:$0xff] }
 0x925   : > { %v4362_v62 = vld [vmem:[%s8582_s3 + $0x28] sm:$0xff] }
 0x926   : > { %v6569_v1 = vpack.c.bf16 %v3260_v0, %v3259_v63 }
 0x928   : > { %6570 = vmatprep.subr.bf16.mxu1 %v6569_v1  ;;  %6594 = vmatprep.subr.bf16.mxu0 %v6569_v1 }
 0x929   : > { %6572 = vmatpush3.bf16.msra.mxu1 %v6569_v1  ;;  %6596 = vmatpush3.bf16.msra.mxu0 %v6569_v1 }
 0x92a   : > { %6574 = vmatprep.subr.bf16.mxu1 %v6569_v1 }
 0x92c   : > { %6300 = vmatmul.mubr.msk.f32.vlgmr.msra.gmra.mrb[20].mxu1 %vm1163_vm2, %v3262_v5  ;;  %6336 = vmatmul.mubr.msk.f32.vlgmr.msra.gmra.mrb[12].mxu0 %vm1163_vm2, %v3266_v6 }
 0x92d   : > { %6576 = vmatpush3.bf16.msra.mxu1 %v6569_v1  ;;  %6306 = vmatprep.mubr.msk.f32.mxu1 %vm1163_vm2, %v3263_v7 }
 0x92e   : > { %6578 = vmatprep.subr.bf16.mxu1 %v6577_v8  ;;  %6353 = vmatprep.mubr.msk.f32.mxu0 %vm1163_vm2, %v3808_v32 }
 0x930   : > { %6307 = vmatmul.mubr.msk.f32.vlgmr.msra.gmra.mrb[22].mxu1 %vm1163_vm2, %v3264_v3 }
 0x931   : > { %6580 = vmatpush3.bf16.msra.mxu1 %v6577_v8 }
 0x932   : > { %6582 = vmatprep.subr.bf16.mxu1 %v6581_v13 }
 0x935   : > { %6584 = vmatpush3.bf16.msra.mxu1 %v6581_v13  ;;  %v3819_v13 = vld [vmem:[#allocation25 + $0x28] sm:$0xff] }
 0x936   : > { %6586 = vmatprep.subr.bf16.mxu1 %v6585_v16 }
 0x9ff   : > { %v6301_v17 = vpop.f32.mrb[20].mxu1  ;;  %v6337_v18 = vpop.f32.mrb[12].mxu0 }
 0xa00   : > { %v3352_v19 = vpop.f32.mrb[21].mxu1  ;;  %v3676_v20 = vpop.f32.mrb[13].mxu0 }
 0xa03   : > { %v6308_v23 = vpop.f32.mrb[22].mxu1 }
 0xa04   : > { %v3433_v24 = vpop.f32.mrb[23].mxu1 }
 0xa05   : > { %6317 = vmatprep.mubr.msk.f32.mxu1 %vm3228_vm4, %v3433_v24 }
 0xa06   : > { %6318 = vmatmul.mubr.msk.f32.vlgmr.msra.gmra.mrb[24].mxu1 %vm3228_vm4, %v6308_v23  ;;  %v3815_v23 = vld [vmem:[#allocation25 + $0x8] sm:$0xff] }
 0xa07   : > { %6588 = vmatpush3.bf16.msra.mxu1 %v6585_v16  ;;  %6328 = vmatprep.mubr.msk.f32.mxu1 %vm3228_vm4, %v3352_v19  ;;  %v3810_v16 = vld [vmem:[%s8581_s12 + $0x10] sm:$0xff]  ;;  %v6621_v24 = vpack.c.bf16 %v3815_v23, %v3814_v22  ;;  %v4368_v22 = vld [vmem:[#allocation22 + $0x80] sm:$0xff]  ;;  %v4369_v23 = vld [vmem:[#allocation22 + $0x88] sm:$0xff] }
 0xa08   : > { %6590 = vmatprep.subr.bf16.mxu1 %v6589_v25  ;;  %v3820_v19 = vld [vmem:[#allocation25 + $0x30] sm:$0xff] }
 0xa0b   : > { %6592 = vmatpush3.bf16.msra.mxu1 %v6589_v25 }
 0xa0c   : > { %6598 = vmatprep.subr.bf16.mxu1 %v6597_v28 }
 0xa0e   : > { %6329 = vmatmul.mubr.msk.f32.vlgmr.msra.gmra.mrb[24].mxu1 %vm3228_vm4, %v6301_v17  ;;  %v6613_v17 = vpack.c.bf16 %v3819_v13, %v3818_v10 }
 0xa0f   : > { %6600 = vmatpush3.bf16.msra.mxu1 %v6597_v28  ;;  %6346 = vmatprep.mubr.msk.f32.mxu1 %vm3228_vm4, %v3676_v20  ;;  %v3821_v20 = vld [vmem:[#allocation25 + $0x38] sm:$0xff] }
 0xa10   : > { %6602 = vmatprep.subr.bf16.mxu1 %v6601_v31  ;;  %v6617_v21 = vpack.c.bf16 %v3821_v20, %v3820_v19 }
 0xa13   : > { %6604 = vmatpush3.bf16.msra.mxu1 %v6601_v31 }
 0xa16   : > { %6347 = vmatmul.mubr.msk.f32.vlgmr.msra.gmra.mrb[24].mxu1 %vm3228_vm4, %v6337_v18  ;;  %v3811_v18 = vld [vmem:[%s8581_s12 + $0x18] sm:$0xff] }
 0xa17   : > { %6389 = vmatprep.mubr.msk.f32.mxu1 %vm1163_vm2, %v3812_v33  ;;  %v6625_v33 = vpack.c.bf16 %v3817_v30, %v3816_v29  ;;  %v4365_v29 = vld [vmem:[#allocation22 + $0x68] sm:$0xff] }
 0xae9   : > { %v6348_v35 = vpop.f32.mrb[24].mxu1 }
 0xaea   : > { %v3775_v36 = vadd.f32 %v6348_v35, %v5903_v34  ;;  %v3757_v37 = vpop.f32.mrb[25].mxu1  ;;  %v3823_v35 = vld [vmem:[#allocation25 + $0x48] sm:$0xff] }
 0xaeb   : > { %v3774_v38 = vadd.f32 %v5903_v34, %v3757_v37  ;;  %v3822_v34 = vld [vmem:[#allocation25 + $0x40] sm:$0xff]  ;;  %v3824_v37 = vld [vmem:[#allocation25 + $0x50] sm:$0xff] }
 0xaec   : > { %v3777_v39 = vsel %vm3228_vm4, %v3775_v36, 0.0  ;;  %v3787_v40 = vmul.f32 %v3775_v36, %v3775_v36 }
 0xaed   : > { %v3776_v41 = vsel %vm3228_vm4, %v3774_v38, 0.0  ;;  %v3786_v42 = vmul.f32 %v3774_v38, %v3774_v38 }
 0xaee   : > { %v3789_v11 = vsel %vm3228_vm4, %v3787_v40, 0.0  ;;  %v3778_v43 = vadd.f32 %v3777_v39, %v3776_v41  ;;  %v4357_v40 = vld [vmem:[%s8582_s3] sm:$0xff] }
 0xaef   : > { %v3788_v12 = vsel %vm3228_vm4, %v3786_v42, 0.0  ;;  %v4361_v41 = vld [vmem:[%s8582_s3 + $0x20] sm:$0xff] }
 0xaf0   : > { %v3779_v44 = vrot.slane %v3778_v43, 4  ;;  %v3790_v45 = vadd.f32 %v3789_v11, %v3788_v12  ;;  %v5916_v42 = vld [vmem:[#allocation27] ss:$0 sm:$0xff] }
 0xaf2   : > { %v3780_v46 = vadd.f32 %v3779_v44, %v3778_v43  ;;  %v3791_v47 = vrot.slane %v3790_v45, 4 }
 0xaf4   : > { %v3781_v48 = vrot.slane %v3780_v46, 2  ;;  %v3792_v49 = vadd.f32 %v3791_v47, %v3790_v45 }
 0xaf6   : > { %v3782_v50 = vadd.f32 %v3781_v48, %v3780_v46  ;;  %v3793_v51 = vrot.slane %v3792_v49, 2 }
 0xaf8   : > { %v3783_v52 = vrot.slane %v3782_v50, 1  ;;  %v3794_v53 = vadd.f32 %v3793_v51, %v3792_v49 }
 0xafa   : > { %v3784_v54 = vadd.f32 %v3783_v52, %v3782_v50  ;;  %v3795_v55 = vrot.slane %v3794_v53, 1 }
 0xafc   : > { %v3785_v56 = vmul.f32 0.0625, %v3784_v54  ;;  %v3796_v57 = vadd.f32 %v3795_v55, %v3794_v53 }
 0xafe   : > { %v3797_v58 = vmul.f32 0.0625, %v3796_v57  ;;  %v3798_v59 = vmul.f32 %v3785_v56, %v3785_v56  ;;  %v3800_v60 = vsub.f32 %v3774_v38, %v3785_v56  ;;  %v3801_v1 = vsub.f32 %v3775_v36, %v3785_v56  ;;  %v3825_v38 = vld [vmem:[#allocation25 + $0x58] sm:$0xff] }
 0xaff   : > { %v6633_v36 = vpack.c.bf16 %v3823_v35, %v3822_v34  ;;  %v6637_v39 = vpack.c.bf16 %v3825_v38, %v3824_v37  ;;  %v4366_v35 = vld [vmem:[#allocation22 + $0x70] sm:$0xff] }
 0xb00   : > { %v3799_v2 = vsub.f32 %v3797_v58, %v3798_v59 }
 0xb02   : > { %v3802_v4 = vadd.f32 1e-05, %v3799_v2 }
 0xb04   : > { %6947 = vrsqrt.f32 %v3802_v4 }
 0xb0e   : > { %v6948_v5 = vpop.eup %6947 }
 0xb0f   : > { %v3804_v6 = vmul.f32 %v6948_v5, %v3800_v60  ;;  %v3805_v7 = vmul.f32 %v6948_v5, %v3801_v1 }
 0xb11   : > { %v3806_v8 = vmax.f32 %v3804_v6, 0.0  ;;  %v3807_v3 = vmax.f32 %v3805_v7, 0.0 }
 0xb13   : > { %v6605_v9 = vpack.c.bf16 %v3807_v3, %v3806_v8 }
 0xb15   : > { %6606 = vmatprep.subr.bf16.mxu0 %v6605_v9  ;;  %6630 = vmatprep.subr.bf16.mxu1 %v6605_v9 }
 0xb16   : > { %6608 = vmatpush3.bf16.msra.mxu0 %v6605_v9  ;;  %6632 = vmatpush3.bf16.msra.mxu1 %v6605_v9 }
 0xb17   : > { %6610 = vmatprep.subr.bf16.mxu0 %v6605_v9 }
 0xb19   : > { %6354 = vmatmul.mubr.msk.f32.vlgmr.msra.gmra.mrb[14].mxu0 %vm1163_vm2, %v3809_v14  ;;  %6390 = vmatmul.mubr.msk.f32.vlgmr.msra.gmra.mrb[26].mxu1 %vm1163_vm2, %v3813_v15 }
 0xb1a   : > { %6612 = vmatpush3.bf16.msra.mxu0 %v6605_v9  ;;  %6360 = vmatprep.mubr.msk.f32.mxu0 %vm1163_vm2, %v3810_v16 }
 0xb1b   : > { %6614 = vmatprep.subr.bf16.mxu0 %v6613_v17  ;;  %6407 = vmatprep.mubr.msk.f32.mxu1 %vm1163_vm2, %v4357_v40  ;;  %v4372_v40 = vld [vmem:[#allocation22 + $0xa0] sm:$0xff] }
 0xb1d   : > { %6361 = vmatmul.mubr.msk.f32.vlgmr.msra.gmra.mrb[16].mxu0 %vm1163_vm2, %v3811_v18 }
 0xb1e   : > { %6616 = vmatpush3.bf16.msra.mxu0 %v6613_v17 }
 0xb1f   : > { %6618 = vmatprep.subr.bf16.mxu0 %v6617_v21 }
 0xb22   : > { %6620 = vmatpush3.bf16.msra.mxu0 %v6617_v21 }
 0xb23   : > { %6622 = vmatprep.subr.bf16.mxu0 %v6621_v24 }
 0xbec   : > { %v6355_v25 = vpop.f32.mrb[14].mxu0  ;;  %v6391_v26 = vpop.f32.mrb[26].mxu1 }
 0xbed   : > { %v3899_v27 = vpop.f32.mrb[15].mxu0  ;;  %v4223_v28 = vpop.f32.mrb[27].mxu1 }
 0xbf0   : > { %v6362_v31 = vpop.f32.mrb[16].mxu0 }
 0xbf1   : > { %v3980_v32 = vpop.f32.mrb[17].mxu0 }
 0xbf2   : > { %6371 = vmatprep.mubr.msk.f32.mxu0 %vm3228_vm4, %v3980_v32 }
 0xbf3   : > { %6372 = vmatmul.mubr.msk.f32.vlgmr.msra.gmra.mrb[18].mxu0 %vm3228_vm4, %v6362_v31 }
 0xbf4   : > { %6624 = vmatpush3.bf16.msra.mxu0 %v6621_v24  ;;  %6382 = vmatprep.mubr.msk.f32.mxu0 %vm3228_vm4, %v3899_v27  ;;  %v4360_v24 = vld [vmem:[%s8582_s3 + $0x18] sm:$0xff] }
 0xbf5   : > { %6626 = vmatprep.subr.bf16.mxu0 %v6625_v33 }
 0xbf8   : > { %6628 = vmatpush3.bf16.msra.mxu0 %v6625_v33 }
 0xbf9   : > { %6634 = vmatprep.subr.bf16.mxu0 %v6633_v36 }
 0xbfb   : > { %6383 = vmatmul.mubr.msk.f32.vlgmr.msra.gmra.mrb[18].mxu0 %vm3228_vm4, %v6355_v25  ;;  %v4370_v25 = vld [vmem:[#allocation22 + $0x90] sm:$0xff] }
 0xbfc   : > { %6636 = vmatpush3.bf16.msra.mxu0 %v6633_v36  ;;  %6400 = vmatprep.mubr.msk.f32.mxu0 %vm3228_vm4, %v4223_v28  ;;  %v4364_v28 = vld [vmem:[#allocation22 + $0x60] sm:$0xff]  ;;  %v4367_v36 = vld [vmem:[#allocation22 + $0x78] sm:$0xff] }
 0xbfd   : > { %6638 = vmatprep.subr.bf16.mxu0 %v6637_v39  ;;  %v6657_v30 = vpack.c.bf16 %v4365_v29, %v4364_v28  ;;  %v4916_v29 = vld [vmem:[#allocation25 + $0x90] sm:$0xff] }
 0xc00   : > { %6640 = vmatpush3.bf16.msra.mxu0 %v6637_v39  ;;  %v6661_v39 = vpack.c.bf16 %v4367_v36, %v4366_v35  ;;  %v4920_v35 = vld [vmem:[#allocation25 + $0xb0] sm:$0xff]  ;;  %v4921_v36 = vld [vmem:[#allocation25 + $0xb8] sm:$0xff] }
 0xc03   : > { %6401 = vmatmul.mubr.msk.f32.vlgmr.msra.gmra.mrb[18].mxu0 %vm3228_vm4, %v6391_v26  ;;  %v4371_v26 = vld [vmem:[#allocation22 + $0x98] sm:$0xff] }
 0xc04   : > { %6443 = vmatprep.mubr.msk.f32.mxu0 %vm1163_vm2, %v4361_v41  ;;  %v6653_v27 = vpack.c.bf16 %v4371_v26, %v4370_v25  ;;  %v4373_v41 = vld [vmem:[#allocation22 + $0xa8] sm:$0xff] }
 0xc05   : > { %v4914_v25 = vld [vmem:[#allocation25 + $0x80] sm:$0xff]  ;;  %v4915_v26 = vld [vmem:[#allocation25 + $0x88] sm:$0xff] }
 0xc06   : > { %v6684_v28 = vpack.c.bf16 %v4915_v26, %v4914_v25 }
 0xcd6   : > { %v6402_v11 = vpop.f32.mrb[18].mxu0 }
 0xcd7   : > { %v4322_v43 = vadd.f32 %v6402_v11, %v5916_v42  ;;  %v4304_v12 = vpop.f32.mrb[19].mxu0  ;;  %v4374_v11 = vld [vmem:[#allocation22 + $0xb0] sm:$0xff] }
 0xcd8   : > { %v4321_v44 = vadd.f32 %v5916_v42, %v4304_v12  ;;  %v6669_v42 = vpack.c.bf16 %v4373_v41, %v4372_v40 }
 0xcd9   : > { %v4324_v45 = vsel %vm3228_vm4, %v4322_v43, 0.0  ;;  %v4334_v46 = vmul.f32 %v4322_v43, %v4322_v43 }
 0xcda   : > { %v4323_v47 = vsel %vm3228_vm4, %v4321_v44, 0.0  ;;  %v4333_v48 = vmul.f32 %v4321_v44, %v4321_v44 }
 0xcdb   : > { %v4336_v49 = vsel %vm3228_vm4, %v4334_v46, 0.0  ;;  %v4325_v50 = vadd.f32 %v4324_v45, %v4323_v47  ;;  %v7533_v45 = vmov 0.0   ;;  %v5929_v46 = vld [vmem:[#allocation24 + $0x1] ss:$0 sm:$0xff] }
 0xcdc   : > { %v4335_v51 = vsel %vm3228_vm4, %v4333_v48, 0.0 }
 0xcdd   : > { %v4326_v52 = vrot.slane %v4325_v50, 4  ;;  %v4337_v53 = vadd.f32 %v4336_v49, %v4335_v51 }
 0xcdf   : > { %v4327_v54 = vadd.f32 %v4326_v52, %v4325_v50  ;;  %v4338_v55 = vrot.slane %v4337_v53, 4 }
 0xce1   : > { %v4328_v56 = vrot.slane %v4327_v54, 2  ;;  %v4339_v57 = vadd.f32 %v4338_v55, %v4337_v53 }
 0xce3   : > { %v4329_v58 = vadd.f32 %v4328_v56, %v4327_v54  ;;  %v4340_v59 = vrot.slane %v4339_v57, 2 }
 0xce5   : > { %v4330_v60 = vrot.slane %v4329_v58, 1  ;;  %v4341_v1 = vadd.f32 %v4340_v59, %v4339_v57 }
 0xce7   : > { %v4331_v2 = vadd.f32 %v4330_v60, %v4329_v58  ;;  %v4342_v4 = vrot.slane %v4341_v1, 1 }
 0xce9   : > { %v4332_v5 = vmul.f32 0.0625, %v4331_v2  ;;  %v4343_v6 = vadd.f32 %v4342_v4, %v4341_v1 }
 0xceb   : > { %v4344_v7 = vmul.f32 0.0625, %v4343_v6  ;;  %v4345_v8 = vmul.f32 %v4332_v5, %v4332_v5  ;;  %v4347_v3 = vsub.f32 %v4321_v44, %v4332_v5  ;;  %v4348_v9 = vsub.f32 %v4322_v43, %v4332_v5  ;;  %v4375_v43 = vld [vmem:[#allocation22 + $0xb8] sm:$0xff] }
 0xcec   : > { %v6673_v12 = vpack.c.bf16 %v4375_v43, %v4374_v11  ;;  %v7531_v44 = vmov 0.0|0.0  }
 0xced   : > { %v4346_v10 = vsub.f32 %v4344_v7, %v4345_v8 }
 0xcef   : > { %v4349_v13 = vadd.f32 1e-05, %v4346_v10 }
 0xcf1   : > { %6949 = vrsqrt.f32 %v4349_v13 }
 0xcfb   : > { %v6950_v14 = vpop.eup %6949 }
 0xcfc   : > { %v4351_v15 = vmul.f32 %v6950_v14, %v4347_v3  ;;  %v4352_v16 = vmul.f32 %v6950_v14, %v4348_v9 }
 0xcfe   : > { %v4353_v17 = vmax.f32 %v4351_v15, 0.0  ;;  %v4354_v18 = vmax.f32 %v4352_v16, 0.0 }
 0xd00   : > { %v4355_v19 = vadd.f32 %v4353_v17, %v3259_v63  ;;  %v4356_v20 = vadd.f32 %v4354_v18, %v3260_v0  ;;  %v4359_v63 = vld [vmem:[%s8582_s3 + $0x10] sm:$0xff]  ;;  %v6649_v0 = vpack.c.bf16 %v4369_v23, %v4368_v22 }
 0xd02   : > { %v8373_v21 = vpack.c.bf16 %v4356_v20, %v4355_v19 }
 0xd04   : > { %6642 = vmatprep.subr.bf16.mxu1 %v8373_v21  ;;  %6666 = vmatprep.subr.bf16.mxu0 %v8373_v21 }
 0xd05   : > { %6644 = vmatpush3.bf16.msra.mxu1 %v8373_v21  ;;  %6668 = vmatpush3.bf16.msra.mxu0 %v8373_v21 }
 0xd06   : > { %6646 = vmatprep.subr.bf16.mxu1 %v8373_v21  ;;  %6677 = vmatprep.subr.bf16.mxu0 %v7531_v44 }
 0xd08   : > { %6408 = vmatmul.mubr.msk.f32.vlgmr.msra.gmra.mrb[28].mxu1 %vm1163_vm2, %v4358_v61  ;;  %6444 = vmatmul.mubr.msk.f32.vlgmr.msra.gmra.mrb[20].mxu0 %vm1163_vm2, %v4362_v62 }
 0xd09   : > { %6648 = vmatpush3.bf16.msra.mxu1 %v8373_v21  ;;  %6414 = vmatprep.mubr.msk.f32.mxu1 %vm1163_vm2, %v4359_v63 }
 0xd0a   : > { %6650 = vmatprep.subr.bf16.mxu1 %v6649_v0  ;;  %6461 = vmatprep.mubr.msk.f32.mxu0 %vm7532_vm5, %v7533_v45 }
 0xd0c   : > { %6415 = vmatmul.mubr.msk.f32.vlgmr.msra.gmra.mrb[30].mxu1 %vm1163_vm2, %v4360_v24  ;;  %v4908_v24 = vld [vmem:[#allocation21 + $0x10] sm:$0xff] }
 0xd0d   : > { %6652 = vmatpush3.bf16.msra.mxu1 %v6649_v0  ;;  %v4906_v0 = vld [vmem:[#allocation21] sm:$0xff] }
 0xd0e   : > { %6654 = vmatprep.subr.bf16.mxu1 %v6653_v27 }
 0xd11   : > { %6656 = vmatpush3.bf16.msra.mxu1 %v6653_v27  ;;  %v4907_v27 = vld [vmem:[#allocation21 + $0x8] sm:$0xff] }
 0xd12   : > { %6658 = vmatprep.subr.bf16.mxu1 %v6657_v30 }
 0xddb   : > { %v6409_v31 = vpop.f32.mrb[28].mxu1  ;;  %v6445_v32 = vpop.f32.mrb[20].mxu0 }
 0xddc   : > { %v4450_v33 = vpop.f32.mrb[29].mxu1  ;;  %v4774_v34 = vpop.f32.mrb[21].mxu0 }
 0xddf   : > { %v6416_v37 = vpop.f32.mrb[30].mxu1 }
 0xde0   : > { %v4531_v38 = vpop.f32.mrb[31].mxu1 }
 0xde1   : > { %6425 = vmatprep.mubr.msk.f32.mxu1 %vm3228_vm4, %v4531_v38  ;;  %v4910_v38 = vld [vmem:[#allocation25 + $0x60] sm:$0xff] }
 0xde2   : > { %6426 = vmatmul.mubr.msk.f32.vlgmr.msra.gmra.mrb[32].mxu1 %vm3228_vm4, %v6416_v37  ;;  %v6702_v37 = vpack.c.bf16 %v4921_v36, %v4920_v35 }
 0xde3   : > { %6660 = vmatpush3.bf16.msra.mxu1 %v6657_v30  ;;  %6436 = vmatprep.mubr.msk.f32.mxu1 %vm3228_vm4, %v4450_v33  ;;  %v4917_v30 = vld [vmem:[#allocation25 + $0x98] sm:$0xff]  ;;  %v4919_v33 = vld [vmem:[#allocation25 + $0xa8] sm:$0xff] }
 0xde4   : > { %6662 = vmatprep.subr.bf16.mxu1 %v6661_v39 }
 0xde7   : > { %6664 = vmatpush3.bf16.msra.mxu1 %v6661_v39  ;;  %v4911_v39 = vld [vmem:[#allocation25 + $0x68] sm:$0xff] }
 0xde8   : > { %6670 = vmatprep.subr.bf16.mxu1 %v6669_v42  ;;  %v6690_v43 = vpack.c.bf16 %v4911_v39, %v4910_v38 }
 0xdea   : > { %6437 = vmatmul.mubr.msk.f32.vlgmr.msra.gmra.mrb[32].mxu1 %vm3228_vm4, %v6409_v31  ;;  %v6687_v31 = vpack.c.bf16 %v4917_v30, %v4916_v29  ;;  %v5938_v30 = vld [vmem:[#allocation28] ss:$0 sm:$0xff] }
 0xdeb   : > { %6672 = vmatpush3.bf16.msra.mxu1 %v6669_v42  ;;  %6454 = vmatprep.mubr.msk.f32.mxu1 %vm3228_vm4, %v4774_v34 }
 0xdec   : > { %6674 = vmatprep.subr.bf16.mxu1 %v6673_v12 }
 0xdef   : > { %6676 = vmatpush3.bf16.msra.mxu1 %v6673_v12  ;;  %v4912_v12 = vld [vmem:[#allocation25 + $0x70] sm:$0xff] }
 0xdf0   : > { %6695 = vmatprep.subr.bf16.mxu1 %v7531_v44 }
 0xdf2   : > { %6455 = vmatmul.mubr.msk.f32.vlgmr.msra.gmra.mrb[32].mxu1 %vm3228_vm4, %v6445_v32  ;;  %v4918_v32 = vld [vmem:[#allocation25 + $0xa0] sm:$0xff] }
 0xdf3   : > { %6497 = vmatprep.mubr.msk.f32.mxu1 %vm7532_vm5, %v7533_v45  ;;  %v6699_v34 = vpack.c.bf16 %v4919_v33, %v4918_v32 }
 0xec5   : > { %v6456_v47 = vpop.f32.mrb[32].mxu1 }
 0xec6   : > { %v4873_v48 = vadd.f32 %v6456_v47, %v5929_v46  ;;  %v4855_v49 = vpop.f32.mrb[33].mxu1 }
 0xec7   : > { %v4872_v50 = vadd.f32 %v5929_v46, %v4855_v49  ;;  %v4913_v46 = vld [vmem:[#allocation25 + $0x78] sm:$0xff] }
 0xec8   : > { %v4875_v51 = vsel %vm3228_vm4, %v4873_v48, 0.0  ;;  %v4885_v52 = vmul.f32 %v4873_v48, %v4873_v48  ;;  %v6693_v49 = vpack.c.bf16 %v4913_v46, %v4912_v12 }
 0xec9   : > { %v4874_v53 = vsel %vm3228_vm4, %v4872_v50, 0.0  ;;  %v4884_v54 = vmul.f32 %v4872_v50, %v4872_v50 }
 0xeca   : > { %v4887_v55 = vsel %vm3228_vm4, %v4885_v52, 0.0  ;;  %v4876_v56 = vadd.f32 %v4875_v51, %v4874_v53  ;;  %v5469_v51 = vld [vmem:[%s8584_s8] sm:$0xff]  ;;  %v5471_v53 = vld [vmem:[%s8584_s8 + $0x10] sm:$0xff] }
 0xecb   : > { %v4886_v57 = vsel %vm3228_vm4, %v4884_v54, 0.0 }
 0xecc   : > { %v4877_v58 = vrot.slane %v4876_v56, 4  ;;  %v4888_v59 = vadd.f32 %v4887_v55, %v4886_v57 }
 0xece   : > { %v4878_v60 = vadd.f32 %v4877_v58, %v4876_v56  ;;  %v4889_v1 = vrot.slane %v4888_v59, 4 }
 0xed0   : > { %v4879_v2 = vrot.slane %v4878_v60, 2  ;;  %v4890_v4 = vadd.f32 %v4889_v1, %v4888_v59 }
 0xed2   : > { %v4880_v5 = vadd.f32 %v4879_v2, %v4878_v60  ;;  %v4891_v6 = vrot.slane %v4890_v4, 2  ;;  %v5936_v2 = vld [vmem:[#allocation27 + $0x1] ss:$0 sm:$0xff] }
 0xed4   : > { %v4881_v7 = vrot.slane %v4880_v5, 1  ;;  %v4892_v8 = vadd.f32 %v4891_v6, %v4890_v4 }
 0xed6   : > { %v4882_v3 = vadd.f32 %v4881_v7, %v4880_v5  ;;  %v4893_v9 = vrot.slane %v4892_v8, 1 }
 0xed8   : > { %v4883_v10 = vmul.f32 0.0625, %v4882_v3  ;;  %v4894_v13 = vadd.f32 %v4893_v9, %v4892_v8 }
 0xeda   : > { %v4895_v14 = vmul.f32 0.0625, %v4894_v13  ;;  %v4896_v15 = vmul.f32 %v4883_v10, %v4883_v10  ;;  %v4898_v16 = vsub.f32 %v4872_v50, %v4883_v10  ;;  %v4899_v17 = vsub.f32 %v4873_v48, %v4883_v10  ;;  %v5394_v50 = vld [vmem:[%s8583_s0] sm:$0xff]  ;;  %s1062_s0 = scalar_lea.vmem %s8585_s9, %s5824_s28 }
 0xedc   : > { %v4897_v18 = vsub.f32 %v4895_v14, %v4896_v15 }
 0xede   : > { %v4900_v19 = vadd.f32 1e-05, %v4897_v18 }
 0xee0   : > { %6951 = vrsqrt.f32 %v4900_v19 }
 0xeea   : > { %v6952_v20 = vpop.eup %6951 }
 0xeeb   : > { %v4902_v22 = vmul.f32 %v6952_v20, %v4898_v16  ;;  %v4903_v23 = vmul.f32 %v6952_v20, %v4899_v17 }
 0xeed   : > { %v4904_v61 = vmax.f32 %v4902_v22, 0.0  ;;  %v4905_v62 = vmax.f32 %v4903_v23, 0.0 }
 0xeef   : > { %v6678_v63 = vpack.c.bf16 %v4905_v62, %v4904_v61 }
 0xef1   : > { %6679 = vmatpush3.bf16.msra.mxu0 %v6678_v63  ;;  %6697 = vmatpush3.bf16.msra.mxu1 %v6678_v63 }
 0xef2   : > { %6680 = vmatprep.subr.bf16.mxu0 %v7531_v44  ;;  %6698 = vmatprep.subr.bf16.mxu1 %v7531_v44 }
 0xef4   : > { %6462 = vmatmul.mubr.msk.f32.vlgmr.msra.gmra.mrb[22].mxu0 %vm1163_vm2, %v4906_v0  ;;  %6498 = vmatmul.mubr.msk.f32.vlgmr.msra.gmra.mrb[34].mxu1 %vm1163_vm2, %v4908_v24 }
 0xef5   : > { %6682 = vmatpush3.bf16.msra.mxu0 %v6678_v63  ;;  %6468 = vmatprep.mubr.msk.f32.mxu0 %vm7532_vm5, %v7533_v45 }
 0xef6   : > { %6683 = vmatprep.subr.bf16.mxu0 %v7531_v44  ;;  %6508 = vmatprep.mubr.msk.f32.mxu1 %vm7532_vm5, %v7533_v45 }
 0xef7   : > { %6700 = vmatpush3.bf16.msra.mxu1 %v6699_v34 }
 0xef8   : > { %6469 = vmatmul.mubr.msk.f32.vlgmr.msra.gmra.mrb[24].mxu0 %vm1163_vm2, %v4907_v27  ;;  %6701 = vmatprep.subr.bf16.mxu1 %v7531_v44 }
 0xef9   : > { %6685 = vmatpush3.bf16.msra.mxu0 %v6684_v28  ;;  %6479 = vmatprep.mubr.msk.f32.mxu0 %vm7532_vm5, %v7533_v45 }
 0xefa   : > { %6686 = vmatprep.subr.bf16.mxu0 %v7531_v44 }
 0xefb   : > { %6703 = vmatpush3.bf16.msra.mxu1 %v6702_v37 }
 0xefd   : > { %6688 = vmatpush3.bf16.msra.mxu0 %v6687_v31 }
 0xefe   : > { %6689 = vmatprep.subr.bf16.mxu0 %v7531_v44 }
 0xfc7   : > { %v4993_v40 = vpop.f32.mrb[22].mxu0  ;;  %v5285_v41 = vpop.f32.mrb[34].mxu1 }
 0xfc8   : > { %v6463_v42 = vpop.f32.mrb[23].mxu0  ;;  %v6499_v11 = vpop.f32.mrb[35].mxu1  ;;  %6509 = vmatmul.mubr.msk.f32.vlgmr.msra.gmra.mrb[36].mxu1 %vm3228_vm4, %v5285_v41 }
 0xfcb   : > { %v5066_v47 = vpop.f32.mrb[24].mxu0 }
 0xfcc   : > { %v6470_v48 = vpop.f32.mrb[25].mxu0  ;;  %6480 = vmatmul.mubr.msk.f32.vlgmr.msra.gmra.mrb[26].mxu0 %vm3228_vm4, %v5066_v47 }
 0xfcd   : > { %6691 = vmatpush3.bf16.msra.mxu0 %v6690_v43  ;;  %6490 = vmatprep.mubr.msk.f32.mxu0 %vm7532_vm5, %v7533_v45 }
 0xfce   : > { %6692 = vmatprep.subr.bf16.mxu0 %v7531_v44 }
 0xfd1   : > { %6694 = vmatpush3.bf16.msra.mxu0 %v6693_v49 }
 0xfd2   : > { %6704 = vmatprep.subr.bf16.mxu0 %v7531_v44 }
 0xfd4   : > { %6491 = vmatmul.mubr.msk.f32.vlgmr.msra.gmra.mrb[28].mxu0 %vm3228_vm4, %v4993_v40 }
 0xfd5   : > { %6706 = vmatpush3.bf16.msra.mxu0 %v8373_v21  ;;  %6515 = vmatprep.mubr.msk.f32.mxu0 %vm7532_vm5, %v7533_v45  ;;  %v5470_v21 = vld [vmem:[%s8584_s8 + $0x8] sm:$0xff] }
 0xfd6   : > { %6707 = vmatprep.subr.bf16.mxu0 %v7531_v44  ;;  %v6708_v52 = vpack.c.bf16 %v5470_v21, %v5469_v51 }
 0xfd8   : > { %6516 = vmatmul.mubr.msk.f32.vlgmr.msra.gmra.mrb[30].mxu0 %vm1163_vm2, %v5394_v50 }
 0xfd9   : > { %6526 = vmatprep.mubr.msk.f32.mxu0 %vm7532_vm5, %v7533_v45  ;;  %6709 = vmatpush3.bf16.msra.mxu0 %v6708_v52  ;;  %v5472_v45 = vld [vmem:[%s8584_s8 + $0x18] sm:$0xff] }
 0xfda   : > { %6710 = vmatprep.subr.bf16.mxu0 %v7531_v44  ;;  %v6711_v54 = vpack.c.bf16 %v5472_v45, %v5471_v53 }
 0xfdd   : > { %6712 = vmatpush3.bf16.msra.mxu0 %v6711_v54 }
0x109b   : > { %v5358_v55 = vpop.f32.mrb[36].mxu1 }
0x109c   : > { %v6510_v56 = vpop.f32.mrb[37].mxu1 }
0x109f   : > { %v5139_v57 = vpop.f32.mrb[26].mxu0 }
0x10a0   : > { %v6481_v58 = vpop.f32.mrb[27].mxu0 }
0x10a7   : > { %v5212_v59 = vpop.f32.mrb[28].mxu0 }
0x10a8   : > { %v5213_v60 = vadd.f32 %v5212_v59, %v5139_v57  ;;  %v6492_v1 = vpop.f32.mrb[29].mxu0 }
0x10aa   : > { %v5362_v4 = vadd.f32 %v5358_v55, %v5213_v60 }
0x10ab   : > { %v5464_v44 = vpop.f32.mrb[30].mxu0 }
0x10ac   : > { %v5369_v5 = vadd.f32 %v5936_v2, %v5362_v4  ;;  %v6517_v6 = vpop.f32.mrb[31].mxu0 }
0x10ae   : > { %v5370_v7 = vsel %vm3228_vm4, %v5369_v5, 0.0  ;;  %v5378_v8 = vmul.f32 %v5369_v5, %v5369_v5 }
0x10af   : > { %v5371_v3 = vrot.slane %v5370_v7, 4 }
0x10b0   : > { %v5379_v9 = vsel %vm3228_vm4, %v5378_v8, 0.0 }
0x10b1   : > { %v5372_v10 = vadd.f32 %v5371_v3, %v5370_v7  ;;  %v5380_v13 = vrot.slane %v5379_v9, 4 }
0x10b3   : > { %v5373_v14 = vrot.slane %v5372_v10, 2  ;;  %v5381_v15 = vadd.f32 %v5380_v13, %v5379_v9 }
0x10b5   : > { %v5382_v16 = vrot.slane %v5381_v15, 2  ;;  %v5374_v17 = vadd.f32 %v5373_v14, %v5372_v10 }
0x10b7   : > { %v5383_v18 = vadd.f32 %v5382_v16, %v5381_v15  ;;  %v5375_v19 = vrot.slane %v5374_v17, 1 }
0x10b9   : > { %v5384_v20 = vrot.slane %v5383_v18, 1  ;;  %v5376_v22 = vadd.f32 %v5375_v19, %v5374_v17 }
0x10bb   : > { %v5377_v23 = vmul.f32 0.125, %v5376_v22  ;;  %v5385_v61 = vadd.f32 %v5384_v20, %v5383_v18 }
0x10bd   : > { %v5386_v62 = vmul.f32 0.125, %v5385_v61  ;;  %v5387_v63 = vmul.f32 %v5377_v23, %v5377_v23  ;;  %v5389_v25 = vsub.f32 %v5369_v5, %v5377_v23 }
0x10bf   : > { %v5388_v0 = vsub.f32 %v5386_v62, %v5387_v63 }
0x10c1   : > { %v5390_v24 = vadd.f32 1e-05, %v5388_v0 }
0x10c3   : > { %6953 = vrsqrt.f32 %v5390_v24 }
0x10cd   : > { %v6954_v26 = vpop.eup %6953 }
0x10ce   : > { %v5392_v27 = vmul.f32 %v6954_v26, %v5389_v25 }
0x10d0   : > { %v5393_v28 = vmax.f32 %v5392_v27, 0.0 }
0x10d2   : > { %v5468_v29 = vadd.f32 %v5464_v44, %v5393_v28 }
0x10d4   : > { %6527 = vmatmul.mubr.msk.f32.vlgmr.msra.gmra.mrb[32].mxu0 %vm3228_vm4, %v5468_v29 }
0x11a7   : > { %v5549_v31 = vpop.f32.mrb[32].mxu0 }
0x11a8   : > { %v5550_v32 = vadd.f32 %v5938_v30, %v5549_v31  ;;  %v6528_v33 = vpop.f32.mrb[33].mxu0 }
0x11aa   : > { %5553 = vst.msk [vmem:[%s1062_s0] sm:$0xff] %vm1338_vm3, %v5550_v32 }
0x11ab PF: > { %s8586_s10 = sld [smem:[#allocation40_spill]] }
0x11b1   : > { %s47_s7 = sadd.s32 1, %s8586_s10  }
0x11b2   : > { %p44_p6 = scmp.ge.s32.totalorder %s47_s7, 4  }
0x11b4   :  { %46 = sbr.rel (!%p44_p6) target bundleno = 29 (0x1d), region = 238 }
0x11bb   :  { %5573 = vsyncpa [#allocation3], 1 }
0x11bc   :  { %5575 = vsyncpa [#allocation3 + $0x1], 1 }
0x11bd   :  { %5576 = vsyncpa [#allocation5], 1 }
0x11be   :  { %5577 = vsyncpa [#allocation8], 1 }
0x11bf   :  { %5578 = vsyncpa [#allocation11], 1 }
0x11c0   :  { %5579 = vsyncpa [#allocation14], 1 }
0x11c1   :  { %5580 = vsyncpa [#allocation17], 1 }
0x11c2   :  { %5581 = vsyncpa [#allocation20], 1 }
0x11c3   :  { %5582 = vsyncpa [#allocation23], 1 }
0x11c4   :  { %5583 = vsyncpa [#allocation26], 1 }
0x11c5   :  { %5584 = vsyncpa [#allocation29], 1 }

</bundles_post_ra>
